<compile_context>
chip_gen: v7x
topology: tpu7x:2x2x1
jax: 0.10.0
libtpu: 0.0.40
codegen_flags: <defaults>
</compile_context>

<pallas_src>
import functools

import jax
import jax.numpy as jnp
from jax import lax
from jax.experimental import pallas as pl
from jax.experimental.pallas import tpu as pltpu

BN_EPS = 1e-5
# Set to jnp.bfloat16 on v6e/v7x for higher MXU throughput (f32 accumulation is
# kept either way); left at f32 here so the 1e-4 correctness check stays tight.
MATMUL_DTYPE = jnp.float32


# --------------------------- Pallas kernels ---------------------------------
def conv3x3_stats_kernel(x_ref, w_ref, b_ref, y_ref, s_ref):
    """Fused 3x3 conv (pad=1 via halo rows / pre-padded W) + bias for one row tile,
    plus per-tile BatchNorm partial statistics.

    x_ref : (N, TH+2, W+2, Cin_p)  halo'd input tile (auto-pipelined VMEM block)
    w_ref : (9, Cin_p, Cout_p)     tap-major weights (dy*3 + dx)
    b_ref : (1, Cout_p)            conv bias
    y_ref : (N, TH, W, Cout_p)     pre-BN conv output tile (lane-dense Cout_p)
    s_ref : (2, Cout_p)            per-tile [sum, sum-of-squares] over (N,TH,W)
    """
    N, Hh, Wh, cin_p = x_ref.shape
    TH, W = Hh - 2, Wh - 2
    cout_p = y_ref.shape[-1]
    Me = N * Hh * W                       # rows including the 2 halo rows

    x = x_ref[...]
    acc = jnp.zeros((N, TH, W, cout_p), jnp.float32)
    for dx in range(3):
        # One W-shift materialisation per dx (3 total instead of 9 per-tap copies).
        p = x[:, :, dx:dx + W, :].reshape(Me, cin_p).astype(MATMUL_DTYPE)
        for dy in range(3):
            q = jnp.dot(p, w_ref[dy * 3 + dx].astype(MATMUL_DTYPE),
                        preferred_element_type=jnp.float32)
            # dy tap = row-shifted slice of the matmul result; leading-dim slice
            # (last two dims untouched) -> cheap.
            acc = acc + q.reshape(N, Hh, W, cout_p)[:, dy:dy + TH]
    acc = acc + b_ref[...].reshape(1, 1, 1, cout_p)

    y_ref[...] = acc
    acc2 = acc.reshape(N * TH * W, cout_p)
    s_ref[0:1, :] = jnp.sum(acc2, axis=0, keepdims=True)
    s_ref[1:2, :] = jnp.sum(acc2 * acc2, axis=0, keepdims=True)


def bn_relu_kernel(y_ref, scale_ref, shift_ref, o_ref):
    """Elementwise y*scale + shift, ReLU.  Lane-dense (Cout_p multiple of 128)."""
    cout_p = o_ref.shape[-1]
    scale = scale_ref[...].reshape(1, 1, 1, cout_p)
    shift = shift_ref[...].reshape(1, 1, 1, cout_p)
    o_ref[...] = jnp.maximum(y_ref[...] * scale + shift, 0.0)


# --------------------------- wrapper / tiling --------------------------------
def _round_up(v, m):
    return (v + m - 1) // m * m


def _largest_divisor_at_most(n, cap):
    for d in range(min(cap, n), 0, -1):
        if n % d == 0:
            return d
    return 1


def _pick_tile_h(N, H, W, cin_p, cout_p, budget_bytes=8 * 1024 * 1024):
    """Largest divisor of H whose double-buffered tile working set fits the budget
    (conservative across v5e/v6e 128 MiB and v7x 64 MiB physical VMEM)."""
    best = 1
    for th in range(1, H + 1):
        if H % th:
            continue
        in_tile = N * (th + 2) * (W + 2) * cin_p * 4
        out_tile = N * th * W * cout_p * 4
        scratch = N * th * W * cout_p * 4 + N * (th + 2) * W * (cin_p + cout_p) * 4
        if 2 * (in_tile + out_tile) + scratch <= budget_bytes:
            best = th
    return best


def conv_bn_relu(x_nhwc, w, b, gamma, beta, *, tile_h=None):
    """One Conv2d(3x3, pad=1) + BatchNorm2d(batch stats) + ReLU stage on NHWC.
    x_nhwc: (N,H,W,Cin) f32; w: (3,3,Cin,Cout) HWIO; b/gamma/beta: (Cout,)."""
    N, H, W, Cin = x_nhwc.shape
    Cout = w.shape[-1]
    cin_p = _round_up(Cin, 8)          # sublane-friendly contraction dim
    cout_p = _round_up(Cout, 128)      # lane-dense output channel dim

    if tile_h is None:
        tile_h = _pick_tile_h(N, H, W, cin_p, cout_p)
    else:
        tile_h = _largest_divisor_at_most(H, tile_h)
    T = H // tile_h

    # Channel padding (zeros -> padded channels stay exactly zero end-to-end).
    x = jnp.pad(x_nhwc.astype(jnp.float32),
                ((0, 0), (0, 0), (0, 0), (0, cin_p - Cin)))
    wp = jnp.pad(w.astype(jnp.float32),
                 ((0, 0), (0, 0), (0, cin_p - Cin), (0, cout_p - Cout)))
    w9 = wp.reshape(9, cin_p, cout_p)
    bp = jnp.pad(b.astype(jnp.float32), (0, cout_p - Cout)).reshape(1, cout_p)
    gp = jnp.pad(gamma.astype(jnp.float32), (0, cout_p - Cout))
    betap = jnp.pad(beta.astype(jnp.float32), (0, cout_p - Cout))

    # Spatial pad=1 once, then build the halo-tiled slab:
    # tile t holds padded rows [t*tile_h, t*tile_h + tile_h + 2).
    xp = jnp.pad(x, ((0, 0), (1, 1), (1, 1), (0, 0)))
    xt = jnp.stack([xp[:, t * tile_h: t * tile_h + tile_h + 2]
                    for t in range(T)], axis=0)

    cparams = pltpu.CompilerParams(dimension_semantics=("parallel",),
                                   vmem_limit_bytes=64 * 1024 * 1024)

    me = N * (tile_h + 2) * W
    conv_cost = pl.CostEstimate(
        flops=2 * T * me * 9 * cin_p * cout_p,
        transcendentals=0,
        bytes_accessed=4 * (xt.size + w9.size + bp.size
                            + N * H * W * cout_p + T * 2 * cout_p))

    y_conv, stats = pl.pallas_call(
        conv3x3_stats_kernel,
        grid=(T,),
        in_specs=[
            pl.BlockSpec((None, N, tile_h + 2, W + 2, cin_p),
                         lambda i: (i, 0, 0, 0, 0)),
            pl.BlockSpec((9, cin_p, cout_p), lambda i: (0, 0, 0)),
            pl.BlockSpec((1, cout_p), lambda i: (0, 0)),
        ],
        out_specs=(
            pl.BlockSpec((N, tile_h, W, cout_p), lambda i: (0, i, 0, 0)),
            pl.BlockSpec((None, 2, cout_p), lambda i: (i, 0, 0)),
        ),
        out_shape=(
            jax.ShapeDtypeStruct((N, H, W, cout_p), jnp.float32),
            jax.ShapeDtypeStruct((T, 2, cout_p), jnp.float32),
        ),
        compiler_params=cparams,
        cost_estimate=conv_cost,
    )(xt, w9, bp)

    # BatchNorm finalise: global batch stats = cross-tile reduction of partials
    # (tiny (T,2,Cout_p) tensor, done in plain JAX). Biased variance, as PyTorch
    # training-mode normalization uses.
    m_total = N * H * W
    s = jnp.sum(stats, axis=0)
    mean = s[0] / m_total
    var = jnp.maximum(s[1] / m_total - mean * mean, 0.0)
    inv = lax.rsqrt(var + BN_EPS)
    scale = (gp * inv).reshape(1, cout_p)
    shift = (betap - mean * gp * inv).reshape(1, cout_p)

    bn_cost = pl.CostEstimate(
        flops=3 * N * H * W * cout_p,
        transcendentals=0,
        bytes_accessed=4 * (2 * N * H * W * cout_p + 2 * cout_p))

    out = pl.pallas_call(
        bn_relu_kernel,
        grid=(T,),
        in_specs=[
            pl.BlockSpec((N, tile_h, W, cout_p), lambda i: (0, i, 0, 0)),
            pl.BlockSpec((1, cout_p), lambda i: (0, 0)),
            pl.BlockSpec((1, cout_p), lambda i: (0, 0)),
        ],
        out_specs=pl.BlockSpec((N, tile_h, W, cout_p), lambda i: (0, i, 0, 0)),
        out_shape=jax.ShapeDtypeStruct((N, H, W, cout_p), jnp.float32),
        compiler_params=cparams,
        cost_estimate=bn_cost,
    )(y_conv, scale, shift)

    return out[..., :Cout]


def double_conv_forward(x_nchw, params, *, tile_h=None):
    """(Conv3x3 + BatchNorm(batch stats) + ReLU) x 2 — the core fused primitive
    used throughout Resunet_1's conv/BN/ReLU Sequential blocks. NCHW in/out;
    stays in NHWC between the two stages (no intermediate layout round-trips)."""
    x = jnp.transpose(x_nchw, (0, 2, 3, 1)).astype(jnp.float32)      # NCHW -> NHWC
    x = conv_bn_relu(x, params["w1"], params["b1"], params["g1"], params["be1"],
                     tile_h=tile_h)
    x = conv_bn_relu(x, params["w2"], params["b2"], params["g2"], params["be2"],
                     tile_h=tile_h)
    return jnp.transpose(x, (0, 3, 1, 2))                            # NHWC -> NCHW


# ---------- pure-JAX reference (silent correctness check) ----------
def _ref_conv_bn_relu(x_nhwc, w, b, gamma, beta):
    y = lax.conv_general_dilated(
        x_nhwc, w, window_strides=(1, 1), padding="SAME",
        dimension_numbers=("NHWC", "HWIO", "NHWC"))
    y = y + b
    mean = jnp.mean(y, axis=(0, 1, 2), keepdims=True)
    var = jnp.mean((y - mean) ** 2, axis=(0, 1, 2), keepdims=True)
    y = (y - mean) * lax.rsqrt(var + BN_EPS) * gamma + beta
    return jnp.maximum(y, 0.0)


def _ref_forward(x_nchw, p):
    x = jnp.transpose(x_nchw, (0, 2, 3, 1)).astype(jnp.float32)
    x = _ref_conv_bn_relu(x, p["w1"], p["b1"], p["g1"], p["be1"])
    x = _ref_conv_bn_relu(x, p["w2"], p["b2"], p["g2"], p["be2"])
    return jnp.transpose(x, (0, 3, 1, 2))


def init_params(key, in_ch, out_ch):
    ks = jax.random.split(key, 8)
    return {
        "w1": 0.1 * jax.random.normal(ks[0], (3, 3, in_ch, out_ch), jnp.float32),
        "b1": 0.1 * jax.random.normal(ks[1], (out_ch,), jnp.float32),
        "g1": 1.0 + 0.1 * jax.random.normal(ks[2], (out_ch,), jnp.float32),
        "be1": 0.1 * jax.random.normal(ks[3], (out_ch,), jnp.float32),
        "w2": 0.1 * jax.random.normal(ks[4], (3, 3, out_ch, out_ch), jnp.float32),
        "b2": 0.1 * jax.random.normal(ks[5], (out_ch,), jnp.float32),
        "g2": 1.0 + 0.1 * jax.random.normal(ks[6], (out_ch,), jnp.float32),
        "be2": 0.1 * jax.random.normal(ks[7], (out_ch,), jnp.float32),
    }


if __name__ == "__main__":
    key = jax.random.PRNGKey(0)
    k_x, k_p = jax.random.split(key)

    N, in_ch, out_ch, H, W = 2, 4, 8, 16, 16
    x = jax.random.normal(k_x, (N, in_ch, H, W), jnp.float32)        # NCHW input
    params = init_params(k_p, in_ch, out_ch)

    # tile_h=8 -> 2 row tiles: exercises the grid, halo blocks and the
    # cross-tile BN partial-stats reduction.
    fwd = jax.jit(functools.partial(double_conv_forward, tile_h=8))
    out = jax.block_until_ready(fwd(x, params))

    ref = _ref_forward(x, params)
    assert out.shape == (N, out_ch, H, W)
    assert jnp.allclose(out, ref, atol=1e-4, rtol=1e-4), \
        float(jnp.max(jnp.abs(out - ref)))

    print("KERNEL_OK")
</pallas_src>

<mosaic_0001>
module attributes {stable_mosaic.version = 11 : i64} {
  func.func @conv3x3_stats_kernel(%arg0: i32, %arg1: memref<1x2x10x18x8xf32, #tpu.memory_space<vmem>>, %arg2: memref<9x8x128xf32, #tpu.memory_space<vmem>>, %arg3: memref<1x128xf32, #tpu.memory_space<vmem>>, %arg4: memref<2x8x16x128xf32, #tpu.memory_space<vmem>>, %arg5: memref<1x2x128xf32, #tpu.memory_space<vmem>>) attributes {dimension_semantics = [#tpu.dimension_semantics<parallel>], iteration_bounds = array<i64: 2>, scalar_prefetch = 0 : i64, scratch_operands = 0 : i64, tpu.core_type = #tpu.core_type<tc>, window_params = [{transform_indices = @transform_0, window_bounds = array<i64: 1, 2, 10, 18, 8>}, {pipeline_mode = #tpu.pipeline_mode<synchronous>, transform_indices = @transform_1, window_bounds = array<i64: 9, 8, 128>}, {pipeline_mode = #tpu.pipeline_mode<synchronous>, transform_indices = @transform_2, window_bounds = array<i64: 1, 128>}, {transform_indices = @transform_3, window_bounds = array<i64: 2, 8, 16, 128>}, {transform_indices = @transform_4, window_bounds = array<i64: 1, 2, 128>}]} {
    %c0 = arith.constant 0 : index
    %c0_0 = arith.constant 0 : index
    %c0_1 = arith.constant 0 : index
    %c0_2 = arith.constant 0 : index
    %c0_3 = arith.constant 0 : index
    %0 = vector.load %arg1[%c0, %c0_0, %c0_1, %c0_2, %c0_3] : memref<1x2x10x18x8xf32, #tpu.memory_space<vmem>>, vector<1x2x10x18x8xf32>
    %1 = vector.shape_cast %0 : vector<1x2x10x18x8xf32> to vector<2x10x18x8xf32>
    %cst = arith.constant 0.000000e+00 : f32
    %2 = vector.broadcast %cst : f32 to vector<2x8x16x128xf32>
    %3 = vector.extract_strided_slice %1 {offsets = [0, 0, 0, 0], sizes = [2, 10, 16, 8], strides = [1, 1, 1, 1]} : vector<2x10x18x8xf32> to vector<2x10x16x8xf32>
    %4 = vector.shape_cast %3 : vector<2x10x16x8xf32> to vector<320x8xf32>
    %c0_4 = arith.constant 0 : index
    %c0_5 = arith.constant 0 : index
    %c0_6 = arith.constant 0 : index
    %5 = vector.load %arg2[%c0_4, %c0_5, %c0_6] : memref<9x8x128xf32, #tpu.memory_space<vmem>>, vector<1x8x128xf32>
    %6 = vector.shape_cast %5 : vector<1x8x128xf32> to vector<8x128xf32>
    %cst_7 = arith.constant dense<0.000000e+00> : vector<320x128xf32>
    %7 = tpu.matmul %4, %6, %cst_7 {dimension_numbers = #tpu.dot_dimension_numbers<[1], [0], [0], [1], [0, 0, 1, 1], [], []>} : vector<320x8xf32>, vector<8x128xf32>, vector<320x128xf32> -> vector<320x128xf32>
    %8 = vector.shape_cast %7 : vector<320x128xf32> to vector<2x10x16x128xf32>
    %9 = vector.extract_strided_slice %8 {offsets = [0, 0, 0, 0], sizes = [2, 8, 16, 128], strides = [1, 1, 1, 1]} : vector<2x10x16x128xf32> to vector<2x8x16x128xf32>
    %10 = arith.addf %2, %9 : vector<2x8x16x128xf32>
    %c3 = arith.constant 3 : index
    %c0_8 = arith.constant 0 : index
    %c0_9 = arith.constant 0 : index
    %11 = vector.load %arg2[%c3, %c0_8, %c0_9] : memref<9x8x128xf32, #tpu.memory_space<vmem>>, vector<1x8x128xf32>
    %12 = vector.shape_cast %11 : vector<1x8x128xf32> to vector<8x128xf32>
    %cst_10 = arith.constant dense<0.000000e+00> : vector<320x128xf32>
    %13 = tpu.matmul %4, %12, %cst_10 {dimension_numbers = #tpu.dot_dimension_numbers<[1], [0], [0], [1], [0, 0, 1, 1], [], []>} : vector<320x8xf32>, vector<8x128xf32>, vector<320x128xf32> -> vector<320x128xf32>
    %14 = vector.shape_cast %13 : vector<320x128xf32> to vector<2x10x16x128xf32>
    %15 = vector.extract_strided_slice %14 {offsets = [0, 1, 0, 0], sizes = [2, 8, 16, 128], strides = [1, 1, 1, 1]} : vector<2x10x16x128xf32> to vector<2x8x16x128xf32>
    %16 = arith.addf %10, %15 : vector<2x8x16x128xf32>
    %c6 = arith.constant 6 : index
    %c0_11 = arith.constant 0 : index
    %c0_12 = arith.constant 0 : index
    %17 = vector.load %arg2[%c6, %c0_11, %c0_12] : memref<9x8x128xf32, #tpu.memory_space<vmem>>, vector<1x8x128xf32>
    %18 = vector.shape_cast %17 : vector<1x8x128xf32> to vector<8x128xf32>
    %cst_13 = arith.constant dense<0.000000e+00> : vector<320x128xf32>
    %19 = tpu.matmul %4, %18, %cst_13 {dimension_numbers = #tpu.dot_dimension_numbers<[1], [0], [0], [1], [0, 0, 1, 1], [], []>} : vector<320x8xf32>, vector<8x128xf32>, vector<320x128xf32> -> vector<320x128xf32>
    %20 = vector.shape_cast %19 : vector<320x128xf32> to vector<2x10x16x128xf32>
    %21 = vector.extract_strided_slice %20 {offsets = [0, 2, 0, 0], sizes = [2, 8, 16, 128], strides = [1, 1, 1, 1]} : vector<2x10x16x128xf32> to vector<2x8x16x128xf32>
    %22 = arith.addf %16, %21 : vector<2x8x16x128xf32>
    %23 = vector.extract_strided_slice %1 {offsets = [0, 0, 1, 0], sizes = [2, 10, 16, 8], strides = [1, 1, 1, 1]} : vector<2x10x18x8xf32> to vector<2x10x16x8xf32>
    %24 = vector.shape_cast %23 : vector<2x10x16x8xf32> to vector<320x8xf32>
    %c1 = arith.constant 1 : index
    %c0_14 = arith.constant 0 : index
    %c0_15 = arith.constant 0 : index
    %25 = vector.load %arg2[%c1, %c0_14, %c0_15] : memref<9x8x128xf32, #tpu.memory_space<vmem>>, vector<1x8x128xf32>
    %26 = vector.shape_cast %25 : vector<1x8x128xf32> to vector<8x128xf32>
    %cst_16 = arith.constant dense<0.000000e+00> : vector<320x128xf32>
    %27 = tpu.matmul %24, %26, %cst_16 {dimension_numbers = #tpu.dot_dimension_numbers<[1], [0], [0], [1], [0, 0, 1, 1], [], []>} : vector<320x8xf32>, vector<8x128xf32>, vector<320x128xf32> -> vector<320x128xf32>
    %28 = vector.shape_cast %27 : vector<320x128xf32> to vector<2x10x16x128xf32>
    %29 = vector.extract_strided_slice %28 {offsets = [0, 0, 0, 0], sizes = [2, 8, 16, 128], strides = [1, 1, 1, 1]} : vector<2x10x16x128xf32> to vector<2x8x16x128xf32>
    %30 = arith.addf %22, %29 : vector<2x8x16x128xf32>
    %c4 = arith.constant 4 : index
    %c0_17 = arith.constant 0 : index
    %c0_18 = arith.constant 0 : index
    %31 = vector.load %arg2[%c4, %c0_17, %c0_18] : memref<9x8x128xf32, #tpu.memory_space<vmem>>, vector<1x8x128xf32>
    %32 = vector.shape_cast %31 : vector<1x8x128xf32> to vector<8x128xf32>
    %cst_19 = arith.constant dense<0.000000e+00> : vector<320x128xf32>
    %33 = tpu.matmul %24, %32, %cst_19 {dimension_numbers = #tpu.dot_dimension_numbers<[1], [0], [0], [1], [0, 0, 1, 1], [], []>} : vector<320x8xf32>, vector<8x128xf32>, vector<320x128xf32> -> vector<320x128xf32>
    %34 = vector.shape_cast %33 : vector<320x128xf32> to vector<2x10x16x128xf32>
    %35 = vector.extract_strided_slice %34 {offsets = [0, 1, 0, 0], sizes = [2, 8, 16, 128], strides = [1, 1, 1, 1]} : vector<2x10x16x128xf32> to vector<2x8x16x128xf32>
    %36 = arith.addf %30, %35 : vector<2x8x16x128xf32>
    %c7 = arith.constant 7 : index
    %c0_20 = arith.constant 0 : index
    %c0_21 = arith.constant 0 : index
    %37 = vector.load %arg2[%c7, %c0_20, %c0_21] : memref<9x8x128xf32, #tpu.memory_space<vmem>>, vector<1x8x128xf32>
    %38 = vector.shape_cast %37 : vector<1x8x128xf32> to vector<8x128xf32>
    %cst_22 = arith.constant dense<0.000000e+00> : vector<320x128xf32>
    %39 = tpu.matmul %24, %38, %cst_22 {dimension_numbers = #tpu.dot_dimension_numbers<[1], [0], [0], [1], [0, 0, 1, 1], [], []>} : vector<320x8xf32>, vector<8x128xf32>, vector<320x128xf32> -> vector<320x128xf32>
    %40 = vector.shape_cast %39 : vector<320x128xf32> to vector<2x10x16x128xf32>
    %41 = vector.extract_strided_slice %40 {offsets = [0, 2, 0, 0], sizes = [2, 8, 16, 128], strides = [1, 1, 1, 1]} : vector<2x10x16x128xf32> to vector<2x8x16x128xf32>
    %42 = arith.addf %36, %41 : vector<2x8x16x128xf32>
    %43 = vector.extract_strided_slice %1 {offsets = [0, 0, 2, 0], sizes = [2, 10, 16, 8], strides = [1, 1, 1, 1]} : vector<2x10x18x8xf32> to vector<2x10x16x8xf32>
    %44 = vector.shape_cast %43 : vector<2x10x16x8xf32> to vector<320x8xf32>
    %c2 = arith.constant 2 : index
    %c0_23 = arith.constant 0 : index
    %c0_24 = arith.constant 0 : index
    %45 = vector.load %arg2[%c2, %c0_23, %c0_24] : memref<9x8x128xf32, #tpu.memory_space<vmem>>, vector<1x8x128xf32>
    %46 = vector.shape_cast %45 : vector<1x8x128xf32> to vector<8x128xf32>
    %cst_25 = arith.constant dense<0.000000e+00> : vector<320x128xf32>
    %47 = tpu.matmul %44, %46, %cst_25 {dimension_numbers = #tpu.dot_dimension_numbers<[1], [0], [0], [1], [0, 0, 1, 1], [], []>} : vector<320x8xf32>, vector<8x128xf32>, vector<320x128xf32> -> vector<320x128xf32>
    %48 = vector.shape_cast %47 : vector<320x128xf32> to vector<2x10x16x128xf32>
    %49 = vector.extract_strided_slice %48 {offsets = [0, 0, 0, 0], sizes = [2, 8, 16, 128], strides = [1, 1, 1, 1]} : vector<2x10x16x128xf32> to vector<2x8x16x128xf32>
    %50 = arith.addf %42, %49 : vector<2x8x16x128xf32>
    %c5 = arith.constant 5 : index
    %c0_26 = arith.constant 0 : index
    %c0_27 = arith.constant 0 : index
    %51 = vector.load %arg2[%c5, %c0_26, %c0_27] : memref<9x8x128xf32, #tpu.memory_space<vmem>>, vector<1x8x128xf32>
    %52 = vector.shape_cast %51 : vector<1x8x128xf32> to vector<8x128xf32>
    %cst_28 = arith.constant dense<0.000000e+00> : vector<320x128xf32>
    %53 = tpu.matmul %44, %52, %cst_28 {dimension_numbers = #tpu.dot_dimension_numbers<[1], [0], [0], [1], [0, 0, 1, 1], [], []>} : vector<320x8xf32>, vector<8x128xf32>, vector<320x128xf32> -> vector<320x128xf32>
    %54 = vector.shape_cast %53 : vector<320x128xf32> to vector<2x10x16x128xf32>
    %55 = vector.extract_strided_slice %54 {offsets = [0, 1, 0, 0], sizes = [2, 8, 16, 128], strides = [1, 1, 1, 1]} : vector<2x10x16x128xf32> to vector<2x8x16x128xf32>
    %56 = arith.addf %50, %55 : vector<2x8x16x128xf32>
    %c8 = arith.constant 8 : index
    %c0_29 = arith.constant 0 : index
    %c0_30 = arith.constant 0 : index
    %57 = vector.load %arg2[%c8, %c0_29, %c0_30] : memref<9x8x128xf32, #tpu.memory_space<vmem>>, vector<1x8x128xf32>
    %58 = vector.shape_cast %57 : vector<1x8x128xf32> to vector<8x128xf32>
    %cst_31 = arith.constant dense<0.000000e+00> : vector<320x128xf32>
    %59 = tpu.matmul %44, %58, %cst_31 {dimension_numbers = #tpu.dot_dimension_numbers<[1], [0], [0], [1], [0, 0, 1, 1], [], []>} : vector<320x8xf32>, vector<8x128xf32>, vector<320x128xf32> -> vector<320x128xf32>
    %60 = vector.shape_cast %59 : vector<320x128xf32> to vector<2x10x16x128xf32>
    %61 = vector.extract_strided_slice %60 {offsets = [0, 2, 0, 0], sizes = [2, 8, 16, 128], strides = [1, 1, 1, 1]} : vector<2x10x16x128xf32> to vector<2x8x16x128xf32>
    %62 = arith.addf %56, %61 : vector<2x8x16x128xf32>
    %c0_32 = arith.constant 0 : index
    %c0_33 = arith.constant 0 : index
    %63 = vector.load %arg3[%c0_32, %c0_33] : memref<1x128xf32, #tpu.memory_space<vmem>>, vector<1x128xf32>
    %64 = vector.shape_cast %63 : vector<1x128xf32> to vector<1x1x1x128xf32>
    %65 = vector.broadcast %64 : vector<1x1x1x128xf32> to vector<2x8x16x128xf32>
    %66 = arith.addf %62, %65 : vector<2x8x16x128xf32>
    %c0_34 = arith.constant 0 : index
    %c0_35 = arith.constant 0 : index
    %c0_36 = arith.constant 0 : index
    %c0_37 = arith.constant 0 : index
    %67 = vector.load %arg4[%c0_34, %c0_35, %c0_36, %c0_37] : memref<2x8x16x128xf32, #tpu.memory_space<vmem>>, vector<2x8x16x128xf32>
    tpu.vector_store %arg4[%c0_34, %c0_35, %c0_36, %c0_37], %66 {strides = array<i32>} : memref<2x8x16x128xf32, #tpu.memory_space<vmem>>, vector<2x8x16x128xf32>,
    %68 = vector.shape_cast %66 : vector<2x8x16x128xf32> to vector<256x128xf32>
    %cst_38 = arith.constant dense<0.000000e+00> : vector<128xf32>
    %69 = vector.multi_reduction <add>, %68, %cst_38 [0] : vector<256x128xf32> to vector<128xf32>
    %70 = vector.shape_cast %69 : vector<128xf32> to vector<1x128xf32>
    %c0_39 = arith.constant 0 : index
    %c0_40 = arith.constant 0 : index
    %c0_41 = arith.constant 0 : index
    %71 = vector.load %arg5[%c0_39, %c0_40, %c0_41] : memref<1x2x128xf32, #tpu.memory_space<vmem>>, vector<1x1x128xf32>
    %72 = vector.shape_cast %71 : vector<1x1x128xf32> to vector<1x128xf32>
    %73 = vector.shape_cast %70 : vector<1x128xf32> to vector<1x1x128xf32>
    tpu.vector_store %arg5[%c0_39, %c0_40, %c0_41], %73 {strides = array<i32>} : memref<1x2x128xf32, #tpu.memory_space<vmem>>, vector<1x1x128xf32>,
    %74 = arith.mulf %68, %68 : vector<256x128xf32>
    %cst_42 = arith.constant dense<0.000000e+00> : vector<128xf32>
    %75 = vector.multi_reduction <add>, %74, %cst_42 [0] : vector<256x128xf32> to vector<128xf32>
    %76 = vector.shape_cast %75 : vector<128xf32> to vector<1x128xf32>
    %c0_43 = arith.constant 0 : index
    %c1_44 = arith.constant 1 : index
    %c0_45 = arith.constant 0 : index
    %77 = vector.load %arg5[%c0_43, %c1_44, %c0_45] : memref<1x2x128xf32, #tpu.memory_space<vmem>>, vector<1x1x128xf32>
    %78 = vector.shape_cast %77 : vector<1x1x128xf32> to vector<1x128xf32>
    %79 = vector.shape_cast %76 : vector<1x128xf32> to vector<1x1x128xf32>
    tpu.vector_store %arg5[%c0_43, %c1_44, %c0_45], %79 {strides = array<i32>} : memref<1x2x128xf32, #tpu.memory_space<vmem>>, vector<1x1x128xf32>,
    return
  }
  func.func @transform_0(%arg0: i32) -> (i32, i32, i32, i32, i32) {
    %c0_i32 = arith.constant 0 : i32
    %c0_i32_0 = arith.constant 0 : i32
    %c0_i32_1 = arith.constant 0 : i32
    %c0_i32_2 = arith.constant 0 : i32
    %c0_i32_3 = arith.constant 0 : i32
    return %arg0, %c0_i32, %c0_i32_0, %c0_i32_1, %c0_i32_2 : i32, i32, i32, i32, i32
  }
  func.func @transform_1(%arg0: i32) -> (i32, i32, i32) {
    %c0_i32 = arith.constant 0 : i32
    %c0_i32_0 = arith.constant 0 : i32
    %c0_i32_1 = arith.constant 0 : i32
    %c0_i32_2 = arith.constant 0 : i32
    return %c0_i32, %c0_i32_0, %c0_i32_1 : i32, i32, i32
  }
  func.func @transform_2(%arg0: i32) -> (i32, i32) {
    %c0_i32 = arith.constant 0 : i32
    %c0_i32_0 = arith.constant 0 : i32
    %c0_i32_1 = arith.constant 0 : i32
    return %c0_i32, %c0_i32_0 : i32, i32
  }
  func.func @transform_3(%arg0: i32) -> (i32, i32, i32, i32) {
    %c0_i32 = arith.constant 0 : i32
    %c0_i32_0 = arith.constant 0 : i32
    %c0_i32_1 = arith.constant 0 : i32
    %c0_i32_2 = arith.constant 0 : i32
    return %c0_i32, %arg0, %c0_i32_0, %c0_i32_1 : i32, i32, i32, i32
  }
  func.func @transform_4(%arg0: i32) -> (i32, i32, i32) {
    %c0_i32 = arith.constant 0 : i32
    %c0_i32_0 = arith.constant 0 : i32
    %c0_i32_1 = arith.constant 0 : i32
    return %arg0, %c0_i32, %c0_i32_0 : i32, i32, i32
  }
}

module attributes {stable_mosaic.version = 11 : i64} {
  func.func @bn_relu_kernel(%arg0: i32, %arg1: memref<2x8x16x128xf32, #tpu.memory_space<vmem>>, %arg2: memref<1x128xf32, #tpu.memory_space<vmem>>, %arg3: memref<1x128xf32, #tpu.memory_space<vmem>>, %arg4: memref<2x8x16x128xf32, #tpu.memory_space<vmem>>) attributes {dimension_semantics = [#tpu.dimension_semantics<parallel>], iteration_bounds = array<i64: 2>, scalar_prefetch = 0 : i64, scratch_operands = 0 : i64, tpu.core_type = #tpu.core_type<tc>, window_params = [{transform_indices = @transform_0, window_bounds = array<i64: 2, 8, 16, 128>}, {pipeline_mode = #tpu.pipeline_mode<synchronous>, transform_indices = @transform_1, window_bounds = array<i64: 1, 128>}, {pipeline_mode = #tpu.pipeline_mode<synchronous>, transform_indices = @transform_2, window_bounds = array<i64: 1, 128>}, {transform_indices = @transform_3, window_bounds = array<i64: 2, 8, 16, 128>}]} {
    %c0 = arith.constant 0 : index
    %c0_0 = arith.constant 0 : index
    %0 = vector.load %arg2[%c0, %c0_0] : memref<1x128xf32, #tpu.memory_space<vmem>>, vector<1x128xf32>
    %1 = vector.shape_cast %0 : vector<1x128xf32> to vector<1x1x1x128xf32>
    %c0_1 = arith.constant 0 : index
    %c0_2 = arith.constant 0 : index
    %2 = vector.load %arg3[%c0_1, %c0_2] : memref<1x128xf32, #tpu.memory_space<vmem>>, vector<1x128xf32>
    %3 = vector.shape_cast %2 : vector<1x128xf32> to vector<1x1x1x128xf32>
    %c0_3 = arith.constant 0 : index
    %c0_4 = arith.constant 0 : index
    %c0_5 = arith.constant 0 : index
    %c0_6 = arith.constant 0 : index
    %4 = vector.load %arg1[%c0_3, %c0_4, %c0_5, %c0_6] : memref<2x8x16x128xf32, #tpu.memory_space<vmem>>, vector<2x8x16x128xf32>
    %5 = vector.broadcast %1 : vector<1x1x1x128xf32> to vector<2x8x16x128xf32>
    %6 = arith.mulf %4, %5 : vector<2x8x16x128xf32>
    %7 = vector.broadcast %3 : vector<1x1x1x128xf32> to vector<2x8x16x128xf32>
    %8 = arith.addf %6, %7 : vector<2x8x16x128xf32>
    %cst = arith.constant 0.000000e+00 : f32
    %9 = vector.broadcast %cst : f32 to vector<2x8x16x128xf32>
    %10 = arith.maximumf %8, %9 : vector<2x8x16x128xf32>
    %c0_7 = arith.constant 0 : index
    %c0_8 = arith.constant 0 : index
    %c0_9 = arith.constant 0 : index
    %c0_10 = arith.constant 0 : index
    %11 = vector.load %arg4[%c0_7, %c0_8, %c0_9, %c0_10] : memref<2x8x16x128xf32, #tpu.memory_space<vmem>>, vector<2x8x16x128xf32>
    tpu.vector_store %arg4[%c0_7, %c0_8, %c0_9, %c0_10], %10 {strides = array<i32>} : memref<2x8x16x128xf32, #tpu.memory_space<vmem>>, vector<2x8x16x128xf32>,
    return
  }
  func.func @transform_0(%arg0: i32) -> (i32, i32, i32, i32) {
    %c0_i32 = arith.constant 0 : i32
    %c0_i32_0 = arith.constant 0 : i32
    %c0_i32_1 = arith.constant 0 : i32
    %c0_i32_2 = arith.constant 0 : i32
    return %c0_i32, %arg0, %c0_i32_0, %c0_i32_1 : i32, i32, i32, i32
  }
  func.func @transform_1(%arg0: i32) -> (i32, i32) {
    %c0_i32 = arith.constant 0 : i32
    %c0_i32_0 = arith.constant 0 : i32
    %c0_i32_1 = arith.constant 0 : i32
    return %c0_i32, %c0_i32_0 : i32, i32
  }
  func.func @transform_2(%arg0: i32) -> (i32, i32) {
    %c0_i32 = arith.constant 0 : i32
    %c0_i32_0 = arith.constant 0 : i32
    %c0_i32_1 = arith.constant 0 : i32
    return %c0_i32, %c0_i32_0 : i32, i32
  }
  func.func @transform_3(%arg0: i32) -> (i32, i32, i32, i32) {
    %c0_i32 = arith.constant 0 : i32
    %c0_i32_0 = arith.constant 0 : i32
    %c0_i32_1 = arith.constant 0 : i32
    %c0_i32_2 = arith.constant 0 : i32
    return %c0_i32, %arg0, %c0_i32_0, %c0_i32_1 : i32, i32, i32, i32
  }
}

</mosaic_0001>

<bundles_post_ra>
// kernel: double_conv_forward.5
= control target key start
LH: loop header
LB: loop body
LE: loop exit
PB: predicated region body
PF: predicated region fallthrough
CT: control target
= control target key end

     0   :  { %8 = vsyncpa [#allocation3], 0  ;;  %s1142_s0 = inlined_call_operand.hbm [shape: f32[2,16,16,128], index: 0, kind: input, shape index: {}]   ;;  %s1143_s1 = inlined_call_operand.hbm [shape: f32[1,128], index: 1, kind: input, shape index: {}]   ;;  %s1144_s2 = inlined_call_operand.hbm [shape: f32[1,128], index: 2, kind: input, shape index: {}]   ;;  %s1145_s3 = inlined_call_operand.hbm [shape: f32[2,16,16,128], index: 3, kind: output, shape index: {}]  }
   0x1   :  { %10 = vsyncpa [#allocation3 + $0x1], 0 }
   0x2   :  { %11 = vsyncpa [#allocation6], 0 }
   0x3   :  { %12 = vsyncpa [#allocation4], 0 }
   0x4   :  { %14 = vsyncpa [#allocation4 + $0x1], 0  ;;  %s803_s12 = smov 0   ;;  %s805_s13 = smov 0  }
   0x5   :  { %s807_s14 = smov 0   ;;  %s809_s15 = smov 0  }
   0x6 LB: > { %s824_s16 = sadd.s32 4294967295, %s766_s15   ;;  %s552_s17 = sadd.s32 4294967294, %s766_s15   ;;  %s766_s15 = sphi %s809_s15, %s1167_s15   ;;  %s762_s14 = sphi %s807_s14, %s1166_s14   ;;  %s758_s13 = sphi %s805_s13, %s1165_s13   ;;  %s754_s12 = sphi %s803_s12, %s1164_s12  }
   0x7   : > { %s828_s18 = sadd.s32 1, %s766_s15   ;;  %s27_s19 = sadd.s32 1, %s762_s14 }
   0x8   : > { %s24_s20 = ssub.s32 %s766_s15, %s828_s18  ;;  %p34_p0 = scmp.ne.s32.totalorder %s762_s14, %s758_s13 }
   0x9   : > { %p25_p1 = scmp.eq.s32.totalorder %s24_s20, 0  ;;  %p35_p2 = scmp.eq.s32.totalorder %s766_s15, 0 }
   0xa   : > { %p40_p3 = scmp.ne.s32.totalorder %s758_s13, %s754_s12  ;;  %p1146_p4 = scmp.eq.s32.totalorder %s824_s16, 0 }
   0xb   : > { %s840_s21 = scalar_select %p25_p1, %s762_s14, %s27_s19  }
   0xc   : > { %p842_p5 = por %p35_p2, %p34_p0  ;;  %p848_p6 = por %p1146_p4, %p40_p3 }
   0xd   : > { %p106_p7 = scmp.eq.s32.totalorder %s824_s16, 1  ;;  %p112_p8 = scmp.eq.s32.totalorder %s552_s17, 1 }
   0xe   : > { %s1151_s22 = scalar_select %p842_p5, 1, 0 }
   0xf   : > { %s1152_s23 = scalar_select %p848_p6, 1, 0 }
  0x10   : > { %p553_p9 = scmp.ge.s32.totalorder %s766_s15, 1  ;;  %p119_p10 = scmp.lt.s32.totalorder %s766_s15, 3 }
  0x11   : > { %p855_p11 = por %p106_p7, %p34_p0  ;;  %p859_p12 = por %p112_p8, %p40_p3 }
  0x12   : > { %p863_p13 = pnand %p553_p9, %p119_p10  ;;  %s768_s27 = smov [#allocation5]  }
  0x13   : > { %s1153_s24 = scalar_select %p855_p11, 1, 0 }
  0x14   : > { %s1154_s25 = scalar_select %p859_p12, 1, 0 }
  0x15   : > { %s1155_s26 = scalar_select %p863_p13, 1, 0 }
  0x16   : > { %p605_p1 = pneg %p863_p13  ;;  %s132_s28 = sshll.u32 %s768_s27, 4  ;;  %s133_s28 = int_to_ptr.vmem [resolvable:$true] %s132_s28 }
  0x17   : > { %s769_s29 = smov [#allocation7]   ;;  %s668_s7 = scalar_lea.hbm %s1143_s1, 16 }
  0x18   : > { %s143_s30 = sshll.u32 %s769_s29, 4  ;;  %p871_p0 = pnand %p605_p1, %p1146_p4  ;;  %s875_s30 = int_to_ptr.vmem [resolvable:$true] %s143_s30 }
  0x19   : > { %p669_p2 = scmp.ne.s32.totalorder %s1143_s1, %s668_s7  ;;  %p675_p9 = scmp.lt.u32.totalorder %s668_s7, %s1143_s1 }
  0x1a   : > { %p670_p3 = pneg %p871_p0 }
  0x1c   : > { %p671_p7 = pnand %p670_p3, %p669_p2 }
  0x1e   : > { %p672_p8 = pneg %p671_p7 }
  0x20   : > { %p677_p10 = pnand %p675_p9, %p672_p8 }
  0x22   : > { %680 = shalt.err (!%p677_p10)
}
  0x23   : > { %s681_s17 = scalar_lea.vmem %s133_s28, 16  ;;  %s688_s19 = scalar_lea.vmem %s133_s28, 32 }
  0x24   : > { %p682_p1 = scmp.ne.s32.totalorder %s133_s28, %s681_s17  ;;  %p689_p11 = scmp.lt.s32.totalorder %s133_s28, %s133_s28 }
  0x25   : > { %p690_p6 = scmp.lt.s32.totalorder %s688_s19, %s681_s17 }
  0x26   : > { %p684_p4 = pnand %p682_p1, %p670_p3 }
  0x27   : > { %p691_p13 = por %p690_p6, %p689_p11 }
  0x28   : > { %p685_p12 = pneg %p684_p4 }
  0x2a   : > { %p692_p5 = pnand %p691_p13, %p685_p12 }
  0x2c   : > { %695 = shalt.err (!%p692_p5)
}
  0x2d   : > { %608 = dma.hbm_to_vmem [thread:$0]  (!%p871_p0), %s1143_s1, 16, %s133_s28, [#allocation6]  }
  0x2e   : > { %s696_s6 = scalar_lea.hbm %s1144_s2, 16 }
  0x2f   : > { %p697_p4 = scmp.ne.s32.totalorder %s1144_s2, %s696_s6  ;;  %p703_p5 = scmp.lt.u32.totalorder %s696_s6, %s1144_s2 }
  0x31   : > { %p699_p6 = pnand %p697_p4, %p670_p3 }
  0x33   : > { %p700_p11 = pneg %p699_p6 }
  0x35   : > { %p705_p12 = pnand %p703_p5, %p700_p11 }
  0x37   : > { %708 = shalt.err (!%p705_p12)
}
  0x38   : > { %s709_s28 = scalar_lea.vmem %s875_s30, 16  ;;  %s716_s11 = scalar_lea.vmem %s875_s30, 32 }
  0x39   : > { %p710_p13 = scmp.ne.s32.totalorder %s875_s30, %s709_s28  ;;  %p717_p8 = scmp.lt.s32.totalorder %s875_s30, %s875_s30 }
  0x3a   : > { %p718_p9 = scmp.lt.s32.totalorder %s716_s11, %s709_s28 }
  0x3b   : > { %p712_p2 = pnand %p710_p13, %p670_p3 }
  0x3c   : > { %p719_p10 = por %p718_p9, %p717_p8 }
  0x3d   : > { %p713_p7 = pneg %p712_p2 }
  0x3f   : > { %p720_p1 = pnand %p719_p10, %p713_p7 }
  0x41   : > { %723 = shalt.err (!%p720_p1)
}
  0x42   : > { %611 = dma.hbm_to_vmem [thread:$0]  (!%p871_p0), %s1144_s2, 16, %s875_s30, [#allocation6]  }
  0x43   : > { %p556_p4 = scmp.ge.s32.totalorder %s766_s15, 2 }
  0x45   : > { %150 = sbr.rel (%p556_p4) target bundleno = 91 (0x5b), region = 24 }
  0x4c   : > { %s154_s20 = sand.u32 1, %s762_s14   ;;  %s577_s27 = sshll.u32 %s766_s15, 11 }
  0x4d   : > { %s557_s4 = sshll.u32 %s154_s20, 8  ;;  %s165_s30 = scalar_lea.hbm %s1142_s0, %s577_s27 }
  0x4e   : > { %p1157_p0 = scmp.ne.s32.totalorder %s1151_s22, 0  ;;  %s158_s7 = scalar_lea.vmem [#allocation2], %s557_s4 }
  0x4f   : > { %s178_s8 = sshll.u32 %s158_s7, 4  ;;  %s770_s10 = smov 4096   ;;  %s179_s8 = int_to_ptr.vmem [resolvable:$true] %s178_s8 }
  0x50   : > { %s584_s6 = scalar_select %p1157_p0, [#allocation0], [#allocation13] }
  0x51   : > { %585 = sst [smem:[#allocation10]] (%p1157_p0), %s770_s10  ;;  %s771_s28 = smov 2048  }
  0x52   : > { %s170_s9 = sld [smem:[%s584_s6]]   ;;  %s772_s11 = smov 16  }
  0x53   : > { %586 = sst [smem:[#allocation10 + $0x1]] (%p1157_p0), %s771_s28  ;;  %s773_s17 = smov 128  }
  0x54   : > { %587 = sst [smem:[#allocation10 + $0x2]] (%p1157_p0), %s772_s11  ;;  %s774_s27 = smov 8  }
  0x55   : > { %588 = sst [smem:[#allocation10 + $0x3]] (%p1157_p0), %s773_s17  ;;  %s155_s29 = scalar_lea.sflag [#allocation3], %s154_s20 }
  0x56   : > { %589 = sst [smem:[#allocation10 + $0x4]] (%p1157_p0), %s773_s17  ;;  %s775_s5 = smov [#allocation9]  }
  0x57   : > { %590 = sst [smem:[#allocation10 + $0x5]] (%p1157_p0), %s774_s27 }
  0x58   : > { %s561_s19 = sshll.u32 %s170_s9, 26 }
  0x59   : > { %s562_s4 = sadd.s32 134217728, %s561_s19 }
  0x5a   : > { %591 = dma.general (%p1157_p0), %s165_s30, 4096, %s179_s8, %s155_s29, %s775_s5, [#allocation10], %s562_s4, 0  }
  0x5b PF: > { %p1158_p3 = scmp.ne.s32.totalorder %s1155_s26, 0 }
  0x5c   : > { %s952_s6 = sand.u32 (!%p1158_p3), 1, %s758_s13   ;;  %p1159_p6 = scmp.ne.s32.totalorder (!%p1158_p3), %s1152_s23, 0 }
  0x5d   : > { %203 = sbr.rel (%p1158_p3) target bundleno = 146 (0x92), region = 32  ;;  %s564_s7 = sshll.u32 (!%p1158_p3), %s952_s6, 8 }
  0x5e   : > { %s206_s9 = scalar_lea.sflag (!%p1158_p3), [#allocation3], %s952_s6  ;;  %s958_s10 = scalar_lea.vmem (!%p1158_p3), [#allocation2], %s564_s7 }
  0x64   : > { %741 = dma.done.wait (%p1159_p6), %s206_s9, 4096  }
  0x65   : > { %743 = vsyncadd (%p1159_p6), %s206_s9, 4294963200  ;;  %p1160_p11 = scmp.eq.s32.totalorder %s824_s16, 0 }
  0x67   : > { %745 = dma.done.wait (%p1160_p11), [#allocation6], 32   ;;  %p1161_p5 = pmov %p1160_p11 }
  0x68   : > { %v968_v0 = vld [vmem:[#allocation5] ss:$0 sm:$0xff]  ;;  %v970_v1 = vld [vmem:[#allocation7] ss:$0 sm:$0xff]  ;;  %v245_v4 = vld [vmem:[%s958_s10 + $0x8] sm:$0xff]  ;;  %s1005_s22 = scalar_lea.vmem [#allocation8], %s564_s7 }
  0x69   : > { %747 = vsyncadd (%p1161_p5), [#allocation6], 4294967264  ;;  %v244_v2 = vld [vmem:[%s958_s10] sm:$0xff]  ;;  %v246_v5 = vld [vmem:[%s958_s10 + $0x10] sm:$0xff]  ;;  %v283_v7 = vmul.f32 %v968_v0, %v245_v4  ;;  %s417_s23 = scalar_lea.sflag [#allocation4], %s952_s6 }
  0x6a   : > { %v282_v3 = vmul.f32 %v968_v0, %v244_v2  ;;  %v247_v6 = vld [vmem:[%s958_s10 + $0x18] sm:$0xff]  ;;  %v284_v8 = vmul.f32 %v968_v0, %v246_v5  ;;  %v248_v10 = vld [vmem:[%s958_s10 + $0x20] sm:$0xff]  ;;  %v249_v11 = vld [vmem:[%s958_s10 + $0x28] sm:$0xff] }
  0x6b   : > { %v285_v9 = vmul.f32 %v968_v0, %v247_v6  ;;  %v250_v12 = vld [vmem:[%s958_s10 + $0x30] sm:$0xff]  ;;  %v286_v14 = vmul.f32 %v968_v0, %v248_v10  ;;  %v287_v15 = vmul.f32 %v968_v0, %v249_v11  ;;  %v251_v17 = vld [vmem:[%s958_s10 + $0x38] sm:$0xff]  ;;  %v321_v18 = vadd.f32 %v970_v1, %v283_v7  ;;  %v252_v22 = vld [vmem:[%s958_s10 + $0x40] sm:$0xff] }
  0x6c   : > { %v320_v13 = vadd.f32 %v970_v1, %v282_v3  ;;  %v288_v16 = vmul.f32 %v968_v0, %v250_v12  ;;  %v322_v19 = vadd.f32 %v970_v1, %v284_v8  ;;  %v289_v21 = vmul.f32 %v968_v0, %v251_v17  ;;  %v253_v27 = vld [vmem:[%s958_s10 + $0x48] sm:$0xff]  ;;  %v254_v28 = vld [vmem:[%s958_s10 + $0x50] sm:$0xff]  ;;  %v255_v29 = vld [vmem:[%s958_s10 + $0x58] sm:$0xff] }
  0x6d   : > { %v323_v20 = vadd.f32 %v970_v1, %v285_v9  ;;  %v324_v24 = vadd.f32 %v970_v1, %v286_v14  ;;  %v325_v25 = vadd.f32 %v970_v1, %v287_v15  ;;  %v353_v30 = vmax.f32 %v321_v18, 0.0  ;;  %v256_v34 = vld [vmem:[%s958_s10 + $0x60] sm:$0xff]  ;;  %v257_v35 = vld [vmem:[%s958_s10 + $0x68] sm:$0xff]  ;;  %v258_v36 = vld [vmem:[%s958_s10 + $0x70] sm:$0xff] }
  0x6e   : > { %v352_v23 = vmax.f32 %v320_v13, 0.0  ;;  %v326_v26 = vadd.f32 %v970_v1, %v288_v16  ;;  %v354_v31 = vmax.f32 %v322_v19, 0.0  ;;  %v327_v33 = vadd.f32 %v970_v1, %v289_v21  ;;  %v259_v41 = vld [vmem:[%s958_s10 + $0x78] sm:$0xff]  ;;  %v260_v54 = vld [vmem:[%s958_s10 + $0x80] sm:$0xff]  ;;  %v261_v59 = vld [vmem:[%s958_s10 + $0x88] sm:$0xff] }
  0x6f   : > { %v355_v32 = vmax.f32 %v323_v20, 0.0  ;;  %v356_v37 = vmax.f32 %v324_v24, 0.0  ;;  %v357_v38 = vmax.f32 %v325_v25, 0.0  ;;  %v290_v40 = vmul.f32 %v968_v0, %v252_v22  ;;  %385 = vst [vmem:[%s1005_s22 + $0x8] sm:$0xff] %v353_v30  ;;  %v262_v60 = vld [vmem:[%s958_s10 + $0x90] sm:$0xff]  ;;  %v263_v61 = vld [vmem:[%s958_s10 + $0x98] sm:$0xff] }
  0x70   : > { %384 = vst [vmem:[%s1005_s22] sm:$0xff] %v352_v23  ;;  %v358_v39 = vmax.f32 %v326_v26, 0.0  ;;  %386 = vst [vmem:[%s1005_s22 + $0x10] sm:$0xff] %v354_v31  ;;  %v359_v42 = vmax.f32 %v327_v33, 0.0  ;;  %v291_v43 = vmul.f32 %v968_v0, %v253_v27  ;;  %v292_v44 = vmul.f32 %v968_v0, %v254_v28  ;;  %v264_v4 = vld [vmem:[%s958_s10 + $0xa0] sm:$0xff]  ;;  %v265_v5 = vld [vmem:[%s958_s10 + $0xa8] sm:$0xff] }
  0x71   : > { %387 = vst [vmem:[%s1005_s22 + $0x18] sm:$0xff] %v355_v32  ;;  %v293_v45 = vmul.f32 %v968_v0, %v255_v29  ;;  %388 = vst [vmem:[%s1005_s22 + $0x20] sm:$0xff] %v356_v37  ;;  %v328_v46 = vadd.f32 %v970_v1, %v290_v40  ;;  %v294_v47 = vmul.f32 %v968_v0, %v256_v34  ;;  %v266_v6 = vld [vmem:[%s958_s10 + $0xb0] sm:$0xff]  ;;  %v267_v11 = vld [vmem:[%s958_s10 + $0xb8] sm:$0xff] }
  0x72   : > { %389 = vst [vmem:[%s1005_s22 + $0x28] sm:$0xff] %v357_v38  ;;  %390 = vst [vmem:[%s1005_s22 + $0x30] sm:$0xff] %v358_v39  ;;  %v295_v48 = vmul.f32 %v968_v0, %v257_v35  ;;  %v296_v49 = vmul.f32 %v968_v0, %v258_v36  ;;  %v329_v50 = vadd.f32 %v970_v1, %v291_v43  ;;  %v268_v24 = vld [vmem:[%s958_s10 + $0xc0] sm:$0xff]  ;;  %v269_v29 = vld [vmem:[%s958_s10 + $0xc8] sm:$0xff] }
  0x73   : > { %391 = vst [vmem:[%s1005_s22 + $0x38] sm:$0xff] %v359_v42  ;;  %v330_v51 = vadd.f32 %v970_v1, %v292_v44  ;;  %v331_v52 = vadd.f32 %v970_v1, %v293_v45  ;;  %v297_v53 = vmul.f32 %v968_v0, %v259_v41  ;;  %v360_v55 = vmax.f32 %v328_v46, 0.0  ;;  %v270_v30 = vld [vmem:[%s958_s10 + $0xd0] sm:$0xff]  ;;  %v271_v31 = vld [vmem:[%s958_s10 + $0xd8] sm:$0xff]  ;;  %v272_v36 = vld [vmem:[%s958_s10 + $0xe0] sm:$0xff] }
  0x74   : > { %v332_v56 = vadd.f32 %v970_v1, %v294_v47  ;;  %v333_v57 = vadd.f32 %v970_v1, %v295_v48  ;;  %v334_v58 = vadd.f32 %v970_v1, %v296_v49  ;;  %v361_v62 = vmax.f32 %v329_v50, 0.0  ;;  %v273_v37 = vld [vmem:[%s958_s10 + $0xe8] sm:$0xff]  ;;  %v274_v38 = vld [vmem:[%s958_s10 + $0xf0] sm:$0xff]  ;;  %v275_v43 = vld [vmem:[%s958_s10 + $0xf8] sm:$0xff] }
  0x75   : > { %v362_v63 = vmax.f32 %v330_v51, 0.0  ;;  %v363_v2 = vmax.f32 %v331_v52, 0.0  ;;  %v335_v3 = vadd.f32 %v970_v1, %v297_v53  ;;  %392 = vst [vmem:[%s1005_s22 + $0x40] sm:$0xff] %v360_v55  ;;  %v298_v10 = vmul.f32 %v968_v0, %v260_v54 }
  0x76   : > { %v364_v7 = vmax.f32 %v332_v56, 0.0  ;;  %v365_v8 = vmax.f32 %v333_v57, 0.0  ;;  %v366_v9 = vmax.f32 %v334_v58, 0.0  ;;  %393 = vst [vmem:[%s1005_s22 + $0x48] sm:$0xff] %v361_v62  ;;  %v299_v13 = vmul.f32 %v968_v0, %v261_v59 }
  0x77   : > { %394 = vst [vmem:[%s1005_s22 + $0x50] sm:$0xff] %v362_v63  ;;  %395 = vst [vmem:[%s1005_s22 + $0x58] sm:$0xff] %v363_v2  ;;  %v367_v12 = vmax.f32 %v335_v3, 0.0  ;;  %v300_v14 = vmul.f32 %v968_v0, %v262_v60  ;;  %v301_v15 = vmul.f32 %v968_v0, %v263_v61  ;;  %v336_v16 = vadd.f32 %v970_v1, %v298_v10 }
  0x78   : > { %396 = vst [vmem:[%s1005_s22 + $0x60] sm:$0xff] %v364_v7  ;;  %397 = vst [vmem:[%s1005_s22 + $0x68] sm:$0xff] %v365_v8  ;;  %v302_v17 = vmul.f32 %v968_v0, %v264_v4  ;;  %v303_v18 = vmul.f32 %v968_v0, %v265_v5  ;;  %v304_v19 = vmul.f32 %v968_v0, %v266_v6 }
  0x79   : > { %398 = vst [vmem:[%s1005_s22 + $0x70] sm:$0xff] %v366_v9  ;;  %399 = vst [vmem:[%s1005_s22 + $0x78] sm:$0xff] %v367_v12  ;;  %v337_v20 = vadd.f32 %v970_v1, %v299_v13  ;;  %v338_v21 = vadd.f32 %v970_v1, %v300_v14  ;;  %v339_v22 = vadd.f32 %v970_v1, %v301_v15  ;;  %v368_v25 = vmax.f32 %v336_v16, 0.0 }
  0x7a   : > { %v305_v23 = vmul.f32 %v968_v0, %v267_v11  ;;  %v340_v26 = vadd.f32 %v970_v1, %v302_v17  ;;  %v341_v27 = vadd.f32 %v970_v1, %v303_v18  ;;  %v342_v28 = vadd.f32 %v970_v1, %v304_v19 }
  0x7b   : > { %v369_v32 = vmax.f32 %v337_v20, 0.0  ;;  %v370_v33 = vmax.f32 %v338_v21, 0.0  ;;  %v371_v34 = vmax.f32 %v339_v22, 0.0  ;;  %400 = vst [vmem:[%s1005_s22 + $0x80] sm:$0xff] %v368_v25  ;;  %v306_v42 = vmul.f32 %v968_v0, %v268_v24 }
  0x7c   : > { %v343_v35 = vadd.f32 %v970_v1, %v305_v23  ;;  %v372_v39 = vmax.f32 %v340_v26, 0.0  ;;  %v373_v40 = vmax.f32 %v341_v27, 0.0  ;;  %v374_v41 = vmax.f32 %v342_v28, 0.0 }
  0x7d   : > { %401 = vst [vmem:[%s1005_s22 + $0x88] sm:$0xff] %v369_v32  ;;  %402 = vst [vmem:[%s1005_s22 + $0x90] sm:$0xff] %v370_v33  ;;  %v307_v45 = vmul.f32 %v968_v0, %v269_v29  ;;  %v308_v46 = vmul.f32 %v968_v0, %v270_v30  ;;  %v309_v47 = vmul.f32 %v968_v0, %v271_v31 }
  0x7e   : > { %403 = vst [vmem:[%s1005_s22 + $0x98] sm:$0xff] %v371_v34  ;;  %v375_v44 = vmax.f32 %v343_v35, 0.0  ;;  %404 = vst [vmem:[%s1005_s22 + $0xa0] sm:$0xff] %v372_v39  ;;  %v344_v48 = vadd.f32 %v970_v1, %v306_v42  ;;  %v310_v49 = vmul.f32 %v968_v0, %v272_v36  ;;  %v311_v50 = vmul.f32 %v968_v0, %v273_v37 }
  0x7f   : > { %405 = vst [vmem:[%s1005_s22 + $0xa8] sm:$0xff] %v373_v40  ;;  %406 = vst [vmem:[%s1005_s22 + $0xb0] sm:$0xff] %v374_v41  ;;  %v312_v51 = vmul.f32 %v968_v0, %v274_v38  ;;  %v345_v52 = vadd.f32 %v970_v1, %v307_v45  ;;  %v346_v53 = vadd.f32 %v970_v1, %v308_v46 }
  0x80   : > { %407 = vst [vmem:[%s1005_s22 + $0xb8] sm:$0xff] %v375_v44  ;;  %v347_v54 = vadd.f32 %v970_v1, %v309_v47  ;;  %v313_v55 = vmul.f32 %v968_v0, %v275_v43  ;;  %v376_v56 = vmax.f32 %v344_v48, 0.0  ;;  %v348_v57 = vadd.f32 %v970_v1, %v310_v49 }
  0x81   : > { %v349_v58 = vadd.f32 %v970_v1, %v311_v50  ;;  %v350_v59 = vadd.f32 %v970_v1, %v312_v51  ;;  %v377_v60 = vmax.f32 %v345_v52, 0.0  ;;  %v378_v61 = vmax.f32 %v346_v53, 0.0 }
  0x82   : > { %v379_v62 = vmax.f32 %v347_v54, 0.0  ;;  %v351_v63 = vadd.f32 %v970_v1, %v313_v55  ;;  %408 = vst [vmem:[%s1005_s22 + $0xc0] sm:$0xff] %v376_v56  ;;  %v380_v2 = vmax.f32 %v348_v57, 0.0 }
  0x83   : > { %v381_v0 = vmax.f32 %v349_v58, 0.0  ;;  %v382_v3 = vmax.f32 %v350_v59, 0.0  ;;  %409 = vst [vmem:[%s1005_s22 + $0xc8] sm:$0xff] %v377_v60  ;;  %410 = vst [vmem:[%s1005_s22 + $0xd0] sm:$0xff] %v378_v61 }
  0x84   : > { %411 = vst [vmem:[%s1005_s22 + $0xd8] sm:$0xff] %v379_v62  ;;  %v383_v4 = vmax.f32 %v351_v63, 0.0  ;;  %412 = vst [vmem:[%s1005_s22 + $0xe0] sm:$0xff] %v380_v2 }
  0x85   : > { %413 = vst [vmem:[%s1005_s22 + $0xe8] sm:$0xff] %v381_v0  ;;  %414 = vst [vmem:[%s1005_s22 + $0xf0] sm:$0xff] %v382_v3 }
  0x86   : > { %415 = vst [vmem:[%s1005_s22 + $0xf8] sm:$0xff] %v383_v4 }
  0x87   : > { %s579_s26 = sshll.u32 %s824_s16, 11  ;;  %s447_s20 = sshll.u32 %s1005_s22, 4  ;;  %s448_s20 = int_to_ptr.vmem [resolvable:$true] %s447_s20 }
  0x88   : > { %s430_s28 = scalar_lea.hbm %s1145_s3, %s579_s26  ;;  %s776_s11 = smov 2048  }
  0x89   : > { %p1162_p12 = scmp.ne.s32.totalorder %s1153_s24, 0  ;;  %s777_s17 = smov 4096  }
  0x8a   : > { %s778_s19 = smov 16   ;;  %s779_s27 = smov 128  }
  0x8b   : > { %597 = sst [smem:[#allocation12]] (%p1162_p12), %s776_s11  ;;  %s780_s16 = smov 8  }
  0x8c   : > { %598 = sst [smem:[#allocation12 + $0x1]] (%p1162_p12), %s777_s17  ;;  %s781_s4 = smov [#allocation11]  }
  0x8d   : > { %599 = sst [smem:[#allocation12 + $0x2]] (%p1162_p12), %s778_s19  ;;  %s782_s29 = smov 0  }
  0x8e   : > { %600 = sst [smem:[#allocation12 + $0x3]] (%p1162_p12), %s779_s27 }
  0x8f   : > { %601 = sst [smem:[#allocation12 + $0x4]] (%p1162_p12), %s779_s27 }
  0x90   : > { %602 = sst [smem:[#allocation12 + $0x5]] (%p1162_p12), %s780_s16 }
  0x91   : > { %603 = dma.general (%p1162_p12), %s448_s20, 4096, %s430_s28, %s417_s23, %s781_s4, [#allocation12], %s782_s29, 0  }
  0x92 PF: > { %s475_s5 = sand.u32 1, %s754_s12   ;;  %p1163_p13 = scmp.ne.s32.totalorder %s1154_s25, 0 }
  0x93   : > { %s476_s6 = scalar_lea.sflag [#allocation4], %s475_s5 }
  0x94   : > { %p613_p2 = pnand %p556_p4, %p1163_p13 }
  0x96   : > { %749 = dma.done.wait (!%p613_p2), %s476_s6, 4096  }
  0x97   : > { %751 = vsyncadd (!%p613_p2), %s476_s6, 4294963200  ;;  %p17_p7 = scmp.ge.s32.totalorder %s828_s18, 4   ;;  %s1164_s12 = smov %s758_s13 }
  0x98   : > { %s1165_s13 = smov %s762_s14  ;;  %s1166_s14 = smov %s840_s21 }
  0x99   : > { %s1167_s15 = smov %s828_s18  ;;  %19 = sbr.rel (!%p17_p7) target bundleno = 6 (0x6), region = 95 }
  0xa0   :  { %481 = vsyncpa [#allocation3], 1 }
  0xa1   :  { %483 = vsyncpa [#allocation3 + $0x1], 1 }
  0xa2   :  { %484 = vsyncpa [#allocation6], 1 }
  0xa3   :  { %485 = vsyncpa [#allocation4], 1 }
  0xa4   :  { %487 = vsyncpa [#allocation4 + $0x1], 1 }

// kernel: double_conv_forward.4
= control target key start
LH: loop header
LB: loop body
LE: loop exit
PB: predicated region body
PF: predicated region fallthrough
CT: control target
= control target key end

     0   :  { %10 = vsyncpa [#allocation3], 0  ;;  %s7304_s0 = inlined_call_operand.hbm [shape: f32[2,2,10,18,8], index: 0, kind: input, shape index: {}]   ;;  %s7305_s1 = inlined_call_operand.hbm [shape: f32[9,8,128], index: 1, kind: input, shape index: {}]   ;;  %s7306_s2 = inlined_call_operand.hbm [shape: f32[1,128], index: 2, kind: input, shape index: {}]   ;;  %s7307_s3 = inlined_call_operand.hbm [shape: f32[2,16,16,128], index: 3, kind: output, shape index: {0}]   ;;  %s7308_s4 = inlined_call_operand.hbm [shape: f32[2,2,128], index: 4, kind: output, shape index: {1}]  }
   0x1   :  { %12 = vsyncpa [#allocation3 + $0x1], 0 }
   0x2   :  { %13 = vsyncpa [#allocation6], 0 }
   0x3   :  { %14 = vsyncpa [#allocation4], 0 }
   0x4   :  { %16 = vsyncpa [#allocation4 + $0x1], 0 }
   0x5   :  { %17 = vsyncpa [#allocation10], 0 }
   0x6   :  { %19 = vsyncpa [#allocation10 + $0x1], 0  ;;  %s5659_s15 = smov 0   ;;  %s5661_s16 = smov 0  }
   0x7   :  { %s5663_s17 = smov 0   ;;  %s5665_s18 = smov 0  }
   0x8 LB: > { %s5680_s19 = sadd.s32 4294967295, %s5619_s18   ;;  %s3801_s20 = sadd.s32 4294967294, %s5619_s18   ;;  %s5619_s18 = sphi %s5665_s18, %s7555_s18   ;;  %s5615_s17 = sphi %s5663_s17, %s7554_s17   ;;  %s5611_s16 = sphi %s5661_s16, %s7553_s16   ;;  %s5607_s15 = sphi %s5659_s15, %s7552_s15  }
   0x9   : > { %p45_p0 = scmp.ne.s32.totalorder %s5611_s16, %s5607_s15  ;;  %p7309_p1 = scmp.eq.s32.totalorder %s5680_s19, 0 }
   0xa   : > { %p117_p3 = scmp.eq.s32.totalorder %s3801_s20, 1  ;;  %p3802_p5 = scmp.ge.s32.totalorder %s5619_s18, 1 }
   0xb   : > { %p5689_p4 = por %p7309_p1, %p45_p0  ;;  %p150_p7 = scmp.lt.s32.totalorder %s5619_s18, 3 }
   0xc   : > { %p5694_p6 = por %p117_p3, %p45_p0  ;;  %s5621_s24 = smov [#allocation5]  }
   0xd   : > { %s7408_s21 = scalar_select %p5689_p4, 1, 0 }
   0xe   : > { %s7409_s22 = scalar_select %p5694_p6, 1, 0 }
   0xf   : > { %p5699_p8 = pnand %p3802_p5, %p150_p7  ;;  %s162_s25 = sshll.u32 %s5621_s24, 4  ;;  %s5703_s25 = int_to_ptr.vmem [resolvable:$true] %s162_s25 }
  0x10   : > { %s5622_s27 = smov [#allocation7]   ;;  %s5459_s5 = scalar_lea.hbm %s7305_s1, 1152 }
  0x11   : > { %p5391_p9 = pneg %p5699_p8  ;;  %s176_s28 = sshll.u32 %s5622_s27, 4  ;;  %s5714_s28 = int_to_ptr.vmem [resolvable:$true] %s176_s28 }
  0x12   : > { %p5460_p12 = scmp.ne.s32.totalorder %s7305_s1, %s5459_s5  ;;  %p5466_p5 = scmp.lt.u32.totalorder %s5459_s5, %s7305_s1 }
  0x13   : > { %p5710_p11 = pnand %p5391_p9, %p7309_p1 }
  0x15   : > { %p5461_p13 = pneg %p5710_p11 }
  0x17   : > { %p5462_p0 = pnand %p5461_p13, %p5460_p12 }
  0x19   : > { %p5463_p3 = pneg %p5462_p0 }
  0x1b   : > { %p5468_p7 = pnand %p5466_p5, %p5463_p3 }
  0x1d   : > { %5471 = shalt.err (!%p5468_p7)
}
  0x1e   : > { %s5472_s10 = scalar_lea.vmem %s5703_s25, 1152  ;;  %p5480_p2 = scmp.lt.s32.totalorder %s5703_s25, %s5703_s25 }
  0x1f   : > { %p5473_p9 = scmp.ne.s32.totalorder %s5703_s25, %s5472_s10  ;;  %p5481_p12 = scmp.lt.s32.totalorder %s5472_s10, %s5472_s10 }
  0x21   : > { %p5475_p10 = pnand %p5473_p9, %p5461_p13  ;;  %p5482_p0 = por %p5481_p12, %p5480_p2 }
  0x23   : > { %p5476_p1 = pneg %p5475_p10 }
  0x25   : > { %p5483_p6 = pnand %p5482_p0, %p5476_p1 }
  0x27   : > { %5486 = shalt.err (!%p5483_p6)
}
  0x28   : > { %s5623_s11 = smov 128   ;;  %s5624_s12 = smov 8  }
  0x29   : > { %5394 = dma.hbm_to_vmem [thread:$0]  (!%p5710_p11), %s7305_s1, 1152, %s5703_s25, [#allocation6], %s5623_s11, %s5623_s11, %s5624_s12  }
  0x2a   : > { %s5487_s27 = scalar_lea.hbm %s7306_s2, 16 }
  0x2b   : > { %p5488_p1 = scmp.ne.s32.totalorder %s7306_s2, %s5487_s27  ;;  %p5494_p10 = scmp.lt.u32.totalorder %s5487_s27, %s7306_s2 }
  0x2d   : > { %p5490_p2 = pnand %p5488_p1, %p5461_p13 }
  0x2f   : > { %p5491_p6 = pneg %p5490_p2 }
  0x31   : > { %p5496_p3 = pnand %p5494_p10, %p5491_p6 }
  0x33   : > { %5499 = shalt.err (!%p5496_p3)
}
  0x34   : > { %s5500_s25 = scalar_lea.vmem %s5714_s28, 16  ;;  %s5507_s7 = scalar_lea.vmem %s5714_s28, 32 }
  0x35   : > { %p5501_p5 = scmp.ne.s32.totalorder %s5714_s28, %s5500_s25  ;;  %p5508_p12 = scmp.lt.s32.totalorder %s5714_s28, %s5714_s28 }
  0x36   : > { %p5509_p0 = scmp.lt.s32.totalorder %s5507_s7, %s5500_s25 }
  0x37   : > { %p5503_p7 = pnand %p5501_p5, %p5461_p13 }
  0x38   : > { %p5510_p1 = por %p5509_p0, %p5508_p12 }
  0x39   : > { %p5504_p9 = pneg %p5503_p7 }
  0x3b   : > { %p5511_p2 = pnand %p5510_p1, %p5504_p9 }
  0x3d   : > { %5514 = shalt.err (!%p5511_p2)
}
  0x3e   : > { %5397 = dma.hbm_to_vmem [thread:$0]  (!%p5710_p11), %s7306_s2, 16, %s5714_s28, [#allocation6]  }
  0x3f   : > { %s5773_s10 = sadd.s32 1, %s5619_s18   ;;  %s32_s26 = sadd.s32 1, %s5615_s17 }
  0x40   : > { %s29_s13 = ssub.s32 %s5619_s18, %s5773_s10  ;;  %p39_p13 = scmp.ne.s32.totalorder %s5615_s17, %s5611_s16 }
  0x41   : > { %p30_p6 = scmp.eq.s32.totalorder %s29_s13, 0  ;;  %p40_p10 = scmp.eq.s32.totalorder %s5619_s18, 0 }
  0x42   : > { %p7412_p3 = scmp.eq.s32.totalorder %s5680_s19, 1  ;;  %p5411_p7 = scmp.lt.s32.totalorder %s5619_s18, 2 }
  0x43   : > { %s5789_s20 = scalar_select %p30_p6, %s5615_s17, %s32_s26  }
  0x44   : > { %p5783_p5 = por %p7412_p3, %p39_p13  ;;  %p41_p9 = por %p40_p10, %p39_p13 }
  0x45   : > { %s187_s24 = sand.u32 1, %s5615_s17   ;;  %s5369_s28 = smul.u32 7680, %s5619_s18 }
  0x46   : > { %s7413_s14 = scalar_select %p5783_p5, 1, 0 }
  0x47   : > { %s5368_s27 = smul.u32 480, %s187_s24  ;;  %p5793_p11 = pnand %p5411_p7, %p41_p9 }
  0x48   : > { %s5800_s6 = scalar_lea.hbm %s7304_s0, %s5369_s28  ;;  %s5804_s8 = scalar_lea.sflag [#allocation3], %s187_s24 }
  0x49   : > { %s191_s25 = scalar_lea.vmem [#allocation2], %s5368_s27  ;;  %s5515_s9 = scalar_lea.hbm %s5800_s6, 7680 }
  0x4a   : > { %s198_s7 = sshll.u32 %s191_s25, 4  ;;  %p5516_p12 = scmp.ne.s32.totalorder %s5800_s6, %s5515_s9  ;;  %s5802_s7 = int_to_ptr.vmem [resolvable:$true] %s198_s7 }
  0x4b   : > { %p5517_p0 = pneg %p5793_p11  ;;  %s5520_s28 = scalar_lea.hbm %s7304_s0, 15360 }
  0x4c   : > { %p5521_p13 = scmp.lt.u32.totalorder %s5800_s6, %s7304_s0  ;;  %p5522_p6 = scmp.lt.u32.totalorder %s5520_s28, %s5515_s9 }
  0x4d   : > { %p5518_p1 = pnand %p5517_p0, %p5516_p12  ;;  %p5524_p3 = scmp.lt.u32.totalorder %s5515_s9, %s5800_s6 }
  0x4e   : > { %p5523_p10 = por %p5522_p6, %p5521_p13 }
  0x4f   : > { %p5519_p2 = pneg %p5518_p1 }
  0x50   : > { %p5525_p7 = por %p5524_p3, %p5523_p10 }
  0x52   : > { %p5526_p9 = pnand %p5525_p7, %p5519_p2 }
  0x54   : > { %5529 = shalt.err (!%p5526_p9)
}
  0x55   : > { %s5530_s24 = scalar_lea.vmem %s5802_s7, 7680  ;;  %s5625_s27 = smov [#allocation2]  }
  0x56   : > { %p5531_p12 = scmp.ne.s32.totalorder %s5802_s7, %s5530_s24  ;;  %s5535_s25 = sshll.u32 %s5625_s27, 4  ;;  %s5536_s25 = int_to_ptr.vmem [resolvable:$false] %s5535_s25 }
  0x57   : > { %s5537_s26 = scalar_lea.vmem %s5536_s25, 15360  ;;  %p5538_p4 = scmp.lt.s32.totalorder %s5802_s7, %s5536_s25 }
  0x58   : > { %p5533_p1 = pnand %p5531_p12, %p5517_p0  ;;  %p5539_p13 = scmp.lt.s32.totalorder %s5537_s26, %s5530_s24 }
  0x5a   : > { %p5534_p5 = pneg %p5533_p1  ;;  %p5540_p6 = por %p5539_p13, %p5538_p4 }
  0x5c   : > { %p5541_p10 = pnand %p5540_p6, %p5534_p5 }
  0x5e   : > { %5544 = shalt.err (!%p5541_p10)
}
  0x5f   : > { %5401 = dma.hbm_to_vmem [thread:$0]  (!%p5793_p11), %s5800_s6, 7680, %s5802_s7, %s5804_s8, %s5623_s11, %s5623_s11, %s5624_s12  }
  0x60   : > { %210 = sbr.rel (%p5699_p8) target bundleno = 742 (0x2e6), region = 32 }
  0x67   : > { %s5838_s9 = sand.u32 1, %s5611_s16   ;;  %p7415_p4 = scmp.ne.s32.totalorder %s7408_s21, 0 }
  0x68   : > { %s5370_s13 = smul.u32 480, %s5838_s9  ;;  %s213_s28 = scalar_lea.sflag [#allocation3], %s5838_s9 }
  0x6a   : > { %s5842_s30 = scalar_lea.vmem [#allocation2], %s5370_s13 }
  0x6b   : > { %5590 = dma.done.wait (%p7415_p4), %s213_s28, 7680  }
  0x6c   : > { %5592 = vsyncadd (%p7415_p4), %s213_s28, 4294959616  ;;  %p7416_p5 = scmp.eq.s32.totalorder %s5680_s19, 0 }
  0x6e   : > { %5594 = dma.done.wait (%p7416_p5), [#allocation6], 1168   ;;  %p7417_p8 = pmov %p7416_p5 }
  0x6f   : > { %vm316_vm0 = vcmask 64512   ;;  %v315_v0 = vld [vmem:[#allocation5] sm:$0xff]  ;;  %v5860_v3 = vld [vmem:[%s5842_s30 + $0x8] sm:$0xff]  ;;  %vm1328_vm1 = vcmask 1046528   ;;  %v2092_v5 = vld [vmem:[#allocation5 + $0x38] sm:$0xff]  ;;  %vm2382_vm2 = vcmask 1045504  }
  0x70   : > { %5596 = vsyncadd (%p7417_p8), [#allocation6], 4294966128  ;;  %v5853_v1 = vld [vmem:[%s5842_s30] sm:$0xff]  ;;  %4552 = vmatprep.subr.mxu1 %v315_v0  ;;  %v5864_v6 = vld [vmem:[%s5842_s30 + $0x10] sm:$0x3]  ;;  %v1330_v7 = vrot.slane %v5860_v3, 1 }
  0x71   : > { %v5855_v2 = vld [vmem:[#allocation5 + $0x20] sm:$0xff]  ;;  %4554 = vmatprep.mubr.msk.f32.mxu1 %vm316_vm0, %v5853_v1  ;;  %v1329_v4 = vrot.slane %v5853_v1, 1  ;;  %4553 = vmatpush3.msra.mxu1 %v315_v0  ;;  %v1332_v8 = vrot.slane %v5864_v6, 1  ;;  %v5870_v9 = vld [vmem:[%s5842_s30 + $0x18] sm:$0xff]  ;;  %v5881_v14 = vld [vmem:[%s5842_s30 + $0x28] sm:$0x3] }
  0x72   : > { %7418 = vst [vmem:[#allocation17_spill] sm:$0xff] %v5855_v2  ;;  %4800 = vmatprep.subr.mxu0 %v5855_v2  ;;  %v5873_v10 = vld [vmem:[%s5842_s30 + $0x20] sm:$0xff]  ;;  %v727_v11 = vld [vmem:[#allocation5 + $0x18] sm:$0xff]  ;;  %4555 = vmatmul.mubr.msk.f32.vlgmr.msra.gmra.mrb[0].mxu1 %vm316_vm0, %v5860_v3  ;;  %v1334_v12 = vrot.slane %v5870_v9, 1  ;;  %v5884_v15 = vld [vmem:[%s5842_s30 + $0x30] sm:$0xff]  ;;  %v1337_v19 = vrot.slane %v5881_v14, 1 }
  0x73   : > { %4801 = vmatpush3.msra.mxu0 %v5855_v2  ;;  %v1335_v13 = vrot.slane %v5873_v10, 1  ;;  %v5887_v16 = vld [vmem:[%s5842_s30 + $0x38] sm:$0xff]  ;;  %v5890_v17 = vsel %vm1328_vm1, %v1329_v4, %v1330_v7  ;;  %v5893_v18 = vsel %vm1328_vm1, %v1330_v7, %v1332_v8  ;;  %4557 = vmatprep.mubr.msk.f32.mxu1 %vm316_vm0, %v5870_v9  ;;  %v1339_v20 = vrot.slane %v5884_v15, 1  ;;  %v5900_v21 = vld [vmem:[%s5842_s30 + $0x40] sm:$0x3]  ;;  %v5909_v24 = vld [vmem:[%s5842_s30 + $0x48] sm:$0xff] }
  0x74   : > { %7419 = vst [vmem:[#allocation18_spill] sm:$0xff] %v5890_v17  ;;  %4862 = vmatprep.subr.mxu0 %v2092_v5  ;;  %7420 = vst [vmem:[#allocation19_spill] sm:$0xff] %v5893_v18  ;;  %4802 = vmatprep.mubr.msk.f32.mxu0 %vm316_vm0, %v5890_v17  ;;  %v1340_v23 = vrot.slane %v5887_v16, 1  ;;  %v5912_v25 = vld [vmem:[%s5842_s30 + $0x50] sm:$0xff]  ;;  %v1342_v27 = vrot.slane %v5900_v21, 1  ;;  %v1344_v29 = vrot.slane %v5909_v24, 1 }
  0x75   : > { %4614 = vmatprep.subr.mxu1 %v727_v11  ;;  %v5905_v22 = vsel %vm1328_vm1, %v1334_v12, %v1335_v13  ;;  %4803 = vmatmul.mubr.msk.f32.vlgmr.msra.gmra.mrb[0].mxu0 %vm316_vm0, %v5893_v18  ;;  %v5919_v26 = vsel %vm1328_vm1, %v1335_v13, %v1337_v19  ;;  %v1345_v30 = vrot.slane %v5912_v25, 1  ;;  %v5932_v31 = vld [vmem:[%s5842_s30 + $0x58] sm:$0x3]  ;;  %v5935_v32 = vld [vmem:[%s5842_s30 + $0x60] sm:$0xff]  ;;  %v5938_v33 = vld [vmem:[%s5842_s30 + $0x68] sm:$0xff]  ;;  %s3810_s21 = sshll.u32 %s5838_s9, 8 }
  0x76   : > { %7421 = vst [vmem:[#allocation20_spill] sm:$0xff] %v5905_v22  ;;  %4615 = vmatpush3.msra.mxu1 %v727_v11  ;;  %4863 = vmatpush3.msra.mxu0 %v2092_v5  ;;  %7422 = vst [vmem:[#allocation21_spill] sm:$0xff] %v5919_v26  ;;  %v5927_v28 = vsel %vm1328_vm1, %v1339_v20, %v1340_v23  ;;  %v5947_v34 = vsel %vm1328_vm1, %v1340_v23, %v1342_v27  ;;  %v1347_v35 = vrot.slane %v5932_v31, 1  ;;  %v5958_v39 = vld [vmem:[%s5842_s30 + $0x70] sm:$0x3]  ;;  %v5961_v40 = vld [vmem:[%s5842_s30 + $0x78] sm:$0xff] }
  0x77   : > { %4558 = vmatmul.mubr.msk.f32.gmra.mrb[2].mxu1 %vm316_vm0, %v5873_v10  ;;  %4805 = vmatprep.mubr.msk.f32.mxu0 %vm316_vm0, %v5905_v22  ;;  %7423 = vst [vmem:[#allocation22_spill] sm:$0xff] %v5927_v28  ;;  %7424 = vst [vmem:[#allocation23_spill] sm:$0xff] %v5947_v34  ;;  %v5953_v36 = vsel %vm1328_vm1, %v1344_v29, %v1345_v30  ;;  %v1349_v37 = vrot.slane %v5935_v32, 1  ;;  %v1350_v38 = vrot.slane %v5938_v33, 1  ;;  %v5964_v41 = vld [vmem:[%s5842_s30 + $0x80] sm:$0xff]  ;;  %v5966_v42 = vld [vmem:[#allocation5 + $0x10] sm:$0xff] }
  0x78   : > { %4560 = vmatprep.mubr.msk.f32.mxu1 %vm316_vm0, %v5884_v15  ;;  %7425 = vst [vmem:[#allocation24_spill] sm:$0xff] %v5953_v36  ;;  %4924 = vmatprep.subr.mxu0 %v5966_v42  ;;  %v5976_v43 = vsel %vm1328_vm1, %v1345_v30, %v1347_v35  ;;  %v1352_v44 = vrot.slane %v5958_v39, 1  ;;  %v1354_v46 = vrot.slane %v5961_v40, 1  ;;  %v1355_v47 = vrot.slane %v5964_v41, 1  ;;  %v5987_v48 = vld [vmem:[%s5842_s30 + $0x88] sm:$0x3] }
  0x79   : > { %4806 = vmatmul.mubr.msk.f32.gmra.mrb[2].mxu0 %vm316_vm0, %v5919_v26  ;;  %7426 = vst [vmem:[#allocation25_spill] sm:$0xff] %v5976_v43  ;;  %v5982_v45 = vsel %vm1328_vm1, %v1349_v37, %v1350_v38  ;;  %7428 = vst [vmem:[#allocation27_spill] sm:$0xff] %v5987_v48  ;;  %v5990_v49 = vld [vmem:[%s5842_s30 + $0x90] sm:$0xff]  ;;  %v5993_v50 = vld [vmem:[%s5842_s30 + $0x98] sm:$0xff]  ;;  %v1357_v52 = vrot.slane %v5987_v48, 1  ;;  %s7174_s23 = scalar_lea.vmem [#allocation8], %s3810_s21 }
  0x7a   : > { %4808 = vmatprep.mubr.msk.f32.mxu0 %vm316_vm0, %v5927_v28  ;;  %7427 = vst [vmem:[#allocation26_spill] sm:$0xff] %v5982_v45  ;;  %v6002_v51 = vsel %vm1328_vm1, %v1350_v38, %v1352_v44  ;;  %v6005_v53 = vld [vmem:[#allocation5 + $0x30] sm:$0xff]  ;;  %v6010_v54 = vsel %vm1328_vm1, %v1354_v46, %v1355_v47  ;;  %v1359_v55 = vrot.slane %v5990_v49, 1  ;;  %v1360_v56 = vrot.slane %v5993_v50, 1  ;;  %v6015_v57 = vld [vmem:[%s5842_s30 + $0xa0] sm:$0x3] }
  0x7b   : > { %4561 = vmatmul.mubr.msk.f32.gmra.mrb[4].mxu1 %vm316_vm0, %v5887_v16  ;;  %7429 = vst [vmem:[#allocation28_spill] sm:$0xff] %v6002_v51  ;;  %7430 = vst [vmem:[#allocation29_spill] sm:$0xff] %v6010_v54  ;;  %4676 = vmatprep.subr.mxu1 %v6005_v53  ;;  %v6019_v58 = vld [vmem:[%s5842_s30 + $0xa8] sm:$0xff]  ;;  %v6022_v59 = vld [vmem:[%s5842_s30 + $0xb0] sm:$0xff]  ;;  %v6031_v60 = vsel %vm1328_vm1, %v1355_v47, %v1357_v52  ;;  %v1362_v61 = vrot.slane %v6015_v57, 1  ;;  %s3811_s11 = sshll.u32 %s5838_s9, 1 }
  0x7c   : > { %4563 = vmatprep.mubr.msk.f32.mxu1 %vm316_vm0, %v5909_v24  ;;  %7431 = vst [vmem:[#allocation30_spill] sm:$0xff] %v6015_v57  ;;  %7432 = vst [vmem:[#allocation31_spill] sm:$0xff] %v6031_v60  ;;  %v6037_v62 = vsel %vm1328_vm1, %v1359_v55, %v1360_v56  ;;  %v1364_v63 = vrot.slane %v6019_v58, 1  ;;  %v1365_v0 = vrot.slane %v6022_v59, 1  ;;  %v6042_v4 = vld [vmem:[%s5842_s30 + $0xb8] sm:$0x3] }
  0x7d   : > { %4809 = vmatmul.mubr.msk.f32.gmra.mrb[4].mxu0 %vm316_vm0, %v5947_v34  ;;  %7433 = vst [vmem:[#allocation32_spill] sm:$0xff] %v6037_v62  ;;  %7434 = vst [vmem:[#allocation33_spill] sm:$0xff] %v6042_v4  ;;  %v6045_v5 = vld [vmem:[%s5842_s30 + $0xc0] sm:$0xff]  ;;  %v6048_v7 = vld [vmem:[%s5842_s30 + $0xc8] sm:$0xff]  ;;  %v6057_v8 = vsel %vm1328_vm1, %v1360_v56, %v1362_v61  ;;  %v1367_v11 = vrot.slane %v6042_v4, 1  ;;  %s253_s12 = scalar_lea.vmem [#allocation9], %s3811_s11 }
  0x7e   : > { %4811 = vmatprep.mubr.msk.f32.mxu0 %vm316_vm0, %v5953_v36  ;;  %7435 = vst [vmem:[#allocation34_spill] sm:$0xff] %v6057_v8  ;;  %v6063_v12 = vsel %vm1328_vm1, %v1364_v63, %v1365_v0  ;;  %v1369_v13 = vrot.slane %v6045_v5, 1  ;;  %v1370_v19 = vrot.slane %v6048_v7, 1  ;;  %v6068_v20 = vld [vmem:[%s5842_s30 + $0xd0] sm:$0x3]  ;;  %v6071_v23 = vld [vmem:[%s5842_s30 + $0xd8] sm:$0xff] }
  0x7f   : > { %4564 = vmatmul.mubr.msk.f32.gmra.mrb[6].mxu1 %vm316_vm0, %v5912_v25  ;;  %7436 = vst [vmem:[#allocation35_spill] sm:$0xff] %v6063_v12  ;;  %7437 = vst [vmem:[#allocation36_spill] sm:$0xff] %v6068_v20  ;;  %v6074_v27 = vld [vmem:[%s5842_s30 + $0xe0] sm:$0xff]  ;;  %v6083_v29 = vsel %vm1328_vm1, %v1365_v0, %v1367_v11  ;;  %v1372_v30 = vrot.slane %v6068_v20, 1  ;;  %v1374_v37 = vrot.slane %v6071_v23, 1  ;;  %v6112_v55 = vld [vmem:[%s5842_s30 + $0xf0] sm:$0xff] }
  0x80   : > { %4566 = vmatprep.mubr.msk.f32.mxu1 %vm316_vm0, %v5935_v32  ;;  %7438 = vst [vmem:[#allocation37_spill] sm:$0xff] %v6083_v29  ;;  %v6089_v35 = vsel %vm1328_vm1, %v1369_v13, %v1370_v19  ;;  %v1375_v38 = vrot.slane %v6074_v27, 1  ;;  %v6094_v44 = vld [vmem:[%s5842_s30 + $0xe8] sm:$0x3]  ;;  %v6126_v61 = vld [vmem:[%s5842_s30 + $0xf8] sm:$0xff]  ;;  %v6140_v0 = vld [vmem:[%s5842_s30 + $0x110] sm:$0xff] }
  0x81   : > { %4812 = vmatmul.mubr.msk.f32.gmra.mrb[6].mxu0 %vm316_vm0, %v5976_v43  ;;  %7439 = vst [vmem:[#allocation38_spill] sm:$0xff] %v6089_v35  ;;  %7440 = vst [vmem:[#allocation39_spill] sm:$0xff] %v6094_v44  ;;  %v6103_v46 = vsel %vm1328_vm1, %v1370_v19, %v1372_v30  ;;  %v1377_v47 = vrot.slane %v6094_v44, 1  ;;  %v6129_v63 = vld [vmem:[%s5842_s30 + $0x108] sm:$0xff]  ;;  %v6143_v11 = vld [vmem:[%s5842_s30 + $0x120] sm:$0xff]  ;;  %s3616_s29 = scalar_lea.sflag [#allocation4], %s5838_s9 }
  0x82   : > { %4814 = vmatprep.mubr.msk.f32.mxu0 %vm316_vm0, %v5982_v45  ;;  %7441 = vst [vmem:[#allocation40_spill] sm:$0xff] %v6103_v46  ;;  %v6109_v52 = vsel %vm1328_vm1, %v1374_v37, %v1375_v38  ;;  %v6147_v13 = vld [vmem:[#allocation5 + $0x28] sm:$0xff]  ;;  %v6160_v30 = vld [vmem:[%s5842_s30 + $0x138] sm:$0xff]  ;;  %v6175_v37 = vld [vmem:[%s5842_s30 + $0x150] sm:$0xff]  ;;  %s3621_s6 = scalar_lea.sflag [#allocation10], %s5838_s9 }
  0x83   : > { %4567 = vmatmul.mubr.msk.f32.gmra.mrb[8].mxu1 %vm316_vm0, %v5938_v33  ;;  %7442 = vst [vmem:[#allocation41_spill] sm:$0xff] %v6109_v52  ;;  %v6121_v56 = vsel %vm1328_vm1, %v1375_v38, %v1377_v47  ;;  %v6157_v19 = vld [vmem:[%s5842_s30 + $0x128] sm:$0xff]  ;;  %v6186_v38 = vld [vmem:[%s5842_s30 + $0x158] sm:$0xff]  ;;  %v6341_v48 = vld [vmem:[%s5842_s30 + $0x130] sm:$0x3] }
  0x84   : > { %4569 = vmatprep.mubr.msk.f32.mxu1 %vm316_vm0, %v5961_v40  ;;  %7443 = vst [vmem:[#allocation42_spill] sm:$0xff] %v6121_v56  ;;  %v6189_v47 = vld [vmem:[%s5842_s30 + $0x168] sm:$0xff]  ;;  %v1390_v57 = vrot.slane %v6157_v19, 1  ;;  %7453 = vst [vmem:[#allocation51_spill] sm:$0xff] %v6341_v48 }
  0x85   : > { %4815 = vmatmul.mubr.msk.f32.gmra.mrb[8].mxu0 %vm316_vm0, %v6002_v51 }
  0x86   : > { %4817 = vmatprep.mubr.msk.f32.mxu0 %vm316_vm0, %v6010_v54 }
  0x87   : > { %4570 = vmatmul.mubr.msk.f32.gmra.mrb[10].mxu1 %vm316_vm0, %v5964_v41 }
  0x88   : > { %4572 = vmatprep.mubr.msk.f32.mxu1 %vm316_vm0, %v5990_v49 }
  0x89   : > { %4818 = vmatmul.mubr.msk.f32.gmra.mrb[10].mxu0 %vm316_vm0, %v6031_v60 }
  0x8a   : > { %4820 = vmatprep.mubr.msk.f32.mxu0 %vm316_vm0, %v6037_v62 }
  0x8b   : > { %4573 = vmatmul.mubr.msk.f32.gmra.mrb[12].mxu1 %vm316_vm0, %v5993_v50 }
  0x8c   : > { %4575 = vmatprep.mubr.msk.f32.mxu1 %vm316_vm0, %v6019_v58 }
  0x8d   : > { %4821 = vmatmul.mubr.msk.f32.gmra.mrb[12].mxu0 %vm316_vm0, %v6057_v8 }
  0x8e   : > { %4823 = vmatprep.mubr.msk.f32.mxu0 %vm316_vm0, %v6063_v12 }
  0x8f   : > { %4576 = vmatmul.mubr.msk.f32.gmra.mrb[14].mxu1 %vm316_vm0, %v6022_v59 }
  0x90   : > { %4578 = vmatprep.mubr.msk.f32.mxu1 %vm316_vm0, %v6045_v5 }
  0x91   : > { %4824 = vmatmul.mubr.msk.f32.gmra.mrb[14].mxu0 %vm316_vm0, %v6083_v29 }
  0x92   : > { %4826 = vmatprep.mubr.msk.f32.mxu0 %vm316_vm0, %v6089_v35 }
  0x93   : > { %4579 = vmatmul.mubr.msk.f32.gmra.mrb[16].mxu1 %vm316_vm0, %v6048_v7 }
  0x94   : > { %4581 = vmatprep.mubr.msk.f32.mxu1 %vm316_vm0, %v6071_v23 }
  0x95   : > { %4827 = vmatmul.mubr.msk.f32.gmra.mrb[16].mxu0 %vm316_vm0, %v6103_v46 }
  0x96   : > { %4829 = vmatprep.mubr.msk.f32.mxu0 %vm316_vm0, %v6109_v52 }
  0x97   : > { %4582 = vmatmul.mubr.msk.f32.gmra.mrb[18].mxu1 %vm316_vm0, %v6074_v27 }
  0x98   : > { %4584 = vmatprep.mubr.msk.f32.mxu1 %vm316_vm0, %v6112_v55 }
  0x99   : > { %4830 = vmatmul.mubr.msk.f32.gmra.mrb[18].mxu0 %vm316_vm0, %v6121_v56 }
  0x9a   : > { %4864 = vmatprep.mubr.msk.f32.mxu0 %vm316_vm0, %v5890_v17 }
  0x9b   : > { %4585 = vmatmul.mubr.msk.f32.gmra.mrb[20].mxu1 %vm316_vm0, %v6126_v61 }
  0x9c   : > { %4587 = vmatprep.mubr.msk.f32.mxu1 %vm316_vm0, %v6129_v63 }
  0x9d   : > { %4865 = vmatmul.mubr.msk.f32.vlgmr.msra.gmra.mrb[20].mxu0 %vm316_vm0, %v5893_v18 }
  0x9e   : > { %4925 = vmatpush3.msra.mxu0 %v5966_v42  ;;  %4867 = vmatprep.mubr.msk.f32.mxu0 %vm316_vm0, %v5905_v22  ;;  %v6172_v42 = vld [vmem:[%s5842_s30 + $0x140] sm:$0xff]  ;;  %v6208_v22 = vld [vmem:[%s5842_s30 + $0x170] sm:$0xff] }
  0x9f   : > { %4588 = vmatmul.mubr.msk.f32.gmra.mrb[22].mxu1 %vm316_vm0, %v6140_v0  ;;  %4986 = vmatprep.subr.mxu0 %v6147_v13 }
  0xa0   : > { %4590 = vmatprep.mubr.msk.f32.mxu1 %vm316_vm0, %v6143_v11 }
  0xa1   : > { %4868 = vmatmul.mubr.msk.f32.gmra.mrb[22].mxu0 %vm316_vm0, %v5919_v26  ;;  %v6214_v26 = vld [vmem:[%s5842_s30 + $0x1a0] sm:$0xff] }
  0xa2   : > { %4870 = vmatprep.mubr.msk.f32.mxu0 %vm316_vm0, %v5927_v28  ;;  %v6192_v28 = vld [vmem:[%s5842_s30 + $0x188] sm:$0xff]  ;;  %v7327_v2 = vrot.slane %v6214_v26, 2 }
  0xa3   : > { %4591 = vmatmul.mubr.msk.f32.gmra.mrb[24].mxu1 %vm316_vm0, %v6157_v19  ;;  %v7444_v18 = vrot.slane %v6192_v28, 2 }
  0xa4   : > { %4593 = vmatprep.mubr.msk.f32.mxu1 %vm316_vm0, %v6160_v30 }
  0xa5   : > { %4871 = vmatmul.mubr.msk.f32.gmra.mrb[2].mxu0 %vm316_vm0, %v5947_v34  ;;  %v6197_v34 = vld [vmem:[%s5842_s30 + $0x190] sm:$0x3] }
  0xa6   : > { %4873 = vmatprep.mubr.msk.f32.mxu0 %vm316_vm0, %v5953_v36  ;;  %v2466_v36 = vrot.slane %v6197_v34, 2 }
  0xa7   : > { %4594 = vmatmul.mubr.msk.f32.gmra.mrb[26].mxu1 %vm316_vm0, %v6172_v42 }
  0xa8   : > { %4596 = vmatprep.mubr.msk.f32.mxu1 %vm316_vm0, %v6175_v37  ;;  %v6219_v17 = vsel %vm2382_vm2, %v7444_v18, %v2466_v36  ;;  %v6235_v18 = vld [vmem:[%s5842_s30 + $0x198] sm:$0xff] }
  0xa9   : > { %4874 = vmatmul.mubr.msk.f32.gmra.mrb[4].mxu0 %vm316_vm0, %v5976_v43  ;;  %v6211_v43 = vld [vmem:[%s5842_s30 + $0x180] sm:$0xff]  ;;  %7445 = vst [vmem:[#allocation43_spill] sm:$0xff] %v6219_v17  ;;  %v6238_v36 = vld [vmem:[%s5842_s30 + $0x1b8] sm:$0xff] }
  0xaa   : > { %4876 = vmatprep.mubr.msk.f32.mxu0 %vm316_vm0, %v5982_v45  ;;  %v6224_v45 = vld [vmem:[%s5842_s30 + $0x1a8] sm:$0x3]  ;;  %v6248_v17 = vld [vmem:[%s5842_s30 + $0x1c0] sm:$0x3] }
  0xab   : > { %4597 = vmatmul.mubr.msk.f32.gmra.mrb[28].mxu1 %vm316_vm0, %v6186_v38  ;;  %v2471_v44 = vrot.slane %v6224_v45, 2  ;;  %v2476_v20 = vrot.slane %v6248_v17, 2 }
  0xac   : > { %4599 = vmatprep.mubr.msk.f32.mxu1 %vm316_vm0, %v6189_v47 }
  0xad   : > { %4877 = vmatmul.mubr.msk.f32.gmra.mrb[6].mxu0 %vm316_vm0, %v6002_v51  ;;  %v6243_v51 = vsel %vm2382_vm2, %v7327_v2, %v2471_v44  ;;  %v6259_v44 = vld [vmem:[%s5842_s30 + $0x1b0] sm:$0xff] }
  0xae   : > { %4879 = vmatprep.mubr.msk.f32.mxu0 %vm316_vm0, %v6010_v54  ;;  %7446 = vst [vmem:[#allocation44_spill] sm:$0xff] %v6243_v51  ;;  %v7332_v54 = vrot.slane %v6238_v36, 2  ;;  %v6262_v2 = vld [vmem:[%s5842_s30 + $0x1d0] sm:$0xff]  ;;  %v6272_v51 = vld [vmem:[%s5842_s30 + $0x1d8] sm:$0x3] }
  0xaf   : > { %4600 = vmatmul.mubr.msk.f32.gmra.mrb[30].mxu1 %vm316_vm0, %v6208_v22  ;;  %v2481_v4 = vrot.slane %v6272_v51, 2 }
  0xb0   : > { %4602 = vmatprep.mubr.msk.f32.mxu1 %vm316_vm0, %v6211_v43 }
  0xb1   : > { %4880 = vmatmul.mubr.msk.f32.gmra.mrb[8].mxu0 %vm316_vm0, %v6031_v60  ;;  %v6267_v60 = vsel %vm2382_vm2, %v7332_v54, %v2476_v20  ;;  %v6283_v20 = vld [vmem:[%s5842_s30 + $0x1c8] sm:$0xff] }
  0xb2   : > { %4882 = vmatprep.mubr.msk.f32.mxu0 %vm316_vm0, %v6037_v62  ;;  %7447 = vst [vmem:[#allocation45_spill] sm:$0xff] %v6267_v60  ;;  %v7336_v62 = vrot.slane %v6262_v2, 2  ;;  %v6301_v60 = vld [vmem:[%s5842_s30 + $0x100] sm:$0x3] }
  0xb3   : > { %4603 = vmatmul.mubr.msk.f32.gmra.mrb[32].mxu1 %vm316_vm0, %v6192_v28  ;;  %7449 = vst [vmem:[#allocation47_spill] sm:$0xff] %v6301_v60 }
  0xb4   : > { %4605 = vmatprep.mubr.msk.f32.mxu1 %vm316_vm0, %v6235_v18  ;;  %v6288_v54 = vsel %vm2382_vm2, %v7336_v62, %v2481_v4  ;;  %v1382_v4 = vrot.slane %v6301_v60, 1 }
  0xb5   : > { %4883 = vmatmul.mubr.msk.f32.gmra.mrb[10].mxu0 %vm316_vm0, %v6057_v8  ;;  %7448 = vst [vmem:[#allocation46_spill] sm:$0xff] %v6288_v54  ;;  %v1380_v8 = vrot.slane %v6126_v61, 1  ;;  %v6322_v54 = vld [vmem:[#allocation5 + $0x8] sm:$0xff] }
  0xb6   : > { %4885 = vmatprep.mubr.msk.f32.mxu0 %vm316_vm0, %v6063_v12  ;;  %v1379_v12 = vrot.slane %v6112_v55, 1 }
  0xb7   : > { %4606 = vmatmul.mubr.msk.f32.gmra.mrb[34].mxu1 %vm316_vm0, %v6214_v26 }
  0xb8   : > { %4608 = vmatprep.mubr.msk.f32.mxu1 %vm316_vm0, %v6259_v44  ;;  %v6313_v62 = vsel %vm1328_vm1, %v1379_v12, %v1380_v8  ;;  %v6329_v12 = vsel %vm1328_vm1, %v1380_v8, %v1382_v4  ;;  %v1394_v4 = vrot.slane %v6160_v30, 1 }
  0xb9   : > { %4886 = vmatmul.mubr.msk.f32.gmra.mrb[12].mxu0 %vm316_vm0, %v6083_v29  ;;  %7450 = vst [vmem:[#allocation48_spill] sm:$0xff] %v6313_v62  ;;  %v1385_v29 = vrot.slane %v6140_v0, 1  ;;  %7451 = vst [vmem:[#allocation49_spill] sm:$0xff] %v6329_v12 }
  0xba   : > { %4888 = vmatprep.mubr.msk.f32.mxu0 %vm316_vm0, %v6089_v35  ;;  %v1384_v35 = vrot.slane %v6129_v63, 1 }
  0xbb   : > { %4609 = vmatmul.mubr.msk.f32.gmra.mrb[36].mxu1 %vm316_vm0, %v6238_v36 }
  0xbc   : > { %4611 = vmatprep.mubr.msk.f32.mxu1 %vm316_vm0, %v6283_v20  ;;  %v6335_v60 = vsel %vm1328_vm1, %v1384_v35, %v1385_v29 }
  0xbd   : > { %4889 = vmatmul.mubr.msk.f32.gmra.mrb[14].mxu0 %vm316_vm0, %v6103_v46  ;;  %v6318_v46 = vld [vmem:[%s5842_s30 + $0x118] sm:$0x3]  ;;  %7452 = vst [vmem:[#allocation50_spill] sm:$0xff] %v6335_v60 }
  0xbe   : > { %4891 = vmatprep.mubr.msk.f32.mxu0 %vm316_vm0, %v6109_v52  ;;  %v1387_v52 = vrot.slane %v6318_v46, 1 }
  0xbf   : > { %4612 = vmatmul.mubr.msk.f32.gmra.mrb[38].mxu1 %vm316_vm0, %v6262_v2 }
  0xc0   : > { %4616 = vmatprep.mubr.msk.f32.mxu1 %vm316_vm0, %v5853_v1  ;;  %v6351_v8 = vsel %vm1328_vm1, %v1385_v29, %v1387_v52 }
  0xc1   : > { %4892 = vmatmul.mubr.msk.f32.gmra.mrb[16].mxu0 %vm316_vm0, %v6121_v56  ;;  %v1389_v56 = vrot.slane %v6143_v11, 1  ;;  %7454 = vst [vmem:[#allocation52_spill] sm:$0xff] %v6351_v8 }
  0xc2   : > { %4894 = vmatprep.mubr.msk.f32.mxu0 %vm316_vm0, %v6313_v62  ;;  %v6362_v62 = vld [vmem:[%s5842_s30 + $0x148] sm:$0x3] }
  0xc3   : > { %4617 = vmatmul.mubr.msk.f32.vlgmr.msra.gmra.mrb[40].mxu1 %vm316_vm0, %v5860_v3  ;;  %v6357_v35 = vsel %vm1328_vm1, %v1389_v56, %v1390_v57  ;;  %7456 = vst [vmem:[#allocation54_spill] sm:$0xff] %v6362_v62  ;;  %v1397_v52 = vrot.slane %v6362_v62, 1  ;;  %v6402_v62 = vld [vmem:[%s5842_s30 + $0x178] sm:$0x3] }
  0xc4   : > { %4619 = vmatprep.mubr.msk.f32.mxu1 %vm316_vm0, %v5870_v9  ;;  %4677 = vmatpush3.msra.mxu1 %v6005_v53  ;;  %v1392_v53 = vrot.slane %v6341_v48, 1  ;;  %7455 = vst [vmem:[#allocation53_spill] sm:$0xff] %v6357_v35  ;;  %v6382_v48 = vld [vmem:[%s5842_s30 + $0x160] sm:$0x3] }
  0xc5   : > { %4738 = vmatprep.subr.mxu1 %v6322_v54  ;;  %4895 = vmatmul.mubr.msk.f32.gmra.mrb[24].mxu0 %vm316_vm0, %v6329_v12  ;;  %v1395_v12 = vrot.slane %v6172_v42, 1 }
  0xc6   : > { %4897 = vmatprep.mubr.msk.f32.mxu0 %vm316_vm0, %v6335_v60  ;;  %v6371_v29 = vsel %vm1328_vm1, %v1390_v57, %v1392_v53  ;;  %v1400_v60 = vrot.slane %v6186_v38, 1  ;;  %v1402_v53 = vrot.slane %v6382_v48, 1 }
  0xc7   : > { %4620 = vmatmul.mubr.msk.f32.gmra.mrb[0].mxu1 %vm316_vm0, %v5873_v10  ;;  %7457 = vst [vmem:[#allocation55_spill] sm:$0xff] %v6371_v29  ;;  %v6377_v56 = vsel %vm1328_vm1, %v1394_v4, %v1395_v12  ;;  %v6391_v57 = vsel %vm1328_vm1, %v1395_v12, %v1397_v52 }
  0xc8   : > { %4622 = vmatprep.mubr.msk.f32.mxu1 %vm316_vm0, %v5884_v15  ;;  %7458 = vst [vmem:[#allocation56_spill] sm:$0xff] %v6377_v56  ;;  %7459 = vst [vmem:[#allocation57_spill] sm:$0xff] %v6391_v57  ;;  %v6411_v12 = vsel %vm1328_vm1, %v1400_v60, %v1402_v53  ;;  %v1412_v53 = vrot.slane %v6197_v34, 1 }
  0xc9   : > { %4898 = vmatmul.mubr.msk.f32.gmra.mrb[26].mxu0 %vm316_vm0, %v6351_v8  ;;  %v1399_v8 = vrot.slane %v6175_v37, 1  ;;  %7461 = vst [vmem:[#allocation59_spill] sm:$0xff] %v6411_v12 }
  0xca   : > { %4900 = vmatprep.mubr.msk.f32.mxu0 %vm316_vm0, %v6357_v35  ;;  %v1404_v35 = vrot.slane %v6189_v47, 1 }
  0xcb   : > { %4623 = vmatmul.mubr.msk.f32.gmra.mrb[2].mxu1 %vm316_vm0, %v5887_v16  ;;  %v6397_v4 = vsel %vm1328_vm1, %v1399_v8, %v1400_v60  ;;  %v1407_v8 = vrot.slane %v6402_v62, 1 }
  0xcc   : > { %4625 = vmatprep.mubr.msk.f32.mxu1 %vm316_vm0, %v5909_v24  ;;  %7460 = vst [vmem:[#allocation58_spill] sm:$0xff] %v6397_v4 }
  0xcd   : > { %4901 = vmatmul.mubr.msk.f32.gmra.mrb[28].mxu0 %vm316_vm0, %v6371_v29  ;;  %v1405_v29 = vrot.slane %v6208_v22, 1 }
  0xce   : > { %4903 = vmatprep.mubr.msk.f32.mxu0 %vm316_vm0, %v6377_v56  ;;  %v1409_v56 = vrot.slane %v6211_v43, 1 }
  0xcf   : > { %4626 = vmatmul.mubr.msk.f32.gmra.mrb[4].mxu1 %vm316_vm0, %v5912_v25  ;;  %v6417_v52 = vsel %vm1328_vm1, %v1404_v35, %v1405_v29  ;;  %v6428_v60 = vsel %vm1328_vm1, %v1405_v29, %v1407_v8  ;;  %v1417_v29 = vrot.slane %v6224_v45, 1  ;;  %v1419_v8 = vrot.slane %v6259_v44, 1 }
  0xd0   : > { %4628 = vmatprep.mubr.msk.f32.mxu1 %vm316_vm0, %v5935_v32  ;;  %7462 = vst [vmem:[#allocation60_spill] sm:$0xff] %v6417_v52  ;;  %7463 = vst [vmem:[#allocation61_spill] sm:$0xff] %v6428_v60 }
  0xd1   : > { %4904 = vmatmul.mubr.msk.f32.gmra.mrb[30].mxu0 %vm316_vm0, %v6391_v57  ;;  %v1410_v57 = vrot.slane %v6192_v28, 1 }
  0xd2   : > { %4906 = vmatprep.mubr.msk.f32.mxu0 %vm316_vm0, %v6397_v4  ;;  %v1414_v4 = vrot.slane %v6235_v18, 1 }
  0xd3   : > { %4629 = vmatmul.mubr.msk.f32.gmra.mrb[6].mxu1 %vm316_vm0, %v5938_v33  ;;  %v6434_v35 = vsel %vm1328_vm1, %v1409_v56, %v1410_v57  ;;  %v6445_v34 = vsel %vm1328_vm1, %v1410_v57, %v1412_v53  ;;  %v1422_v57 = vrot.slane %v6248_v17, 1  ;;  %v1424_v53 = vrot.slane %v6283_v20, 1 }
  0xd4   : > { %4631 = vmatprep.mubr.msk.f32.mxu1 %vm316_vm0, %v5961_v40  ;;  %7464 = vst [vmem:[#allocation62_spill] sm:$0xff] %v6434_v35  ;;  %7465 = vst [vmem:[#allocation63_spill] sm:$0xff] %v6445_v34 }
  0xd5   : > { %4907 = vmatmul.mubr.msk.f32.gmra.mrb[32].mxu0 %vm316_vm0, %v6411_v12  ;;  %v1415_v12 = vrot.slane %v6214_v26, 1 }
  0xd6   : > { %4909 = vmatprep.mubr.msk.f32.mxu0 %vm316_vm0, %v6417_v52  ;;  %v2414_v52 = vrot.slane %v5993_v50, 2 }
  0xd7   : > { %4632 = vmatmul.mubr.msk.f32.gmra.mrb[8].mxu1 %vm316_vm0, %v5964_v41  ;;  %v6451_v56 = vsel %vm1328_vm1, %v1414_v4, %v1415_v12  ;;  %v6462_v45 = vsel %vm1328_vm1, %v1415_v12, %v1417_v29  ;;  %v1427_v12 = vrot.slane %v6272_v51, 1 }
  0xd8   : > { %4634 = vmatprep.mubr.msk.f32.mxu1 %vm316_vm0, %v5990_v49  ;;  %7466 = vst [vmem:[#allocation64_spill] sm:$0xff] %v6451_v56  ;;  %7467 = vst [vmem:[#allocation65_spill] sm:$0xff] %v6462_v45 }
  0xd9   : > { %4910 = vmatmul.mubr.msk.f32.gmra.mrb[34].mxu0 %vm316_vm0, %v6428_v60  ;;  %v1420_v60 = vrot.slane %v6238_v36, 1 }
  0xda   : > { %4912 = vmatprep.mubr.msk.f32.mxu0 %vm316_vm0, %v6434_v35  ;;  %v2413_v35 = vrot.slane %v5990_v49, 2 }
  0xdb   : > { %4635 = vmatmul.mubr.msk.f32.gmra.mrb[10].mxu1 %vm316_vm0, %v5993_v50  ;;  %v6468_v4 = vsel %vm1328_vm1, %v1419_v8, %v1420_v60  ;;  %v6479_v17 = vsel %vm1328_vm1, %v1420_v60, %v1422_v57  ;;  %v2383_v8 = vrot.slane %v5853_v1, 2  ;;  %v2388_v57 = vrot.slane %v5870_v9, 2 }
  0xdc   : > { %4637 = vmatprep.mubr.msk.f32.mxu1 %vm316_vm0, %v6019_v58  ;;  %7468 = vst [vmem:[#allocation66_spill] sm:$0xff] %v6468_v4  ;;  %7469 = vst [vmem:[#allocation67_spill] sm:$0xff] %v6479_v17 }
  0xdd   : > { %4913 = vmatmul.mubr.msk.f32.gmra.mrb[36].mxu0 %vm316_vm0, %v6445_v34  ;;  %v1425_v34 = vrot.slane %v6262_v2, 1 }
  0xde   : > { %4915 = vmatprep.mubr.msk.f32.mxu0 %vm316_vm0, %v6451_v56  ;;  %v2409_v56 = vrot.slane %v5964_v41, 2 }
  0xdf   : > { %4638 = vmatmul.mubr.msk.f32.gmra.mrb[12].mxu1 %vm316_vm0, %v6022_v59  ;;  %v6485_v29 = vsel %vm1328_vm1, %v1424_v53, %v1425_v34  ;;  %v6497_v51 = vsel %vm1328_vm1, %v1425_v34, %v1427_v12  ;;  %v2389_v53 = vrot.slane %v5873_v10, 2  ;;  %v2391_v34 = vrot.slane %v5881_v14, 2 }
  0xe0   : > { %4640 = vmatprep.mubr.msk.f32.mxu1 %vm316_vm0, %v6045_v5  ;;  %7470 = vst [vmem:[#allocation68_spill] sm:$0xff] %v6485_v29  ;;  %7471 = vst [vmem:[#allocation69_spill] sm:$0xff] %v6497_v51  ;;  %v2393_v12 = vrot.slane %v5884_v15, 2 }
  0xe1   : > { %4916 = vmatmul.mubr.msk.f32.gmra.mrb[38].mxu0 %vm316_vm0, %v6462_v45  ;;  %v2384_v45 = vrot.slane %v5860_v3, 2  ;;  %v6531_v14 = vsel %vm2382_vm2, %v2389_v53, %v2391_v34 }
  0xe2   : > { %4918 = vmatprep.mubr.msk.f32.mxu0 %vm316_vm0, %v6468_v4  ;;  %v2386_v4 = vrot.slane %v5864_v6, 2 }
  0xe3   : > { %4641 = vmatmul.mubr.msk.f32.gmra.mrb[14].mxu1 %vm316_vm0, %v6048_v7  ;;  %v6502_v60 = vsel %vm2382_vm2, %v2383_v8, %v2384_v45  ;;  %v2394_v8 = vrot.slane %v5887_v16, 2 }
  0xe4   : > { %4643 = vmatprep.mubr.msk.f32.mxu1 %vm316_vm0, %v6071_v23  ;;  %v6513_v6 = vsel %vm2382_vm2, %v2384_v45, %v2386_v4  ;;  %v2396_v45 = vrot.slane %v5900_v21, 2 }
  0xe5   : > { %4919 = vmatmul.mubr.msk.f32.gmra.mrb[40].mxu0 %vm316_vm0, %v6479_v17  ;;  %v6539_v4 = vsel %vm2382_vm2, %v2393_v12, %v2394_v8  ;;  %v2403_v12 = vrot.slane %v5935_v32, 2  ;;  %v2404_v17 = vrot.slane %v5938_v33, 2 }
  0xe6   : > { %4921 = vmatprep.mubr.msk.f32.mxu0 %vm316_vm0, %v6485_v29  ;;  %v6525_v29 = vld [vmem:[#allocation5 + $0x40] sm:$0xff]  ;;  %v6551_v21 = vsel %vm2382_vm2, %v2394_v8, %v2396_v45  ;;  %v2406_v8 = vrot.slane %v5958_v39, 2 }
  0xe7   : > { %4644 = vmatmul.mubr.msk.f32.gmra.mrb[42].mxu1 %vm316_vm0, %v6074_v27  ;;  %v6574_v45 = vsel %vm2382_vm2, %v2403_v12, %v2404_v17 }
  0xe8   : > { %4646 = vmatprep.mubr.msk.f32.mxu1 %vm316_vm0, %v6112_v55  ;;  %7472 = vst [vmem:[#allocation70_spill] sm:$0xff] %v6574_v45  ;;  %v6585_v39 = vsel %vm2382_vm2, %v2404_v17, %v2406_v8  ;;  %v7477_v8 = vld [vmem:[#allocation30_spill] sm:$0xff] }
  0xe9   : > { %4922 = vmatmul.mubr.msk.f32.gmra.mrb[42].mxu0 %vm316_vm0, %v6497_v51  ;;  %v6521_v51 = vsel %vm2382_vm2, %v2388_v57, %v2389_v53  ;;  %v2398_v57 = vrot.slane %v5909_v24, 2  ;;  %v2401_v53 = vrot.slane %v5932_v31, 2  ;;  %7473 = vst [vmem:[#allocation71_spill] sm:$0xff] %v6585_v39 }
  0xea   : > { %4926 = vmatprep.mubr.msk.f32.mxu0 %vm316_vm0, %v6502_v60 }
  0xeb   : > { %4647 = vmatmul.mubr.msk.f32.gmra.mrb[44].mxu1 %vm316_vm0, %v6126_v61 }
  0xec   : > { %4649 = vmatprep.mubr.msk.f32.mxu1 %vm316_vm0, %v6129_v63 }
  0xed   : > { %4927 = vmatmul.mubr.msk.f32.vlgmr.msra.gmra.mrb[2].mxu0 %vm316_vm0, %v6513_v6 }
  0xee   : > { %4987 = vmatpush3.msra.mxu0 %v6147_v13  ;;  %4929 = vmatprep.mubr.msk.f32.mxu0 %vm316_vm0, %v6521_v51  ;;  %v2399_v13 = vrot.slane %v5912_v25, 2 }
  0xef   : > { %4650 = vmatmul.mubr.msk.f32.gmra.mrb[20].mxu1 %vm316_vm0, %v6140_v0  ;;  %5048 = vmatprep.subr.mxu0 %v6525_v29 }
  0xf0   : > { %4652 = vmatprep.mubr.msk.f32.mxu1 %vm316_vm0, %v6143_v11  ;;  %v6557_v34 = vsel %vm2382_vm2, %v2398_v57, %v2399_v13  ;;  %v6568_v31 = vsel %vm2382_vm2, %v2399_v13, %v2401_v53  ;;  %v2408_v57 = vrot.slane %v5961_v40, 2  ;;  %v7474_v13 = vld [vmem:[#allocation27_spill] sm:$0xff] }
  0xf1   : > { %4930 = vmatmul.mubr.msk.f32.gmra.mrb[4].mxu0 %vm316_vm0, %v6531_v14  ;;  %v2411_v53 = vrot.slane %v7474_v13, 2  ;;  %v2416_v13 = vrot.slane %v7477_v8, 2 }
  0xf2   : > { %4932 = vmatprep.mubr.msk.f32.mxu0 %vm316_vm0, %v6539_v4  ;;  %v6591_v12 = vsel %vm2382_vm2, %v2408_v57, %v2409_v56  ;;  %v6608_v57 = vsel %vm2382_vm2, %v2413_v35, %v2414_v52 }
  0xf3   : > { %4653 = vmatmul.mubr.msk.f32.gmra.mrb[22].mxu1 %vm316_vm0, %v6157_v19  ;;  %7475 = vst [vmem:[#allocation27_spill] sm:$0xff] %v6591_v12  ;;  %v6602_v17 = vsel %vm2382_vm2, %v2409_v56, %v2411_v53  ;;  %7478 = vst [vmem:[#allocation30_spill] sm:$0xff] %v6608_v57  ;;  %v6619_v56 = vsel %vm2382_vm2, %v2414_v52, %v2416_v13  ;;  %v7480_v53 = vld [vmem:[#allocation33_spill] sm:$0xff]  ;;  %v7483_v13 = vld [vmem:[#allocation36_spill] sm:$0xff] }
  0xf4   : > { %4655 = vmatprep.mubr.msk.f32.mxu1 %vm316_vm0, %v6160_v30  ;;  %7476 = vst [vmem:[#allocation72_spill] sm:$0xff] %v6602_v17  ;;  %7479 = vst [vmem:[#allocation73_spill] sm:$0xff] %v6619_v56  ;;  %v2421_v8 = vrot.slane %v7480_v53, 2  ;;  %v2426_v53 = vrot.slane %v7483_v13, 2 }
  0xf5   : > { %4933 = vmatmul.mubr.msk.f32.gmra.mrb[6].mxu0 %vm316_vm0, %v6551_v21 }
  0xf6   : > { %4935 = vmatprep.mubr.msk.f32.mxu0 %vm316_vm0, %v6557_v34 }
  0xf7   : > { %4656 = vmatmul.mubr.msk.f32.gmra.mrb[24].mxu1 %vm316_vm0, %v6172_v42 }
  0xf8   : > { %4658 = vmatprep.mubr.msk.f32.mxu1 %vm316_vm0, %v6175_v37 }
  0xf9   : > { %4936 = vmatmul.mubr.msk.f32.gmra.mrb[8].mxu0 %vm316_vm0, %v6568_v31 }
  0xfa   : > { %4938 = vmatprep.mubr.msk.f32.mxu0 %vm316_vm0, %v6574_v45  ;;  %v2418_v45 = vrot.slane %v6019_v58, 2 }
  0xfb   : > { %4659 = vmatmul.mubr.msk.f32.gmra.mrb[26].mxu1 %vm316_vm0, %v6186_v38 }
  0xfc   : > { %4661 = vmatprep.mubr.msk.f32.mxu1 %vm316_vm0, %v6189_v47 }
  0xfd   : > { %4939 = vmatmul.mubr.msk.f32.gmra.mrb[10].mxu0 %vm316_vm0, %v6585_v39  ;;  %v2419_v39 = vrot.slane %v6022_v59, 2 }
  0xfe   : > { %4941 = vmatprep.mubr.msk.f32.mxu0 %vm316_vm0, %v6591_v12  ;;  %v2423_v12 = vrot.slane %v6045_v5, 2 }
  0xff   : > { %4662 = vmatmul.mubr.msk.f32.gmra.mrb[28].mxu1 %vm316_vm0, %v6208_v22  ;;  %v6625_v35 = vsel %vm2382_vm2, %v2418_v45, %v2419_v39  ;;  %v6636_v52 = vsel %vm2382_vm2, %v2419_v39, %v2421_v8  ;;  %v7486_v8 = vld [vmem:[#allocation39_spill] sm:$0xff] }
 0x100   : > { %4664 = vmatprep.mubr.msk.f32.mxu1 %vm316_vm0, %v6211_v43  ;;  %7481 = vst [vmem:[#allocation33_spill] sm:$0xff] %v6625_v35  ;;  %7482 = vst [vmem:[#allocation74_spill] sm:$0xff] %v6636_v52  ;;  %v2431_v13 = vrot.slane %v7486_v8, 2 }
 0x101   : > { %4942 = vmatmul.mubr.msk.f32.gmra.mrb[12].mxu0 %vm316_vm0, %v6602_v17  ;;  %v2424_v17 = vrot.slane %v6048_v7, 2 }
 0x102   : > { %4944 = vmatprep.mubr.msk.f32.mxu0 %vm316_vm0, %v6608_v57  ;;  %v2428_v57 = vrot.slane %v6071_v23, 2 }
 0x103   : > { %4665 = vmatmul.mubr.msk.f32.gmra.mrb[30].mxu1 %vm316_vm0, %v6192_v28  ;;  %v6642_v45 = vsel %vm2382_vm2, %v2423_v12, %v2424_v17  ;;  %v6653_v39 = vsel %vm2382_vm2, %v2424_v17, %v2426_v53  ;;  %v7487_v53 = vld [vmem:[#allocation47_spill] sm:$0xff] }
 0x104   : > { %4667 = vmatprep.mubr.msk.f32.mxu1 %vm316_vm0, %v6235_v18  ;;  %7484 = vst [vmem:[#allocation36_spill] sm:$0xff] %v6642_v45  ;;  %7485 = vst [vmem:[#allocation75_spill] sm:$0xff] %v6653_v39  ;;  %v2436_v8 = vrot.slane %v7487_v53, 2  ;;  %v7488_v53 = vld [vmem:[#allocation17_spill] sm:$0xff] }
 0x105   : > { %4945 = vmatmul.mubr.msk.f32.gmra.mrb[14].mxu0 %vm316_vm0, %v6619_v56  ;;  %v2429_v56 = vrot.slane %v6074_v27, 2 }
 0x106   : > { %4947 = vmatprep.mubr.msk.f32.mxu0 %vm316_vm0, %v6625_v35  ;;  %v2433_v35 = vrot.slane %v6112_v55, 2 }
 0x107   : > { %4668 = vmatmul.mubr.msk.f32.gmra.mrb[32].mxu1 %vm316_vm0, %v6214_v26  ;;  %v6659_v12 = vsel %vm2382_vm2, %v2428_v57, %v2429_v56  ;;  %v6670_v17 = vsel %vm2382_vm2, %v2429_v56, %v2431_v13  ;;  %v2443_v13 = vrot.slane %v6143_v11, 2 }
 0x108   : > { %4670 = vmatprep.mubr.msk.f32.mxu1 %vm316_vm0, %v6259_v44 }
 0x109   : > { %4948 = vmatmul.mubr.msk.f32.gmra.mrb[16].mxu0 %vm316_vm0, %v6636_v52  ;;  %v2434_v52 = vrot.slane %v6126_v61, 2 }
 0x10a   : > { %4950 = vmatprep.mubr.msk.f32.mxu0 %vm316_vm0, %v6642_v45  ;;  %v2438_v45 = vrot.slane %v6129_v63, 2 }
 0x10b   : > { %4671 = vmatmul.mubr.msk.f32.gmra.mrb[34].mxu1 %vm316_vm0, %v6238_v36  ;;  %v6676_v57 = vsel %vm2382_vm2, %v2433_v35, %v2434_v52  ;;  %v6687_v56 = vsel %vm2382_vm2, %v2434_v52, %v2436_v8  ;;  %v2449_v8 = vrot.slane %v6172_v42, 2 }
 0x10c   : > { %4673 = vmatprep.mubr.msk.f32.mxu1 %vm316_vm0, %v6283_v20 }
 0x10d   : > { %4951 = vmatmul.mubr.msk.f32.gmra.mrb[44].mxu0 %vm316_vm0, %v6653_v39  ;;  %v2439_v39 = vrot.slane %v6140_v0, 2 }
 0x10e   : > { %4953 = vmatprep.mubr.msk.f32.mxu0 %vm316_vm0, %v6659_v12 }
 0x10f   : > { %4674 = vmatmul.mubr.msk.f32.gmra.mrb[46].mxu1 %vm316_vm0, %v6262_v2  ;;  %v6693_v35 = vsel %vm2382_vm2, %v2438_v45, %v2439_v39  ;;  %v2448_v45 = vrot.slane %v6160_v30, 2 }
 0x110   : > { %4678 = vmatprep.mubr.msk.f32.mxu1 %vm316_vm0, %v5853_v1  ;;  %v2441_v1 = vrot.slane %v6318_v46, 2  ;;  %v7489_v46 = vld [vmem:[#allocation51_spill] sm:$0xff] }
 0x111   : > { %4954 = vmatmul.mubr.msk.f32.gmra.mrb[46].mxu0 %vm316_vm0, %v6670_v17 }
 0x112   : > { %4956 = vmatprep.mubr.msk.f32.mxu0 %vm316_vm0, %v6676_v57 }
 0x113   : > { %4679 = vmatmul.mubr.msk.f32.vlgmr.msra.gmra.mrb[48].mxu1 %vm316_vm0, %v5860_v3  ;;  %v2444_v3 = vrot.slane %v6157_v19, 2 }
 0x114   : > { %4681 = vmatprep.mubr.msk.f32.mxu1 %vm316_vm0, %v5870_v9  ;;  %4739 = vmatpush3.msra.mxu1 %v6322_v54  ;;  %v6706_v9 = vsel %vm2382_vm2, %v2439_v39, %v2441_v1  ;;  %v2446_v54 = vrot.slane %v7489_v46, 2  ;;  %v6729_v1 = vsel %vm2382_vm2, %v2448_v45, %v2449_v8  ;;  %v2458_v46 = vrot.slane %v6189_v47, 2 }
 0x115   : > { %5110 = vmatprep.subr.mxu1 %v7488_v53  ;;  %4957 = vmatmul.mubr.msk.f32.gmra.mrb[28].mxu0 %vm316_vm0, %v6687_v56  ;;  %v6712_v52 = vsel %vm2382_vm2, %v2443_v13, %v2444_v3  ;;  %v2453_v13 = vrot.slane %v6175_v37, 2  ;;  %v2454_v53 = vrot.slane %v6186_v38, 2  ;;  %v2463_v45 = vrot.slane %v6211_v43, 2 }
 0x116   : > { %4959 = vmatprep.mubr.msk.f32.mxu0 %vm316_vm0, %v6693_v35 }
 0x117   : > { %4682 = vmatmul.mubr.msk.f32.gmra.mrb[50].mxu1 %vm316_vm0, %v5873_v10  ;;  %v6723_v10 = vsel %vm2382_vm2, %v2444_v3, %v2446_v54  ;;  %v6746_v3 = vsel %vm2382_vm2, %v2453_v13, %v2454_v53  ;;  %v2459_v54 = vrot.slane %v6208_v22, 2  ;;  %v2478_v13 = vrot.slane %v6283_v20, 2 }
 0x118   : > { %4684 = vmatprep.mubr.msk.f32.mxu1 %vm316_vm0, %v5884_v15  ;;  %v7490_v15 = vld [vmem:[#allocation54_spill] sm:$0xff] }
 0x119   : > { %4960 = vmatmul.mubr.msk.f32.gmra.mrb[30].mxu0 %vm316_vm0, %v6706_v9  ;;  %v2451_v39 = vrot.slane %v7490_v15, 2  ;;  %v2473_v15 = vrot.slane %v6259_v44, 2 }
 0x11a   : > { %4962 = vmatprep.mubr.msk.f32.mxu0 %vm316_vm0, %v6712_v52 }
 0x11b   : > { %4685 = vmatmul.mubr.msk.f32.gmra.mrb[0].mxu1 %vm316_vm0, %v5887_v16  ;;  %v6740_v16 = vsel %vm2382_vm2, %v2449_v8, %v2451_v39  ;;  %v2468_v8 = vrot.slane %v6235_v18, 2  ;;  %v7493_v39 = vld [vmem:[#allocation43_spill] sm:$0xff] }
 0x11c   : > { %4687 = vmatprep.mubr.msk.f32.mxu1 %vm316_vm0, %v5909_v24  ;;  %v2456_v24 = vrot.slane %v6382_v48, 2  ;;  %v6763_v48 = vsel %vm2382_vm2, %v2458_v46, %v2459_v54  ;;  %v7515_v46 = vld [vmem:[#allocation24_spill] sm:$0xff] }
 0x11d   : > { %4963 = vmatmul.mubr.msk.f32.gmra.mrb[32].mxu0 %vm316_vm0, %v6723_v10 }
 0x11e   : > { %4965 = vmatprep.mubr.msk.f32.mxu0 %vm316_vm0, %v6729_v1 }
 0x11f   : > { %4688 = vmatmul.mubr.msk.f32.gmra.mrb[2].mxu1 %vm316_vm0, %v5912_v25  ;;  %v6757_v25 = vsel %vm2382_vm2, %v2454_v53, %v2456_v24  ;;  %v7495_v53 = vld [vmem:[#allocation44_spill] sm:$0xff]  ;;  %v7497_v24 = vld [vmem:[#allocation45_spill] sm:$0xff] }
 0x120   : > { %4690 = vmatprep.mubr.msk.f32.mxu1 %vm316_vm0, %v5935_v32  ;;  %v2461_v32 = vrot.slane %v6402_v62, 2 }
 0x121   : > { %4966 = vmatmul.mubr.msk.f32.gmra.mrb[34].mxu0 %vm316_vm0, %v6740_v16 }
 0x122   : > { %4968 = vmatprep.mubr.msk.f32.mxu0 %vm316_vm0, %v6746_v3 }
 0x123   : > { %4691 = vmatmul.mubr.msk.f32.gmra.mrb[4].mxu1 %vm316_vm0, %v5938_v33  ;;  %v6773_v33 = vsel %vm2382_vm2, %v2459_v54, %v2461_v32 }
 0x124   : > { %4693 = vmatprep.mubr.msk.f32.mxu1 %vm316_vm0, %v5961_v40  ;;  %v7491_v40 = vrot.slane %v6192_v28, 2 }
 0x125   : > { %4969 = vmatmul.mubr.msk.f32.gmra.mrb[36].mxu0 %vm316_vm0, %v6757_v25 }
 0x126   : > { %4971 = vmatprep.mubr.msk.f32.mxu0 %vm316_vm0, %v6763_v48  ;;  %v6780_v62 = vsel %vm2382_vm2, %v2463_v45, %v7491_v40  ;;  %v7516_v45 = vld [vmem:[#allocation25_spill] sm:$0xff]  ;;  %v7517_v40 = vld [vmem:[#allocation26_spill] sm:$0xff] }
 0x127   : > { %4694 = vmatmul.mubr.msk.f32.gmra.mrb[6].mxu1 %vm316_vm0, %v5964_v41  ;;  %v7492_v41 = vrot.slane %v6214_v26, 2 }
 0x128   : > { %4696 = vmatprep.mubr.msk.f32.mxu1 %vm316_vm0, %v5990_v49 }
 0x129   : > { %4972 = vmatmul.mubr.msk.f32.gmra.mrb[38].mxu0 %vm316_vm0, %v6773_v33  ;;  %v6794_v49 = vsel %vm2382_vm2, %v2468_v8, %v7492_v41 }
 0x12a   : > { %4974 = vmatprep.mubr.msk.f32.mxu0 %vm316_vm0, %v6780_v62 }
 0x12b   : > { %4697 = vmatmul.mubr.msk.f32.gmra.mrb[8].mxu1 %vm316_vm0, %v5993_v50  ;;  %v7494_v50 = vrot.slane %v6238_v36, 2 }
 0x12c   : > { %4699 = vmatprep.mubr.msk.f32.mxu1 %vm316_vm0, %v6019_v58 }
 0x12d   : > { %4975 = vmatmul.mubr.msk.f32.gmra.mrb[40].mxu0 %vm316_vm0, %v7493_v39  ;;  %v6808_v58 = vsel %vm2382_vm2, %v2473_v15, %v7494_v50  ;;  %v7518_v15 = vld [vmem:[#allocation28_spill] sm:$0xff]  ;;  %v7519_v50 = vld [vmem:[#allocation29_spill] sm:$0xff] }
 0x12e   : > { %4977 = vmatprep.mubr.msk.f32.mxu0 %vm316_vm0, %v6794_v49 }
 0x12f   : > { %4700 = vmatmul.mubr.msk.f32.gmra.mrb[10].mxu1 %vm316_vm0, %v6022_v59  ;;  %v7496_v59 = vrot.slane %v6262_v2, 2 }
 0x130   : > { %4702 = vmatprep.mubr.msk.f32.mxu1 %vm316_vm0, %v6045_v5 }
 0x131   : > { %4978 = vmatmul.mubr.msk.f32.gmra.mrb[42].mxu0 %vm316_vm0, %v7495_v53  ;;  %v6822_v5 = vsel %vm2382_vm2, %v2478_v13, %v7496_v59 }
 0x132   : > { %4980 = vmatprep.mubr.msk.f32.mxu0 %vm316_vm0, %v6808_v58 }
 0x133   : > { %4703 = vmatmul.mubr.msk.f32.gmra.mrb[12].mxu1 %vm316_vm0, %v6048_v7  ;;  %v7498_v7 = vld [vmem:[#allocation46_spill] sm:$0xff] }
 0x134   : > { %4705 = vmatprep.mubr.msk.f32.mxu1 %vm316_vm0, %v6071_v23 }
 0x135   : > { %4981 = vmatmul.mubr.msk.f32.gmra.mrb[48].mxu0 %vm316_vm0, %v7497_v24 }
 0x136   : > { %4983 = vmatprep.mubr.msk.f32.mxu0 %vm316_vm0, %v6822_v5 }
 0x137   : > { %4706 = vmatmul.mubr.msk.f32.gmra.mrb[14].mxu1 %vm316_vm0, %v6074_v27 }
 0x138   : > { %4708 = vmatprep.mubr.msk.f32.mxu1 %vm316_vm0, %v6112_v55  ;;  %v7499_v55 = vld [vmem:[#allocation70_spill] sm:$0xff] }
 0x139   : > { %4984 = vmatmul.mubr.msk.f32.gmra.mrb[50].mxu0 %vm316_vm0, %v7498_v7 }
 0x13a   : > { %4988 = vmatprep.mubr.msk.f32.mxu0 %vm316_vm0, %v6502_v60 }
 0x13b   : > { %4709 = vmatmul.mubr.msk.f32.gmra.mrb[52].mxu1 %vm316_vm0, %v6126_v61  ;;  %v7500_v61 = vld [vmem:[#allocation71_spill] sm:$0xff] }
 0x13c   : > { %4711 = vmatprep.mubr.msk.f32.mxu1 %vm316_vm0, %v6129_v63  ;;  %v7501_v63 = vld [vmem:[#allocation27_spill] sm:$0xff] }
 0x13d   : > { %4989 = vmatmul.mubr.msk.f32.vlgmr.msra.gmra.mrb[52].mxu0 %vm316_vm0, %v6513_v6 }
 0x13e   : > { %5049 = vmatpush3.msra.mxu0 %v6525_v29  ;;  %4991 = vmatprep.mubr.msk.f32.mxu0 %vm316_vm0, %v6521_v51 }
 0x13f   : > { %4712 = vmatmul.mubr.msk.f32.gmra.mrb[54].mxu1 %vm316_vm0, %v6140_v0  ;;  %v7502_v0 = vld [vmem:[#allocation72_spill] sm:$0xff] }
 0x140   : > { %4714 = vmatprep.mubr.msk.f32.mxu1 %vm316_vm0, %v6143_v11  ;;  %v7503_v11 = vld [vmem:[#allocation30_spill] sm:$0xff] }
 0x141   : > { %4992 = vmatmul.mubr.msk.f32.gmra.mrb[2].mxu0 %vm316_vm0, %v6531_v14 }
 0x142   : > { %4994 = vmatprep.mubr.msk.f32.mxu0 %vm316_vm0, %v6539_v4 }
 0x143   : > { %4715 = vmatmul.mubr.msk.f32.gmra.mrb[20].mxu1 %vm316_vm0, %v6157_v19  ;;  %v7504_v19 = vld [vmem:[#allocation73_spill] sm:$0xff] }
 0x144   : > { %4717 = vmatprep.mubr.msk.f32.mxu1 %vm316_vm0, %v6160_v30  ;;  %v7508_v30 = vld [vmem:[#allocation75_spill] sm:$0xff] }
 0x145   : > { %4995 = vmatmul.mubr.msk.f32.gmra.mrb[4].mxu0 %vm316_vm0, %v6551_v21 }
 0x146   : > { %4997 = vmatprep.mubr.msk.f32.mxu0 %vm316_vm0, %v6557_v34 }
 0x147   : > { %4718 = vmatmul.mubr.msk.f32.gmra.mrb[22].mxu1 %vm316_vm0, %v6172_v42  ;;  %v7510_v42 = vld [vmem:[#allocation19_spill] sm:$0xff] }
 0x148   : > { %4720 = vmatprep.mubr.msk.f32.mxu1 %vm316_vm0, %v6175_v37  ;;  %v4804_v23 = vpop.f32.mrb[0].mxu0  ;;  %v7511_v37 = vld [vmem:[#allocation20_spill] sm:$0xff] }
 0x149   : > { %v1868_v27 = vpop.f32.mrb[1].mxu0  ;;  %4998 = vmatmul.mubr.msk.f32.gmra.mrb[6].mxu0 %vm316_vm0, %v6568_v31  ;;  %v7520_v23 = vld [vmem:[#allocation31_spill] sm:$0xff] }
 0x14a   : > { %5000 = vmatprep.mubr.msk.f32.mxu0 %vm316_vm0, %v7499_v55  ;;  %v7521_v27 = vld [vmem:[#allocation32_spill] sm:$0xff] }
 0x14b   : > { %4721 = vmatmul.mubr.msk.f32.gmra.mrb[24].mxu1 %vm316_vm0, %v6186_v38  ;;  %v5458_v38 = vld [vmem:[#allocation5 + $0x20] sm:$0xff] }
 0x14c   : > { %4723 = vmatprep.mubr.msk.f32.mxu1 %vm316_vm0, %v6189_v47  ;;  %v7512_v47 = vld [vmem:[#allocation21_spill] sm:$0xff] }
 0x14d   : > { %5001 = vmatmul.mubr.msk.f32.gmra.mrb[8].mxu0 %vm316_vm0, %v7500_v61 }
 0x14e   : > { %5003 = vmatprep.mubr.msk.f32.mxu0 %vm316_vm0, %v7501_v63 }
 0x14f   : > { %4724 = vmatmul.mubr.msk.f32.gmra.mrb[26].mxu1 %vm316_vm0, %v6208_v22  ;;  %v7505_v22 = vld [vmem:[#allocation33_spill] sm:$0xff] }
 0x150   : > { %4726 = vmatprep.mubr.msk.f32.mxu1 %vm316_vm0, %v6211_v43  ;;  %v7506_v43 = vld [vmem:[#allocation74_spill] sm:$0xff] }
 0x151   : > { %5004 = vmatmul.mubr.msk.f32.gmra.mrb[10].mxu0 %vm316_vm0, %v7502_v0 }
 0x152   : > { %5006 = vmatprep.mubr.msk.f32.mxu0 %vm316_vm0, %v7503_v11 }
 0x153   : > { %4727 = vmatmul.mubr.msk.f32.gmra.mrb[28].mxu1 %vm316_vm0, %v6192_v28  ;;  %v7507_v28 = vld [vmem:[#allocation36_spill] sm:$0xff] }
 0x154   : > { %4729 = vmatprep.mubr.msk.f32.mxu1 %vm316_vm0, %v6235_v18 }
 0x155   : > { %5007 = vmatmul.mubr.msk.f32.gmra.mrb[12].mxu0 %vm316_vm0, %v7504_v19 }
 0x156   : > { %5009 = vmatprep.mubr.msk.f32.mxu0 %vm316_vm0, %v7505_v22 }
 0x157   : > { %4730 = vmatmul.mubr.msk.f32.gmra.mrb[30].mxu1 %vm316_vm0, %v6214_v26  ;;  %v7509_v26 = vld [vmem:[#allocation18_spill] sm:$0xff] }
 0x158   : > { %4732 = vmatprep.mubr.msk.f32.mxu1 %vm316_vm0, %v6259_v44 }
 0x159   : > { %5010 = vmatmul.mubr.msk.f32.gmra.mrb[14].mxu0 %vm316_vm0, %v7506_v43 }
 0x15a   : > { %5012 = vmatprep.mubr.msk.f32.mxu0 %vm316_vm0, %v7507_v28 }
 0x15b   : > { %4733 = vmatmul.mubr.msk.f32.gmra.mrb[32].mxu1 %vm316_vm0, %v6238_v36  ;;  %v7513_v36 = vld [vmem:[#allocation22_spill] sm:$0xff] }
 0x15c   : > { %4735 = vmatprep.mubr.msk.f32.mxu1 %vm316_vm0, %v6283_v20  ;;  %v7514_v20 = vld [vmem:[#allocation23_spill] sm:$0xff] }
 0x15d   : > { %5013 = vmatmul.mubr.msk.f32.gmra.mrb[16].mxu0 %vm316_vm0, %v7508_v30 }
 0x15e   : > { %5015 = vmatprep.mubr.msk.f32.mxu0 %vm316_vm0, %v6659_v12 }
 0x15f   : > { %4736 = vmatmul.mubr.msk.f32.gmra.mrb[34].mxu1 %vm316_vm0, %v6262_v2 }
 0x160   : > { %4740 = vmatprep.mubr.msk.f32.mxu1 %vm316_vm0, %v7509_v26  ;;  %v7522_v26 = vld [vmem:[#allocation34_spill] sm:$0xff] }
 0x161   : > { %5016 = vmatmul.mubr.msk.f32.gmra.mrb[54].mxu0 %vm316_vm0, %v6670_v17 }
 0x162   : > { %5018 = vmatprep.mubr.msk.f32.mxu0 %vm316_vm0, %v6676_v57 }
 0x163   : > { %4741 = vmatmul.mubr.msk.f32.vlgmr.msra.gmra.mrb[0].mxu1 %vm316_vm0, %v7510_v42  ;;  %v7523_v42 = vld [vmem:[#allocation35_spill] sm:$0xff] }
 0x164   : > { %4743 = vmatprep.mubr.msk.f32.mxu1 %vm316_vm0, %v7511_v37  ;;  %5111 = vmatpush3.msra.mxu1 %v5458_v38  ;;  %v7524_v37 = vld [vmem:[#allocation37_spill] sm:$0xff]  ;;  %v7525_v38 = vld [vmem:[#allocation38_spill] sm:$0xff] }
 0x165   : > { %5019 = vmatmul.mubr.msk.f32.gmra.mrb[56].mxu0 %vm316_vm0, %v6687_v56 }
 0x166   : > { %v4580_v2 = vpop.f32.mrb[16].mxu1  ;;  %5021 = vmatprep.mubr.msk.f32.mxu0 %vm316_vm0, %v6693_v35 }
 0x167   : > { %4744 = vmatmul.mubr.msk.f32.gmra.mrb[2].mxu1 %vm316_vm0, %v7512_v47  ;;  %v583_v18 = vpop.f32.mrb[17].mxu1  ;;  %v7526_v2 = vld [vmem:[#allocation40_spill] sm:$0xff]  ;;  %v7527_v47 = vld [vmem:[#allocation41_spill] sm:$0xff] }
 0x168   : > { %4746 = vmatprep.mubr.msk.f32.mxu1 %vm316_vm0, %v7513_v36  ;;  %v7528_v18 = vld [vmem:[#allocation42_spill] sm:$0xff]  ;;  %v7529_v36 = vld [vmem:[#allocation48_spill] sm:$0xff] }
 0x169   : > { %5022 = vmatmul.mubr.msk.f32.gmra.mrb[28].mxu0 %vm316_vm0, %v6706_v9 }
 0x16a   : > { %v4583_v44 = vpop.f32.mrb[18].mxu1  ;;  %5024 = vmatprep.mubr.msk.f32.mxu0 %vm316_vm0, %v6712_v52 }
 0x16b   : > { %4747 = vmatmul.mubr.msk.f32.gmra.mrb[4].mxu1 %vm316_vm0, %v7514_v20  ;;  %v591_v29 = vpop.f32.mrb[19].mxu1  ;;  %v7530_v44 = vld [vmem:[#allocation49_spill] sm:$0xff]  ;;  %v7531_v20 = vld [vmem:[#allocation50_spill] sm:$0xff] }
 0x16c   : > { %4749 = vmatprep.mubr.msk.f32.mxu1 %vm316_vm0, %v7515_v46  ;;  %v4831_v54 = vpop.f32.mrb[18].mxu0  ;;  %v7532_v46 = vld [vmem:[#allocation52_spill] sm:$0xff] }
 0x16d   : > { %v1956_v32 = vpop.f32.mrb[19].mxu0  ;;  %5025 = vmatmul.mubr.msk.f32.gmra.mrb[30].mxu0 %vm316_vm0, %v6723_v10 }
 0x16e   : > { %5027 = vmatprep.mubr.msk.f32.mxu0 %vm316_vm0, %v6729_v1  ;;  %v7533_v32 = vld [vmem:[#allocation53_spill] sm:$0xff] }
 0x16f   : > { %4750 = vmatmul.mubr.msk.f32.gmra.mrb[6].mxu1 %vm316_vm0, %v7516_v45  ;;  %v7534_v45 = vld [vmem:[#allocation55_spill] sm:$0xff] }
 0x170   : > { %4752 = vmatprep.mubr.msk.f32.mxu1 %vm316_vm0, %v7517_v40  ;;  %v4866_v8 = vpop.f32.mrb[20].mxu0  ;;  %v7535_v40 = vld [vmem:[#allocation56_spill] sm:$0xff] }
 0x171   : > { %v2159_v41 = vpop.f32.mrb[21].mxu0  ;;  %5028 = vmatmul.mubr.msk.f32.gmra.mrb[32].mxu0 %vm316_vm0, %v6740_v16  ;;  %v7536_v8 = vld [vmem:[#allocation57_spill] sm:$0xff] }
 0x172   : > { %5030 = vmatprep.mubr.msk.f32.mxu0 %vm316_vm0, %v6746_v3  ;;  %v7537_v41 = vld [vmem:[#allocation58_spill] sm:$0xff] }
 0x173   : > { %4753 = vmatmul.mubr.msk.f32.gmra.mrb[8].mxu1 %vm316_vm0, %v7518_v15 }
 0x174   : > { %4755 = vmatprep.mubr.msk.f32.mxu1 %vm316_vm0, %v7519_v50  ;;  %v4869_v13 = vpop.f32.mrb[22].mxu0  ;;  %v7538_v50 = vld [vmem:[#allocation59_spill] sm:$0xff] }
 0x175   : > { %v2167_v59 = vpop.f32.mrb[23].mxu0  ;;  %5031 = vmatmul.mubr.msk.f32.gmra.mrb[34].mxu0 %vm316_vm0, %v6757_v25 }
 0x176   : > { %5033 = vmatprep.mubr.msk.f32.mxu0 %vm316_vm0, %v6763_v48  ;;  %v7540_v59 = vld [vmem:[#allocation61_spill] sm:$0xff] }
 0x177   : > { %4756 = vmatmul.mubr.msk.f32.gmra.mrb[10].mxu1 %vm316_vm0, %v7520_v23  ;;  %v7543_v23 = vld [vmem:[#allocation64_spill] sm:$0xff] }
 0x178   : > { %4758 = vmatprep.mubr.msk.f32.mxu1 %vm316_vm0, %v7521_v27 }
 0x179   : > { %5034 = vmatmul.mubr.msk.f32.gmra.mrb[36].mxu0 %vm316_vm0, %v6773_v33 }
 0x17a   : > { %5036 = vmatprep.mubr.msk.f32.mxu0 %vm316_vm0, %v6780_v62 }
 0x17b   : > { %4759 = vmatmul.mubr.msk.f32.gmra.mrb[12].mxu1 %vm316_vm0, %v7522_v26 }
 0x17c   : > { %4761 = vmatprep.mubr.msk.f32.mxu1 %vm316_vm0, %v7523_v42 }
 0x17d   : > { %5037 = vmatmul.mubr.msk.f32.gmra.mrb[38].mxu0 %vm316_vm0, %v7493_v39 }
 0x17e   : > { %5039 = vmatprep.mubr.msk.f32.mxu0 %vm316_vm0, %v6794_v49 }
 0x17f   : > { %4762 = vmatmul.mubr.msk.f32.gmra.mrb[14].mxu1 %vm316_vm0, %v7524_v37 }
 0x180   : > { %4764 = vmatprep.mubr.msk.f32.mxu1 %vm316_vm0, %v7525_v38 }
 0x181   : > { %5040 = vmatmul.mubr.msk.f32.gmra.mrb[40].mxu0 %vm316_vm0, %v7495_v53 }
 0x182   : > { %5042 = vmatprep.mubr.msk.f32.mxu0 %vm316_vm0, %v6808_v58 }
 0x183   : > { %4765 = vmatmul.mubr.msk.f32.gmra.mrb[56].mxu1 %vm316_vm0, %v7526_v2 }
 0x184   : > { %4767 = vmatprep.mubr.msk.f32.mxu1 %vm316_vm0, %v7527_v47 }
 0x185   : > { %5043 = vmatmul.mubr.msk.f32.gmra.mrb[42].mxu0 %vm316_vm0, %v7497_v24 }
 0x186   : > { %5045 = vmatprep.mubr.msk.f32.mxu0 %vm316_vm0, %v6822_v5 }
 0x187   : > { %4768 = vmatmul.mubr.msk.f32.gmra.mrb[58].mxu1 %vm316_vm0, %v7528_v18 }
 0x188   : > { %4770 = vmatprep.mubr.msk.f32.mxu1 %vm316_vm0, %v7529_v36 }
 0x189   : > { %5046 = vmatmul.mubr.msk.f32.gmra.mrb[58].mxu0 %vm316_vm0, %v7498_v7 }
 0x18a   : > { %5050 = vmatprep.mubr.msk.f32.mxu0 %vm316_vm0, %v6502_v60 }
 0x18b   : > { %4771 = vmatmul.mubr.msk.f32.gmra.mrb[20].mxu1 %vm316_vm0, %v7530_v44 }
 0x18c   : > { %4773 = vmatprep.mubr.msk.f32.mxu1 %vm316_vm0, %v7531_v20 }
 0x18d   : > { %5051 = vmatmul.mubr.msk.f32.vlgmr.msra.gmra.mrb[60].mxu0 %vm316_vm0, %v6513_v6 }
 0x18e   : > { %v4610_v29 = vpop.f32.mrb[36].mxu1  ;;  %5053 = vmatprep.mubr.msk.f32.mxu0 %vm316_vm0, %v6521_v51 }
 0x18f   : > { %4774 = vmatmul.mubr.msk.f32.gmra.mrb[22].mxu1 %vm316_vm0, %v7532_v46  ;;  %v679_v54 = vpop.f32.mrb[37].mxu1 }
 0x190   : > { %4776 = vmatprep.mubr.msk.f32.mxu1 %vm316_vm0, %v7533_v32 }
 0x191   : > { %5054 = vmatmul.mubr.msk.f32.gmra.mrb[62].mxu0 %vm316_vm0, %v6531_v14 }
 0x192   : > { %v4613_v60 = vpop.f32.mrb[38].mxu1  ;;  %5056 = vmatprep.mubr.msk.f32.mxu0 %vm316_vm0, %v6539_v4 }
 0x193   : > { %4777 = vmatmul.mubr.msk.f32.gmra.mrb[24].mxu1 %vm316_vm0, %v7534_v45  ;;  %v687_v6 = vpop.f32.mrb[39].mxu1 }
 0x194   : > { %4779 = vmatprep.mubr.msk.f32.mxu1 %vm316_vm0, %v7535_v40 }
 0x195   : > { %5057 = vmatmul.mubr.msk.f32.gmra.mrb[2].mxu0 %vm316_vm0, %v6551_v21  ;;  %v7539_v21 = vld [vmem:[#allocation60_spill] sm:$0xff] }
 0x196   : > { %v4618_v51 = vpop.f32.mrb[40].mxu1  ;;  %5059 = vmatprep.mubr.msk.f32.mxu0 %vm316_vm0, %v6557_v34 }
 0x197   : > { %4780 = vmatmul.mubr.msk.f32.gmra.mrb[26].mxu1 %vm316_vm0, %v7536_v8  ;;  %v794_v14 = vpop.f32.mrb[41].mxu1 }
 0x198   : > { %4782 = vmatprep.mubr.msk.f32.mxu1 %vm316_vm0, %v7537_v41  ;;  %v4896_v15 = vpop.f32.mrb[24].mxu0 }
 0x199   : > { %v2255_v4 = vpop.f32.mrb[25].mxu0  ;;  %5060 = vmatmul.mubr.msk.f32.gmra.mrb[4].mxu0 %vm316_vm0, %v6568_v31  ;;  %v7541_v31 = vld [vmem:[#allocation62_spill] sm:$0xff] }
 0x19a   : > { %5062 = vmatprep.mubr.msk.f32.mxu0 %vm316_vm0, %v7499_v55  ;;  %v7542_v55 = vld [vmem:[#allocation63_spill] sm:$0xff] }
 0x19b   : > { %4783 = vmatmul.mubr.msk.f32.gmra.mrb[28].mxu1 %vm316_vm0, %v7538_v50 }
 0x19c   : > { %4785 = vmatprep.mubr.msk.f32.mxu1 %vm316_vm0, %v7539_v21  ;;  %v4899_v13 = vpop.f32.mrb[26].mxu0 }
 0x19d   : > { %v2263_v34 = vpop.f32.mrb[27].mxu0  ;;  %5063 = vmatmul.mubr.msk.f32.gmra.mrb[6].mxu0 %vm316_vm0, %v7500_v61  ;;  %v7544_v61 = vld [vmem:[#allocation65_spill] sm:$0xff] }
 0x19e   : > { %5065 = vmatprep.mubr.msk.f32.mxu0 %vm316_vm0, %v7501_v63  ;;  %v7545_v63 = vld [vmem:[#allocation66_spill] sm:$0xff] }
 0x19f   : > { %4786 = vmatmul.mubr.msk.f32.gmra.mrb[30].mxu1 %vm316_vm0, %v7540_v59 }
 0x1a0   : > { %4788 = vmatprep.mubr.msk.f32.mxu1 %vm316_vm0, %v7541_v31 }
 0x1a1   : > { %5066 = vmatmul.mubr.msk.f32.gmra.mrb[8].mxu0 %vm316_vm0, %v7502_v0  ;;  %v7546_v0 = vld [vmem:[#allocation67_spill] sm:$0xff] }
 0x1a2   : > { %5068 = vmatprep.mubr.msk.f32.mxu0 %vm316_vm0, %v7503_v11  ;;  %v7547_v11 = vld [vmem:[#allocation68_spill] sm:$0xff] }
 0x1a3   : > { %4789 = vmatmul.mubr.msk.f32.gmra.mrb[32].mxu1 %vm316_vm0, %v7542_v55 }
 0x1a4   : > { %4791 = vmatprep.mubr.msk.f32.mxu1 %vm316_vm0, %v7543_v23 }
 0x1a5   : > { %5069 = vmatmul.mubr.msk.f32.gmra.mrb[10].mxu0 %vm316_vm0, %v7504_v19  ;;  %v7548_v19 = vld [vmem:[#allocation69_spill] sm:$0xff] }
 0x1a6   : > { %5071 = vmatprep.mubr.msk.f32.mxu0 %vm316_vm0, %v7505_v22 }
 0x1a7   : > { %4792 = vmatmul.mubr.msk.f32.gmra.mrb[34].mxu1 %vm316_vm0, %v7544_v61 }
 0x1a8   : > { %4794 = vmatprep.mubr.msk.f32.mxu1 %vm316_vm0, %v7545_v63 }
 0x1a9   : > { %5072 = vmatmul.mubr.msk.f32.gmra.mrb[12].mxu0 %vm316_vm0, %v7506_v43 }
 0x1aa   : > { %5074 = vmatprep.mubr.msk.f32.mxu0 %vm316_vm0, %v7507_v28 }
 0x1ab   : > { %4795 = vmatmul.mubr.msk.f32.gmra.mrb[60].mxu1 %vm316_vm0, %v7546_v0 }
 0x1ac   : > { %4797 = vmatprep.mubr.msk.f32.mxu1 %vm316_vm0, %v7547_v11 }
 0x1ad   : > { %5075 = vmatmul.mubr.msk.f32.gmra.mrb[14].mxu0 %vm316_vm0, %v7508_v30 }
 0x1ae   : > { %5077 = vmatprep.mubr.msk.f32.mxu0 %vm316_vm0, %v6659_v12 }
 0x1af   : > { %4798 = vmatmul.mubr.msk.f32.gmra.mrb[62].mxu1 %vm316_vm0, %v7548_v19 }
 0x1b0   : > { %4832 = vmatprep.mubr.msk.f32.mxu1 %vm316_vm0, %v7529_v36 }
 0x1b1   : > { %5078 = vmatmul.mubr.msk.f32.gmra.mrb[16].mxu0 %vm316_vm0, %v6670_v17 }
 0x1b2   : > { %5080 = vmatprep.mubr.msk.f32.mxu0 %vm316_vm0, %v6676_v57 }
 0x1b3   : > { %4833 = vmatmul.mubr.msk.f32.vlgmr.msra.gmra.mrb[64].mxu1 %vm316_vm0, %v7530_v44 }
 0x1b4   : > { %4835 = vmatprep.mubr.msk.f32.mxu1 %vm316_vm0, %v7531_v20 }
 0x1b5   : > { %5081 = vmatmul.mubr.msk.f32.gmra.mrb[64].mxu0 %vm316_vm0, %v6687_v56 }
 0x1b6   : > { %5083 = vmatprep.mubr.msk.f32.mxu0 %vm316_vm0, %v6693_v35 }
 0x1b7   : > { %4836 = vmatmul.mubr.msk.f32.gmra.mrb[20].mxu1 %vm316_vm0, %v7532_v46 }
 0x1b8   : > { %4838 = vmatprep.mubr.msk.f32.mxu1 %vm316_vm0, %v7533_v32 }
 0x1b9   : > { %5084 = vmatmul.mubr.msk.f32.gmra.mrb[66].mxu0 %vm316_vm0, %v6706_v9 }
 0x1ba   : > { %v4645_v12 = vpop.f32.mrb[42].mxu1  ;;  %5086 = vmatprep.mubr.msk.f32.mxu0 %vm316_vm0, %v6712_v52 }
 0x1bb   : > { %4839 = vmatmul.mubr.msk.f32.gmra.mrb[22].mxu1 %vm316_vm0, %v7534_v45  ;;  %v882_v17 = vpop.f32.mrb[43].mxu1 }
 0x1bc   : > { %4841 = vmatprep.mubr.msk.f32.mxu1 %vm316_vm0, %v7535_v40 }
 0x1bd   : > { %5087 = vmatmul.mubr.msk.f32.gmra.mrb[28].mxu0 %vm316_vm0, %v6723_v10 }
 0x1be   : > { %v4648_v57 = vpop.f32.mrb[44].mxu1  ;;  %5089 = vmatprep.mubr.msk.f32.mxu0 %vm316_vm0, %v6729_v1 }
 0x1bf   : > { %4842 = vmatmul.mubr.msk.f32.gmra.mrb[24].mxu1 %vm316_vm0, %v7536_v8  ;;  %v890_v56 = vpop.f32.mrb[45].mxu1 }
 0x1c0   : > { %4844 = vmatprep.mubr.msk.f32.mxu1 %vm316_vm0, %v7537_v41 }
 0x1c1   : > { %5090 = vmatmul.mubr.msk.f32.gmra.mrb[30].mxu0 %vm316_vm0, %v6740_v16 }
 0x1c2   : > { %5092 = vmatprep.mubr.msk.f32.mxu0 %vm316_vm0, %v6746_v3 }
 0x1c3   : > { %4845 = vmatmul.mubr.msk.f32.gmra.mrb[26].mxu1 %vm316_vm0, %v7538_v50 }
 0x1c4   : > { %4847 = vmatprep.mubr.msk.f32.mxu1 %vm316_vm0, %v7539_v21 }
 0x1c5   : > { %5093 = vmatmul.mubr.msk.f32.gmra.mrb[32].mxu0 %vm316_vm0, %v6757_v25 }
 0x1c6   : > { %5095 = vmatprep.mubr.msk.f32.mxu0 %vm316_vm0, %v6763_v48 }
 0x1c7   : > { %4848 = vmatmul.mubr.msk.f32.gmra.mrb[28].mxu1 %vm316_vm0, %v7540_v59  ;;  %v7170_v59 = vld [vmem:[#allocation7] ss:$0 sm:$0xff] }
 0x1c8   : > { %4850 = vmatprep.mubr.msk.f32.mxu1 %vm316_vm0, %v7541_v31 }
 0x1c9   : > { %5096 = vmatmul.mubr.msk.f32.gmra.mrb[34].mxu0 %vm316_vm0, %v6773_v33 }
 0x1ca   : > { %5098 = vmatprep.mubr.msk.f32.mxu0 %vm316_vm0, %v6780_v62 }
 0x1cb   : > { %4851 = vmatmul.mubr.msk.f32.gmra.mrb[30].mxu1 %vm316_vm0, %v7542_v55 }
 0x1cc   : > { %4853 = vmatprep.mubr.msk.f32.mxu1 %vm316_vm0, %v7543_v23 }
 0x1cd   : > { %5099 = vmatmul.mubr.msk.f32.gmra.mrb[36].mxu0 %vm316_vm0, %v7493_v39 }
 0x1ce   : > { %5101 = vmatprep.mubr.msk.f32.mxu0 %vm316_vm0, %v6794_v49 }
 0x1cf   : > { %4854 = vmatmul.mubr.msk.f32.gmra.mrb[32].mxu1 %vm316_vm0, %v7544_v61 }
 0x1d0   : > { %4856 = vmatprep.mubr.msk.f32.mxu1 %vm316_vm0, %v7545_v63 }
 0x1d1   : > { %5102 = vmatmul.mubr.msk.f32.gmra.mrb[38].mxu0 %vm316_vm0, %v7495_v53 }
 0x1d2   : > { %5104 = vmatprep.mubr.msk.f32.mxu0 %vm316_vm0, %v6808_v58 }
 0x1d3   : > { %4857 = vmatmul.mubr.msk.f32.gmra.mrb[34].mxu1 %vm316_vm0, %v7546_v0 }
 0x1d4   : > { %4859 = vmatprep.mubr.msk.f32.mxu1 %vm316_vm0, %v7547_v11 }
 0x1d5   : > { %5105 = vmatmul.mubr.msk.f32.gmra.mrb[40].mxu0 %vm316_vm0, %v7497_v24 }
 0x1d6   : > { %5107 = vmatprep.mubr.msk.f32.mxu0 %vm316_vm0, %v6822_v5 }
 0x1d7   : > { %4860 = vmatmul.mubr.msk.f32.gmra.mrb[66].mxu1 %vm316_vm0, %v7548_v19 }
 0x1d9   : > { %5108 = vmatmul.mubr.msk.f32.gmra.mrb[42].mxu0 %vm316_vm0, %v7498_v7 }
 0x1e0   : > { %v4952_v35 = vpop.f32.mrb[44].mxu0 }
 0x1e1   : > { %v2711_v9 = vpop.f32.mrb[45].mxu0 }
 0x1e2   : > { %v4675_v52 = vpop.f32.mrb[46].mxu1 }
 0x1e3   : > { %v978_v10 = vpop.f32.mrb[47].mxu1 }
 0x1e4   : > { %v4955_v1 = vpop.f32.mrb[46].mxu0 }
 0x1e5   : > { %v2719_v16 = vpop.f32.mrb[47].mxu0 }
 0x1e6   : > { %v4680_v3 = vpop.f32.mrb[48].mxu1 }
 0x1e7   : > { %v1085_v25 = vpop.f32.mrb[49].mxu1 }
 0x1ea   : > { %v4683_v48 = vpop.f32.mrb[50].mxu1 }
 0x1eb   : > { %v1093_v33 = vpop.f32.mrb[51].mxu1 }
 0x208   : > { %v4982_v62 = vpop.f32.mrb[48].mxu0 }
 0x209   : > { %v2807_v49 = vpop.f32.mrb[49].mxu0 }
 0x20c   : > { %v4985_v39 = vpop.f32.mrb[50].mxu0 }
 0x20d   : > { %v2815_v58 = vpop.f32.mrb[51].mxu0 }
 0x20e   : > { %v4710_v53 = vpop.f32.mrb[52].mxu1 }
 0x20f   : > { %v1181_v5 = vpop.f32.mrb[53].mxu1 }
 0x210   : > { %v4990_v24 = vpop.f32.mrb[52].mxu0 }
 0x211   : > { %v2922_v22 = vpop.f32.mrb[53].mxu0 }
 0x212   : > { %v4713_v43 = vpop.f32.mrb[54].mxu1 }
 0x213   : > { %v1189_v7 = vpop.f32.mrb[55].mxu1 }
 0x234   : > { %v5017_v28 = vpop.f32.mrb[54].mxu0 }
 0x235   : > { %v3010_v30 = vpop.f32.mrb[55].mxu0 }
 0x236   : > { %v4742_v27 = vpop.f32.mrb[0].mxu1 }
 0x237   : > { %v1577_v26 = vpop.f32.mrb[1].mxu1 }
 0x238   : > { %v5020_v42 = vpop.f32.mrb[56].mxu0 }
 0x239   : > { %v3018_v37 = vpop.f32.mrb[57].mxu0 }
 0x23a   : > { %v4745_v38 = vpop.f32.mrb[2].mxu1 }
 0x23b   : > { %v1587_v2 = vpop.f32.mrb[3].mxu1 }
 0x23e   : > { %v4748_v47 = vpop.f32.mrb[4].mxu1 }
 0x23f   : > { %v1597_v18 = vpop.f32.mrb[5].mxu1 }
 0x242   : > { %v4751_v36 = vpop.f32.mrb[6].mxu1 }
 0x243   : > { %v1607_v44 = vpop.f32.mrb[7].mxu1 }
 0x246   : > { %v7153_v20 = vpop.f32.mrb[8].mxu1 }
 0x247   : > { %v7155_v29 = vpop.f32.mrb[9].mxu1 }
 0x24a   : > { %v7157_v46 = vpop.f32.mrb[10].mxu1 }
 0x24b   : > { %v7159_v54 = vpop.f32.mrb[11].mxu1 }
 0x24e   : > { %v7161_v32 = vpop.f32.mrb[12].mxu1 }
 0x24f   : > { %v7163_v60 = vpop.f32.mrb[13].mxu1 }
 0x252   : > { %v7165_v45 = vpop.f32.mrb[14].mxu1 }
 0x253   : > { %v7167_v6 = vpop.f32.mrb[15].mxu1 }
 0x256   : > { %v4766_v40 = vpop.f32.mrb[56].mxu1 }
 0x257   : > { %v1657_v51 = vpop.f32.mrb[57].mxu1 }
 0x25a   : > { %v4769_v8 = vpop.f32.mrb[58].mxu1 }
 0x25b   : > { %v1665_v14 = vpop.f32.mrb[59].mxu1 }
 0x25c   : > { %v5047_v41 = vpop.f32.mrb[58].mxu0 }
 0x25d   : > { %v3106_v15 = vpop.f32.mrb[59].mxu0 }
 0x260   : > { %v5052_v4 = vpop.f32.mrb[60].mxu0 }
 0x261   : > { %v3213_v50 = vpop.f32.mrb[61].mxu0 }
 0x264   : > { %v5055_v21 = vpop.f32.mrb[62].mxu0 }
 0x265   : > { %v3221_v13 = vpop.f32.mrb[63].mxu0 }
 0x268   : > { %v5058_v34 = vpop.f32.mrb[2].mxu0 }
 0x269   : > { %v5112_v31 = vadd.f32 %v5058_v34, %v4742_v27  ;;  %v3229_v55 = vpop.f32.mrb[3].mxu0 }
 0x26a   : > { %v5113_v23 = vadd.f32 %v3229_v55, %v1577_v26 }
 0x26b   : > { %v3444_v61 = vadd.f32 %v5112_v31, %v7170_v59 }
 0x26c   : > { %v3443_v63 = vadd.f32 %v5113_v23, %v7170_v59  ;;  %v5061_v0 = vpop.f32.mrb[4].mxu0 }
 0x26d   : > { %3476 = vst [vmem:[%s7174_s23 + $0x8] sm:$0xff] %v3444_v61  ;;  %v3546_v11 = vmul.f32 %v3444_v61, %v3444_v61  ;;  %v5114_v19 = vadd.f32 %v5061_v0, %v4745_v38  ;;  %v3239_v12 = vpop.f32.mrb[5].mxu0 }
 0x26e   : > { %3475 = vst [vmem:[%s7174_s23] sm:$0xff] %v3443_v63  ;;  %v3507_v17 = vadd.f32 %v3444_v61, %v3443_v63  ;;  %v3545_v57 = vmul.f32 %v3443_v63, %v3443_v63  ;;  %v5115_v56 = vadd.f32 %v3239_v12, %v1587_v2 }
 0x26f   : > { %v3446_v35 = vadd.f32 %v5114_v19, %v7170_v59 }
 0x270   : > { %v3577_v9 = vadd.f32 %v3546_v11, %v3545_v57  ;;  %v3445_v52 = vadd.f32 %v5115_v56, %v7170_v59  ;;  %v5064_v10 = vpop.f32.mrb[6].mxu0 }
 0x271   : > { %3478 = vst [vmem:[%s7174_s23 + $0x18] sm:$0xff] %v3446_v35  ;;  %v5116_v1 = vadd.f32 %v5064_v10, %v4748_v47  ;;  %v3249_v16 = vpop.f32.mrb[7].mxu0  ;;  %v3548_v62 = vmul.f32 %v3446_v35, %v3446_v35 }
 0x272   : > { %3477 = vst [vmem:[%s7174_s23 + $0x10] sm:$0xff] %v3445_v52  ;;  %v3508_v3 = vadd.f32 %v3507_v17, %v3445_v52  ;;  %v3547_v25 = vmul.f32 %v3445_v52, %v3445_v52  ;;  %v5117_v48 = vadd.f32 %v3249_v16, %v1597_v18 }
 0x273   : > { %v3448_v33 = vadd.f32 %v5116_v1, %v7170_v59 }
 0x274   : > { %v3578_v49 = vadd.f32 %v3577_v9, %v3547_v25  ;;  %v3447_v39 = vadd.f32 %v5117_v48, %v7170_v59  ;;  %v3509_v58 = vadd.f32 %v3508_v3, %v3446_v35  ;;  %v5067_v53 = vpop.f32.mrb[8].mxu0 }
 0x275   : > { %3480 = vst [vmem:[%s7174_s23 + $0x28] sm:$0xff] %v3448_v33  ;;  %v5118_v5 = vadd.f32 %v5067_v53, %v4751_v36  ;;  %v3259_v24 = vpop.f32.mrb[9].mxu0  ;;  %v3550_v27 = vmul.f32 %v3448_v33, %v3448_v33 }
 0x276   : > { %3479 = vst [vmem:[%s7174_s23 + $0x20] sm:$0xff] %v3447_v39  ;;  %v3510_v22 = vadd.f32 %v3509_v58, %v3447_v39  ;;  %v3549_v43 = vmul.f32 %v3447_v39, %v3447_v39  ;;  %v3579_v7 = vadd.f32 %v3578_v49, %v3548_v62  ;;  %v5119_v28 = vadd.f32 %v3259_v24, %v1607_v44 }
 0x277   : > { %v3450_v30 = vadd.f32 %v5118_v5, %v7170_v59 }
 0x278   : > { %v3580_v26 = vadd.f32 %v3579_v7, %v3549_v43  ;;  %v3449_v42 = vadd.f32 %v5119_v28, %v7170_v59  ;;  %v3511_v37 = vadd.f32 %v3510_v22, %v3448_v33  ;;  %v5070_v38 = vpop.f32.mrb[10].mxu0 }
 0x279   : > { %3482 = vst [vmem:[%s7174_s23 + $0x38] sm:$0xff] %v3450_v30  ;;  %v5120_v2 = vadd.f32 %v5070_v38, %v7153_v20  ;;  %v3269_v47 = vpop.f32.mrb[11].mxu0  ;;  %v3552_v8 = vmul.f32 %v3450_v30, %v3450_v30 }
 0x27a   : > { %3481 = vst [vmem:[%s7174_s23 + $0x30] sm:$0xff] %v3449_v42  ;;  %v3512_v18 = vadd.f32 %v3511_v37, %v3449_v42  ;;  %v3551_v36 = vmul.f32 %v3449_v42, %v3449_v42  ;;  %v3581_v40 = vadd.f32 %v3580_v26, %v3550_v27  ;;  %v5121_v44 = vadd.f32 %v3269_v47, %v7155_v29 }
 0x27b   : > { %v3452_v51 = vadd.f32 %v5120_v2, %v7170_v59 }
 0x27c   : > { %v3582_v14 = vadd.f32 %v3581_v40, %v3551_v36  ;;  %v3451_v41 = vadd.f32 %v5121_v44, %v7170_v59  ;;  %v3513_v15 = vadd.f32 %v3512_v18, %v3450_v30  ;;  %v5073_v4 = vpop.f32.mrb[12].mxu0 }
 0x27d   : > { %3484 = vst [vmem:[%s7174_s23 + $0x48] sm:$0xff] %v3452_v51  ;;  %v5122_v20 = vadd.f32 %v5073_v4, %v7157_v46  ;;  %v3279_v50 = vpop.f32.mrb[13].mxu0  ;;  %v3554_v61 = vmul.f32 %v3452_v51, %v3452_v51 }
 0x27e   : > { %v4796_v21 = vpop.f32.mrb[60].mxu1  ;;  %3483 = vst [vmem:[%s7174_s23 + $0x40] sm:$0xff] %v3451_v41  ;;  %v3514_v13 = vadd.f32 %v3513_v15, %v3451_v41  ;;  %v3553_v34 = vmul.f32 %v3451_v41, %v3451_v41  ;;  %v3583_v31 = vadd.f32 %v3582_v14, %v3552_v8  ;;  %v5123_v29 = vadd.f32 %v3279_v50, %v7159_v54 }
 0x27f   : > { %v1753_v55 = vpop.f32.mrb[61].mxu1  ;;  %v3454_v23 = vadd.f32 %v5122_v20, %v7170_v59 }
 0x280   : > { %v3584_v63 = vadd.f32 %v3583_v31, %v3553_v34  ;;  %v3453_v0 = vadd.f32 %v5123_v29, %v7170_v59  ;;  %v3515_v11 = vadd.f32 %v3514_v13, %v3452_v51  ;;  %v5076_v19 = vpop.f32.mrb[14].mxu0 }
 0x281   : > { %3486 = vst [vmem:[%s7174_s23 + $0x58] sm:$0xff] %v3454_v23  ;;  %v5124_v46 = vadd.f32 %v5076_v19, %v7161_v32  ;;  %v3289_v12 = vpop.f32.mrb[15].mxu0  ;;  %v3556_v10 = vmul.f32 %v3454_v23, %v3454_v23 }
 0x282   : > { %v4799_v17 = vpop.f32.mrb[62].mxu1  ;;  %3485 = vst [vmem:[%s7174_s23 + $0x50] sm:$0xff] %v3453_v0  ;;  %v3516_v57 = vadd.f32 %v3515_v11, %v3453_v0  ;;  %v3555_v56 = vmul.f32 %v3453_v0, %v3453_v0  ;;  %v3585_v54 = vadd.f32 %v3584_v63, %v3554_v61  ;;  %v5125_v35 = vadd.f32 %v3289_v12, %v7163_v60 }
 0x283   : > { %v1761_v9 = vpop.f32.mrb[63].mxu1  ;;  %v3456_v52 = vadd.f32 %v5124_v46, %v7170_v59 }
 0x284   : > { %v3586_v1 = vadd.f32 %v3585_v54, %v3555_v56  ;;  %v3455_v16 = vadd.f32 %v5125_v35, %v7170_v59  ;;  %v3517_v3 = vadd.f32 %v3516_v57, %v3454_v23  ;;  %v5079_v25 = vpop.f32.mrb[16].mxu0 }
 0x285   : > { %3488 = vst [vmem:[%s7174_s23 + $0x68] sm:$0xff] %v3456_v52  ;;  %v5126_v32 = vadd.f32 %v5079_v25, %v7165_v45  ;;  %v3299_v48 = vpop.f32.mrb[17].mxu0  ;;  %v3558_v5 = vmul.f32 %v3456_v52, %v3456_v52 }
 0x286   : > { %v4834_v33 = vpop.f32.mrb[64].mxu1  ;;  %3487 = vst [vmem:[%s7174_s23 + $0x60] sm:$0xff] %v3455_v16  ;;  %v3518_v62 = vadd.f32 %v3517_v3, %v3455_v16  ;;  %v3557_v49 = vmul.f32 %v3455_v16, %v3455_v16  ;;  %v3587_v60 = vadd.f32 %v3586_v1, %v3556_v10  ;;  %v5127_v39 = vadd.f32 %v3299_v48, %v7167_v6 }
 0x287   : > { %v1964_v58 = vpop.f32.mrb[65].mxu1  ;;  %v3458_v53 = vadd.f32 %v5126_v32, %v7170_v59 }
 0x288   : > { %v3588_v24 = vadd.f32 %v3587_v60, %v3557_v49  ;;  %v3457_v22 = vadd.f32 %v5127_v39, %v7170_v59  ;;  %v3519_v43 = vadd.f32 %v3518_v62, %v3456_v52  ;;  %v5082_v7 = vpop.f32.mrb[64].mxu0 }
 0x289   : > { %3490 = vst [vmem:[%s7174_s23 + $0x78] sm:$0xff] %v3458_v53  ;;  %v3309_v45 = vpop.f32.mrb[65].mxu0  ;;  %v3560_v37 = vmul.f32 %v3458_v53, %v3458_v53 }
 0x28a   : > { %v4837_v28 = vpop.f32.mrb[20].mxu1  ;;  %3489 = vst [vmem:[%s7174_s23 + $0x70] sm:$0xff] %v3457_v22  ;;  %v3520_v30 = vadd.f32 %v3519_v43, %v3457_v22  ;;  %v3559_v27 = vmul.f32 %v3457_v22, %v3457_v22  ;;  %v3589_v26 = vadd.f32 %v3588_v24, %v3558_v5 }
 0x28b   : > { %v1972_v42 = vpop.f32.mrb[21].mxu1 }
 0x28c   : > { %v3590_v38 = vadd.f32 %v3589_v26, %v3559_v27  ;;  %v5085_v6 = vpop.f32.mrb[66].mxu0  ;;  %v3521_v2 = vadd.f32 %v3520_v30, %v3458_v53 }
 0x28d   : > { %v3317_v47 = vpop.f32.mrb[67].mxu0 }
 0x28e   : > { %v4840_v18 = vpop.f32.mrb[22].mxu1  ;;  %v3591_v40 = vadd.f32 %v3590_v38, %v3560_v37 }
 0x28f   : > { %v1982_v36 = vpop.f32.mrb[23].mxu1 }
 0x290   : > { %v5088_v44 = vpop.f32.mrb[28].mxu0 }
 0x291   : > { %v5128_v51 = vadd.f32 %v5088_v44, %v4837_v28  ;;  %v3325_v8 = vpop.f32.mrb[29].mxu0 }
 0x292   : > { %v4843_v14 = vpop.f32.mrb[24].mxu1  ;;  %v5129_v41 = vadd.f32 %v3325_v8, %v1972_v42 }
 0x293   : > { %v1992_v15 = vpop.f32.mrb[25].mxu1  ;;  %v3460_v4 = vadd.f32 %v5128_v51, %v7170_v59 }
 0x294   : > { %v3459_v20 = vadd.f32 %v5129_v41, %v7170_v59  ;;  %v5091_v50 = vpop.f32.mrb[30].mxu0 }
 0x295   : > { %3492 = vst [vmem:[%s7174_s23 + $0x88] sm:$0xff] %v3460_v4  ;;  %v5130_v21 = vadd.f32 %v5091_v50, %v4840_v18  ;;  %v3335_v13 = vpop.f32.mrb[31].mxu0  ;;  %v3562_v63 = vmul.f32 %v3460_v4, %v3460_v4 }
 0x296   : > { %v4846_v34 = vpop.f32.mrb[26].mxu1  ;;  %3491 = vst [vmem:[%s7174_s23 + $0x80] sm:$0xff] %v3459_v20  ;;  %v3522_v31 = vadd.f32 %v3521_v2, %v3459_v20  ;;  %v3561_v29 = vmul.f32 %v3459_v20, %v3459_v20  ;;  %v5131_v55 = vadd.f32 %v3335_v13, %v1982_v36 }
 0x297   : > { %v2002_v23 = vpop.f32.mrb[27].mxu1  ;;  %v3462_v61 = vadd.f32 %v5130_v21, %v7170_v59 }
 0x298   : > { %v3592_v0 = vadd.f32 %v3591_v40, %v3561_v29  ;;  %v3461_v11 = vadd.f32 %v5131_v55, %v7170_v59  ;;  %v3523_v19 = vadd.f32 %v3522_v31, %v3460_v4  ;;  %v5094_v46 = vpop.f32.mrb[32].mxu0 }
 0x299   : > { %3494 = vst [vmem:[%s7174_s23 + $0x98] sm:$0xff] %v3462_v61  ;;  %v5132_v12 = vadd.f32 %v5094_v46, %v4843_v14  ;;  %v3345_v17 = vpop.f32.mrb[33].mxu0  ;;  %v3564_v1 = vmul.f32 %v3462_v61, %v3462_v61 }
 0x29a   : > { %v4849_v57 = vpop.f32.mrb[28].mxu1  ;;  %3493 = vst [vmem:[%s7174_s23 + $0x90] sm:$0xff] %v3461_v11  ;;  %v3524_v56 = vadd.f32 %v3523_v19, %v3461_v11  ;;  %v3563_v54 = vmul.f32 %v3461_v11, %v3461_v11  ;;  %v3593_v35 = vadd.f32 %v3592_v0, %v3562_v63  ;;  %v5133_v9 = vadd.f32 %v3345_v17, %v1992_v15 }
 0x29b   : > { %v2012_v52 = vpop.f32.mrb[29].mxu1  ;;  %v3464_v10 = vadd.f32 %v5132_v12, %v7170_v59 }
 0x29c   : > { %v3594_v16 = vadd.f32 %v3593_v35, %v3563_v54  ;;  %v3463_v3 = vadd.f32 %v5133_v9, %v7170_v59  ;;  %v3525_v25 = vadd.f32 %v3524_v56, %v3462_v61  ;;  %v5097_v32 = vpop.f32.mrb[34].mxu0 }
 0x29d   : > { %3496 = vst [vmem:[%s7174_s23 + $0xa8] sm:$0xff] %v3464_v10  ;;  %v5134_v48 = vadd.f32 %v5097_v32, %v4846_v34  ;;  %v3355_v33 = vpop.f32.mrb[35].mxu0  ;;  %v3566_v24 = vmul.f32 %v3464_v10, %v3464_v10 }
 0x29e   : > { %v4852_v62 = vpop.f32.mrb[30].mxu1  ;;  %3495 = vst [vmem:[%s7174_s23 + $0xa0] sm:$0xff] %v3463_v3  ;;  %v3526_v49 = vadd.f32 %v3525_v25, %v3463_v3  ;;  %v3565_v60 = vmul.f32 %v3463_v3, %v3463_v3  ;;  %v3595_v39 = vadd.f32 %v3594_v16, %v3564_v1  ;;  %v5135_v58 = vadd.f32 %v3355_v33, %v2002_v23 }
 0x29f   : > { %v2022_v53 = vpop.f32.mrb[31].mxu1  ;;  %v3466_v5 = vadd.f32 %v5134_v48, %v7170_v59 }
 0x2a0   : > { %v3596_v22 = vadd.f32 %v3595_v39, %v3565_v60  ;;  %v3465_v43 = vadd.f32 %v5135_v58, %v7170_v59  ;;  %v3527_v7 = vadd.f32 %v3526_v49, %v3464_v10  ;;  %v5100_v45 = vpop.f32.mrb[36].mxu0 }
 0x2a1   : > { %3498 = vst [vmem:[%s7174_s23 + $0xb8] sm:$0xff] %v3466_v5  ;;  %v5136_v28 = vadd.f32 %v5100_v45, %v4849_v57  ;;  %v3365_v30 = vpop.f32.mrb[37].mxu0  ;;  %v3568_v47 = vmul.f32 %v3466_v5, %v3466_v5 }
 0x2a2   : > { %v4855_v27 = vpop.f32.mrb[32].mxu1  ;;  %3497 = vst [vmem:[%s7174_s23 + $0xb0] sm:$0xff] %v3465_v43  ;;  %v3528_v26 = vadd.f32 %v3527_v7, %v3465_v43  ;;  %v3567_v42 = vmul.f32 %v3465_v43, %v3465_v43  ;;  %v3597_v37 = vadd.f32 %v3596_v22, %v3566_v24  ;;  %v5137_v38 = vadd.f32 %v3365_v30, %v2012_v52 }
 0x2a3   : > { %v2032_v6 = vpop.f32.mrb[33].mxu1  ;;  %v3468_v2 = vadd.f32 %v5136_v28, %v7170_v59 }
 0x2a4   : > { %v3598_v18 = vadd.f32 %v3597_v37, %v3567_v42  ;;  %v3467_v36 = vadd.f32 %v5137_v38, %v7170_v59  ;;  %v3529_v40 = vadd.f32 %v3528_v26, %v3466_v5  ;;  %v5103_v44 = vpop.f32.mrb[38].mxu0 }
 0x2a5   : > { %3500 = vst [vmem:[%s7174_s23 + $0xc8] sm:$0xff] %v3468_v2  ;;  %v5138_v51 = vadd.f32 %v5103_v44, %v4852_v62  ;;  %v3375_v8 = vpop.f32.mrb[39].mxu0  ;;  %v3570_v13 = vmul.f32 %v3468_v2, %v3468_v2 }
 0x2a6   : > { %v4858_v14 = vpop.f32.mrb[34].mxu1  ;;  %3499 = vst [vmem:[%s7174_s23 + $0xc0] sm:$0xff] %v3467_v36  ;;  %v3530_v41 = vadd.f32 %v3529_v40, %v3467_v36  ;;  %v3569_v15 = vmul.f32 %v3467_v36, %v3467_v36  ;;  %v3599_v4 = vadd.f32 %v3598_v18, %v3568_v47  ;;  %v5139_v20 = vadd.f32 %v3375_v8, %v2022_v53 }
 0x2a7   : > { %v2042_v50 = vpop.f32.mrb[35].mxu1  ;;  %v3470_v21 = vadd.f32 %v5138_v51, %v7170_v59 }
 0x2a8   : > { %v3600_v34 = vadd.f32 %v3599_v4, %v3569_v15  ;;  %v3469_v31 = vadd.f32 %v5139_v20, %v7170_v59  ;;  %v3531_v29 = vadd.f32 %v3530_v41, %v3468_v2  ;;  %v5106_v55 = vpop.f32.mrb[40].mxu0 }
 0x2a9   : > { %3502 = vst [vmem:[%s7174_s23 + $0xd8] sm:$0xff] %v3470_v21  ;;  %v5140_v23 = vadd.f32 %v5106_v55, %v4855_v27  ;;  %v3385_v61 = vpop.f32.mrb[41].mxu0  ;;  %v3572_v57 = vmul.f32 %v3470_v21, %v3470_v21 }
 0x2aa   : > { %v4861_v63 = vpop.f32.mrb[66].mxu1  ;;  %3501 = vst [vmem:[%s7174_s23 + $0xd0] sm:$0xff] %v3469_v31  ;;  %v3532_v0 = vadd.f32 %v3531_v29, %v3469_v31  ;;  %v3571_v11 = vmul.f32 %v3469_v31, %v3469_v31  ;;  %v3601_v19 = vadd.f32 %v3600_v34, %v3570_v13  ;;  %v5141_v46 = vadd.f32 %v3385_v61, %v2032_v6 }
 0x2ab   : > { %v2052_v12 = vpop.f32.mrb[67].mxu1  ;;  %v3472_v17 = vadd.f32 %v5140_v23, %v7170_v59 }
 0x2ac   : > { %v3602_v56 = vadd.f32 %v3601_v19, %v3571_v11  ;;  %v3471_v54 = vadd.f32 %v5141_v46, %v7170_v59  ;;  %v3533_v35 = vadd.f32 %v3532_v0, %v3470_v21  ;;  %v5109_v9 = vpop.f32.mrb[42].mxu0 }
 0x2ad   : > { %3504 = vst [vmem:[%s7174_s23 + $0xe8] sm:$0xff] %v3472_v17  ;;  %v5142_v52 = vadd.f32 %v5109_v9, %v4858_v14  ;;  %v3395_v10 = vpop.f32.mrb[43].mxu0  ;;  %v3574_v48 = vmul.f32 %v3472_v17, %v3472_v17 }
 0x2ae   : > { %3503 = vst [vmem:[%s7174_s23 + $0xe0] sm:$0xff] %v3471_v54  ;;  %v3534_v1 = vadd.f32 %v3533_v35, %v3471_v54  ;;  %v3573_v16 = vmul.f32 %v3471_v54, %v3471_v54  ;;  %v3603_v3 = vadd.f32 %v3602_v56, %v3572_v57  ;;  %v5143_v25 = vadd.f32 %v3395_v10, %v2042_v50 }
 0x2af   : > { %v3474_v32 = vadd.f32 %v5142_v52, %v7170_v59 }
 0x2b0   : > { %v3604_v33 = vadd.f32 %v3603_v3, %v3573_v16  ;;  %v3473_v62 = vadd.f32 %v5143_v25, %v7170_v59  ;;  %v3535_v49 = vadd.f32 %v3534_v1, %v3472_v17 }
 0x2b1   : > { %3506 = vst [vmem:[%s7174_s23 + $0xf8] sm:$0xff] %v3474_v32  ;;  %v3576_v53 = vmul.f32 %v3474_v32, %v3474_v32 }
 0x2b2   : > { %3505 = vst [vmem:[%s7174_s23 + $0xf0] sm:$0xff] %v3473_v62  ;;  %v3536_v60 = vadd.f32 %v3535_v49, %v3473_v62  ;;  %v3575_v39 = vmul.f32 %v3473_v62, %v3473_v62  ;;  %v3605_v58 = vadd.f32 %v3604_v33, %v3574_v48 }
 0x2b4   : > { %v3537_v5 = vadd.f32 %v3536_v60, %v3474_v32  ;;  %v3606_v24 = vadd.f32 %v3605_v58, %v3575_v39 }
 0x2b6   : > { %v3538_v22 = vrot.slane %v3537_v5, 4  ;;  %v3607_v43 = vadd.f32 %v3606_v24, %v3576_v53 }
 0x2b8   : > { %v3539_v7 = vadd.f32 %v3538_v22, %v3537_v5  ;;  %v3608_v45 = vrot.slane %v3607_v43, 4 }
 0x2ba   : > { %v3540_v28 = vrot.slane %v3539_v7, 2  ;;  %v3609_v30 = vadd.f32 %v3608_v45, %v3607_v43 }
 0x2bc   : > { %v3541_v59 = vadd.f32 %v3540_v28, %v3539_v7  ;;  %v3610_v27 = vrot.slane %v3609_v30, 2 }
 0x2be   : > { %v3542_v26 = vrot.slane %v3541_v59, 1  ;;  %v3611_v42 = vadd.f32 %v3610_v27, %v3609_v30 }
 0x2c0   : > { %v3543_v37 = vadd.f32 %v3542_v26, %v3541_v59  ;;  %v3612_v38 = vrot.slane %v3611_v42, 1 }
 0x2c2   : > { %3544 = vst [vmem:[%s253_s12] sm:$0x1] %v3543_v37  ;;  %v3613_v6 = vadd.f32 %v3612_v38, %v3611_v42 }
 0x2c4   : > { %3614 = vst [vmem:[%s253_s12 + $0x1] sm:$0x1] %v3613_v6 }
 0x2c5   : > { %s4182_s7 = sshll.u32 %s5680_s19, 11  ;;  %s3651_s8 = sshll.u32 %s7174_s23, 4  ;;  %s3652_s8 = int_to_ptr.vmem [resolvable:$true] %s3651_s8 }
 0x2c6   : > { %s3634_s27 = scalar_lea.hbm %s7307_s3, %s4182_s7  ;;  %s5626_s25 = smov 2048  }
 0x2c7   : > { %p7549_p11 = scmp.ne.s32.totalorder %s7413_s14, 0  ;;  %s5627_s26 = smov 4096  }
 0x2c8   : > { %s5628_s13 = smov 16   ;;  %s5629_s28 = smov 128  }
 0x2c9   : > { %5381 = sst [smem:[#allocation12]] (%p7549_p11), %s5626_s25  ;;  %s5630_s30 = smov 8  }
 0x2ca   : > { %5382 = sst [smem:[#allocation12 + $0x1]] (%p7549_p11), %s5627_s26  ;;  %s5631_s21 = smov [#allocation11]  }
 0x2cb   : > { %5383 = sst [smem:[#allocation12 + $0x2]] (%p7549_p11), %s5628_s13  ;;  %s5632_s23 = smov 0  }
 0x2cc   : > { %5384 = sst [smem:[#allocation12 + $0x3]] (%p7549_p11), %s5629_s28  ;;  %s4178_s11 = sshll.u32 %s5680_s19, 5 }
 0x2cd   : > { %5385 = sst [smem:[#allocation12 + $0x4]] (%p7549_p11), %s5629_s28  ;;  %s3680_s7 = sshll.u32 %s253_s12, 4  ;;  %s3681_s7 = int_to_ptr.vmem [resolvable:$true] %s3680_s7 }
 0x2ce   : > { %5386 = sst [smem:[#allocation12 + $0x5]] (%p7549_p11), %s5630_s30  ;;  %s3678_s25 = scalar_lea.hbm %s7308_s4, %s4178_s11 }
 0x2cf   : > { %5387 = dma.general (%p7549_p11), %s3652_s8, 4096, %s3634_s27, %s3616_s29, %s5631_s21, [#allocation12], %s5632_s23, 0  }
 0x2d0   : > { %s5545_s26 = scalar_lea.vmem %s3681_s7, 32  ;;  %s5633_s13 = smov [#allocation9]  }
 0x2d1   : > { %p5546_p0 = scmp.ne.s32.totalorder %s3681_s7, %s5545_s26  ;;  %s5549_s28 = sshll.u32 %s5633_s13, 4  ;;  %s5550_s28 = int_to_ptr.vmem [resolvable:$false] %s5549_s28 }
 0x2d2   : > { %s5551_s30 = scalar_lea.vmem %s5550_s28, 64  ;;  %p5552_p7 = scmp.lt.s32.totalorder %s3681_s7, %s5550_s28 }
 0x2d3   : > { %p5547_p2 = pnand %p5546_p0, %p7549_p11  ;;  %p5553_p9 = scmp.lt.s32.totalorder %s5551_s30, %s5545_s26 }
 0x2d5   : > { %p5548_p3 = pneg %p5547_p2  ;;  %p5554_p12 = por %p5553_p9, %p5552_p7 }
 0x2d7   : > { %p5555_p1 = pnand %p5554_p12, %p5548_p3 }
 0x2d9   : > { %5558 = shalt.err (!%p5555_p1)
}
 0x2da   : > { %s5559_s19 = scalar_lea.hbm %s3678_s25, 32  ;;  %s5563_s8 = scalar_lea.hbm %s7308_s4, 64 }
 0x2db   : > { %p5560_p13 = scmp.ne.s32.totalorder %s3678_s25, %s5559_s19  ;;  %p5564_p4 = scmp.lt.u32.totalorder %s3678_s25, %s7308_s4 }
 0x2dc   : > { %p5565_p5 = scmp.lt.u32.totalorder %s5563_s8, %s5559_s19  ;;  %p5567_p0 = scmp.lt.u32.totalorder %s5559_s19, %s3678_s25 }
 0x2dd   : > { %p5561_p6 = pnand %p5560_p13, %p7549_p11 }
 0x2de   : > { %p5566_p8 = por %p5565_p5, %p5564_p4 }
 0x2df   : > { %p5562_p10 = pneg %p5561_p6 }
 0x2e0   : > { %p5568_p2 = por %p5567_p0, %p5566_p8 }
 0x2e2   : > { %p5569_p3 = pnand %p5568_p2, %p5562_p10 }
 0x2e4   : > { %5572 = shalt.err (!%p5569_p3)
}
 0x2e5   : > { %5388 = dma.vmem_to_hbm [thread:$0]  (%p7549_p11), %s3681_s7, 32, %s3678_s25, %s3621_s6  }
 0x2e6 PF: > { %s3692_s23 = sand.u32 1, %s5607_s15   ;;  %p7550_p7 = scmp.ne.s32.totalorder %s7409_s22, 0 }
 0x2e7   : > { %p7551_p9 = scmp.ge.s32.totalorder %s5619_s18, 2  ;;  %s3693_s11 = scalar_lea.sflag [#allocation4], %s3692_s23 }
 0x2e9   : > { %p5403_p12 = pnand %p7551_p9, %p7550_p7 }
 0x2eb   : > { %5598 = dma.done.wait (!%p5403_p12), %s3693_s11, 4096  }
 0x2ec   : > { %5600 = vsyncadd (!%p5403_p12), %s3693_s11, 4294963200  ;;  %s3702_s5 = scalar_lea.sflag [#allocation10], %s3692_s23 }
 0x2ed   : > { %5602 = dma.done.wait (!%p5403_p12), %s3702_s5, 32  }
 0x2ee   : > { %5604 = vsyncadd (!%p5403_p12), %s3702_s5, 4294967264  ;;  %p22_p11 = scmp.ge.s32.totalorder %s5773_s10, 4   ;;  %s7552_s15 = smov %s5611_s16 }
 0x2ef   : > { %s7553_s16 = smov %s5615_s17  ;;  %s7554_s17 = smov %s5789_s20 }
 0x2f0   : > { %s7555_s18 = smov %s5773_s10  ;;  %24 = sbr.rel (!%p22_p11) target bundleno = 8 (0x8), region = 115 }
 0x2f7   :  { %3707 = vsyncpa [#allocation3], 1 }
 0x2f8   :  { %3709 = vsyncpa [#allocation3 + $0x1], 1 }
 0x2f9   :  { %3710 = vsyncpa [#allocation6], 1 }
 0x2fa   :  { %3711 = vsyncpa [#allocation4], 1 }
 0x2fb   :  { %3713 = vsyncpa [#allocation4 + $0x1], 1 }
 0x2fc   :  { %3714 = vsyncpa [#allocation10], 1 }
 0x2fd   :  { %3716 = vsyncpa [#allocation10 + $0x1], 1 }

</bundles_post_ra>
